<compile_context>
chip_gen: v6e
topology: v6e:2x2x1
jax: 0.10.0
libtpu: 0.0.40
codegen_flags: <defaults>
</compile_context>

<pallas_src>
import functools

import jax
import jax.numpy as jnp
from jax import lax
from jax.experimental import pallas as pl
from jax.experimental.pallas import tpu as pltpu

EPS = 1e-5                       # nn.BatchNorm1d default eps
VMEM_LIMIT = 32 * 1024 * 1024    # safe on v5e / v6e / v7x


def _round_up(x, m):
    return (x + m - 1) // m * m


# ----------------------------------------------------------------------------
# In-kernel helper: n-tap unit-stride conv of ONE sample.
#   xs     : [L_pad, C] bf16 value (halo rows included)
#   w_taps : list of n_taps [C, C_out] bf16 values (resident weights)
# returns  : [n_out, C_out] f32
# ----------------------------------------------------------------------------
def _conv_sample(xs, w_taps, n_out):
    acc = None
    for k, wk in enumerate(w_taps):
        yk = jnp.dot(xs[k:k + n_out, :], wk, preferred_element_type=jnp.float32)
        acc = yk if acc is None else acc + yk
    return acc


# ----------------------------------------------------------------------------
# Kernel 1: per-channel sum / sum-of-squares of the conv output (BN stats),
# accumulated across batch tiles into resident (1, C_out) outputs.
# ----------------------------------------------------------------------------
def _conv_stats_kernel(x_ref, w_ref, sum_ref, ssq_ref, *, n_taps, n_out, tile_b):
    @pl.when(pl.program_id(0) == 0)
    def _init():
        sum_ref[...] = jnp.zeros_like(sum_ref)
        ssq_ref[...] = jnp.zeros_like(ssq_ref)

    w_taps = [w_ref[k] for k in range(n_taps)]
    s = jnp.zeros(sum_ref.shape, jnp.float32)
    q = jnp.zeros(ssq_ref.shape, jnp.float32)
    for t in range(tile_b):                      # static unroll over samples
        y = _conv_sample(x_ref[t], w_taps, n_out)
        s = s + jnp.sum(y, axis=0, keepdims=True)
        q = q + jnp.sum(y * y, axis=0, keepdims=True)
    sum_ref[...] += s
    ssq_ref[...] += q


def conv_stats(x, w_taps, *, n_out, tile_b):
    b_pad, l_pad, c = x.shape
    n_taps, _, c_out = w_taps.shape
    grid_b = b_pad // tile_b
    flops = 2 * b_pad * n_out * n_taps * c * c_out
    bytes_acc = (x.size * x.dtype.itemsize + w_taps.size * w_taps.dtype.itemsize
                 + 2 * c_out * 4)
    kernel = functools.partial(_conv_stats_kernel, n_taps=n_taps,
                               n_out=n_out, tile_b=tile_b)
    return pl.pallas_call(
        kernel,
        out_shape=(jax.ShapeDtypeStruct((1, c_out), jnp.float32),
                   jax.ShapeDtypeStruct((1, c_out), jnp.float32)),
        grid=(grid_b,),
        in_specs=[
            pl.BlockSpec((tile_b, l_pad, c), lambda i: (i, 0, 0)),
            pl.BlockSpec((n_taps, c, c_out), lambda i: (0, 0, 0)),
        ],
        out_specs=(pl.BlockSpec((1, c_out), lambda i: (0, 0)),
                   pl.BlockSpec((1, c_out), lambda i: (0, 0))),
        compiler_params=pltpu.CompilerParams(
            dimension_semantics=("arbitrary",),   # resident accumulator outputs
            vmem_limit_bytes=VMEM_LIMIT),
        cost_estimate=pl.CostEstimate(flops=int(flops), transcendentals=0,
                                      bytes_accessed=int(bytes_acc)),
    )(x, w_taps)


# ----------------------------------------------------------------------------
# Kernel 2: fused conv + BN(scale/shift) + ReLU; writes the NEXT layer's
# halo-padded [B, n_out+2, C_out] layout directly (halo rows = zeros).
# ----------------------------------------------------------------------------
def _conv_bn_relu_kernel(x_ref, w_ref, scale_ref, shift_ref, o_ref, *,
                         n_taps, n_out, tile_b, b_valid, mask_batch):
    i = pl.program_id(0)
    # Zero the whole block: writes the L halo rows and keeps any padded batch
    # samples at exactly zero (so they never perturb later-layer BN stats).
    o_ref[...] = jnp.zeros_like(o_ref)
    w_taps = [w_ref[k] for k in range(n_taps)]
    scale = scale_ref[...]
    shift = shift_ref[...]
    for t in range(tile_b):
        y = _conv_sample(x_ref[t], w_taps, n_out)
        y = jnp.maximum(y * scale + shift, 0.0).astype(o_ref.dtype)
        if mask_batch:
            @pl.when(i * tile_b + t < b_valid)
            def _store(y=y, t=t):
                o_ref[t, 1:n_out + 1, :] = y
        else:
            o_ref[t, 1:n_out + 1, :] = y


def conv_bn_relu(x, w_taps, scale, shift, *, n_out, tile_b, b_valid):
    b_pad, l_pad, c = x.shape
    n_taps, _, c_out = w_taps.shape
    grid_b = b_pad // tile_b
    flops = 2 * b_pad * n_out * n_taps * c * c_out
    bytes_acc = (x.size * x.dtype.itemsize + w_taps.size * w_taps.dtype.itemsize
                 + b_pad * (n_out + 2) * c_out * 2)
    kernel = functools.partial(_conv_bn_relu_kernel, n_taps=n_taps, n_out=n_out,
                               tile_b=tile_b, b_valid=b_valid,
                               mask_batch=(b_valid != b_pad))
    return pl.pallas_call(
        kernel,
        out_shape=jax.ShapeDtypeStruct((b_pad, n_out + 2, c_out), jnp.bfloat16),
        grid=(grid_b,),
        in_specs=[
            pl.BlockSpec((tile_b, l_pad, c), lambda i: (i, 0, 0)),
            pl.BlockSpec((n_taps, c, c_out), lambda i: (0, 0, 0)),
            pl.BlockSpec((1, c_out), lambda i: (0, 0)),
            pl.BlockSpec((1, c_out), lambda i: (0, 0)),
        ],
        out_specs=pl.BlockSpec((tile_b, n_out + 2, c_out), lambda i: (i, 0, 0)),
        compiler_params=pltpu.CompilerParams(
            dimension_semantics=("parallel",),
            vmem_limit_bytes=VMEM_LIMIT),
        cost_estimate=pl.CostEstimate(flops=int(flops), transcendentals=0,
                                      bytes_accessed=int(bytes_acc)),
    )(x, w_taps, scale, shift)


# ----------------------------------------------------------------------------
# Kernel 3: conv3 + BN + ReLU + AdaptiveAvgPool1d(1) + Linear, fully fused.
# The [B, L/4, 256] activation is never written to HBM.
# ----------------------------------------------------------------------------
def _conv_bn_relu_pool_fc_kernel(x_ref, w_ref, scale_ref, shift_ref,
                                 fcw_ref, fcb_ref, o_ref, *,
                                 n_taps, n_out, tile_b, inv_l):
    w_taps = [w_ref[k] for k in range(n_taps)]
    scale = scale_ref[...]
    shift = shift_ref[...]
    fcw = fcw_ref[...]
    fcb = fcb_ref[...]
    for t in range(tile_b):
        y = _conv_sample(x_ref[t], w_taps, n_out)
        y = jnp.maximum(y * scale + shift, 0.0)
        pooled = jnp.sum(y, axis=0, keepdims=True) * inv_l          # [1, C_out] f32
        o_ref[t:t + 1, :] = (jnp.dot(pooled, fcw,
                                     preferred_element_type=jnp.float32) + fcb)


def conv_bn_relu_pool_fc(x, w_taps, scale, shift, fcw, fcb, *, n_out, tile_b):
    b_pad, l_pad, c = x.shape
    n_taps, _, c_out = w_taps.shape
    feat = fcw.shape[1]
    grid_b = b_pad // tile_b
    flops = 2 * b_pad * n_out * n_taps * c * c_out + 2 * b_pad * c_out * feat
    bytes_acc = (x.size * x.dtype.itemsize + w_taps.size * w_taps.dtype.itemsize
                 + fcw.size * 4 + b_pad * feat * 4)
    kernel = functools.partial(_conv_bn_relu_pool_fc_kernel, n_taps=n_taps,
                               n_out=n_out, tile_b=tile_b, inv_l=1.0 / n_out)
    return pl.pallas_call(
        kernel,
        out_shape=jax.ShapeDtypeStruct((b_pad, feat), jnp.float32),
        grid=(grid_b,),
        in_specs=[
            pl.BlockSpec((tile_b, l_pad, c), lambda i: (i, 0, 0)),
            pl.BlockSpec((n_taps, c, c_out), lambda i: (0, 0, 0)),
            pl.BlockSpec((1, c_out), lambda i: (0, 0)),
            pl.BlockSpec((1, c_out), lambda i: (0, 0)),
            pl.BlockSpec((c_out, feat), lambda i: (0, 0)),
            pl.BlockSpec((1, feat), lambda i: (0, 0)),
        ],
        out_specs=pl.BlockSpec((tile_b, feat), lambda i: (i, 0)),
        compiler_params=pltpu.CompilerParams(
            dimension_semantics=("parallel",),
            vmem_limit_bytes=VMEM_LIMIT),
        cost_estimate=pl.CostEstimate(flops=int(flops), transcendentals=0,
                                      bytes_accessed=int(bytes_acc)),
    )(x, w_taps, scale, shift, fcw, fcb)


# ----------------------------------------------------------------------------
# Host-side glue: BN scale/shift, weight re-layouts, layer plumbing.
# ----------------------------------------------------------------------------
def _bn_scale_shift(s, q, gamma, beta, count):
    mean = s / count
    # Biased variance (PyTorch training-mode forward).  max() guards tiny
    # negatives produced by the one-pass E[y^2]-E[y]^2 form.
    # TODO(synk): shifted two-pass accumulation if tolerances tighten at
    #             much larger batch*length.
    var = jnp.maximum(q / count - mean * mean, 0.0)
    scale = gamma * lax.rsqrt(var + EPS)
    shift = beta - mean * scale
    return scale, shift


def _stride1_weight_taps(w):
    # PyTorch [C_out, C_in, 3] -> [3, C_in, C_out]; tap k weight = w[:, :, k].T
    return jnp.transpose(w, (2, 1, 0)).astype(jnp.bfloat16)


def _stride2_weight_taps(w):
    # stride-2 / padding-1 / kernel-3 conv == 2-tap stride-1 conv over
    # "position pairs" (channels doubled):  y[j] = p[j] @ [W0;W1] + p[j+1] @ [W2;0]
    c_out, c_in, _ = w.shape
    w0, w1, w2 = (jnp.transpose(w[:, :, k]) for k in range(3))
    tap0 = jnp.concatenate([w0, w1], axis=0)                      # [2*C_in, C_out]
    tap1 = jnp.concatenate([w2, jnp.zeros_like(w2)], axis=0)
    return jnp.stack([tap0, tap1], axis=0).astype(jnp.bfloat16)   # [2, 2*C_in, C_out]


def simclr_ts_forward(params, x):
    """x: [B, C_in, L] (PyTorch NCL) -> [B, feature_dim]."""
    b, c_in, l = x.shape
    if l < 4 or l % 4 != 0:
        # TODO(synk): support L not divisible by 4 (pair-packing needs even
        #             lengths at conv2 / conv3).
        raise ValueError("simclr_ts_forward requires L % 4 == 0")

    tile_b = b if b <= 8 else 8          # keeps every (tile_b, *) block legal
    b_pad = _round_up(b, tile_b)
    l1, l2, l3 = l, l // 2, l // 4

    # Channels-last activations with the conv halo baked into the L axis.
    h = jnp.transpose(x, (0, 2, 1)).astype(jnp.bfloat16)
    h = jnp.pad(h, ((0, b_pad - b), (1, 1), (0, 0)))              # [B_pad, L+2, C_in]

    # ---- conv1 (stride 1): 3 unit-stride taps -------------------------------
    p1 = params["conv1"]
    w1 = _stride1_weight_taps(p1["w"])                            # [3, C_in, 64]
    s, q = conv_stats(h, w1, n_out=l1, tile_b=tile_b)
    scale, shift = _bn_scale_shift(s, q, p1["gamma"][None, :], p1["beta"][None, :],
                                   float(b * l1))
    h = conv_bn_relu(h, w1, scale, shift, n_out=l1, tile_b=tile_b, b_valid=b)

    # ---- conv2 (stride 2): 2 taps over position pairs -----------------------
    h = h.reshape(b_pad, (l1 + 2) // 2, 2 * 64)    # free row-major re-view
    p2 = params["conv2"]
    w2 = _stride2_weight_taps(p2["w"])                            # [2, 128, 128]
    s, q = conv_stats(h, w2, n_out=l2, tile_b=tile_b)
    scale, shift = _bn_scale_shift(s, q, p2["gamma"][None, :], p2["beta"][None, :],
                                   float(b * l2))
    h = conv_bn_relu(h, w2, scale, shift, n_out=l2, tile_b=tile_b, b_valid=b)

    # ---- conv3 (stride 2) + BN + ReLU + global avg pool + FC, fused ---------
    h = h.reshape(b_pad, (l2 + 2) // 2, 2 * 128)
    p3 = params["conv3"]
    w3 = _stride2_weight_taps(p3["w"])                            # [2, 256, 256]
    s, q = conv_stats(h, w3, n_out=l3, tile_b=tile_b)
    scale, shift = _bn_scale_shift(s, q, p3["gamma"][None, :], p3["beta"][None, :],
                                   float(b * l3))
    fcw = jnp.transpose(params["fc_w"]).astype(jnp.float32)       # [256, feat]
    fcb = params["fc_b"][None, :].astype(jnp.float32)             # [1, feat]
    out = conv_bn_relu_pool_fc(h, w3, scale, shift, fcw, fcb,
                               n_out=l3, tile_b=tile_b)
    return out[:b]


# ----------------------------------------------------------------------------
# Parameters + pure-JAX f32 reference (PyTorch train-mode semantics).
# ----------------------------------------------------------------------------
def init_params(key, input_channels, feature_dim):
    ks = jax.random.split(key, 5)

    def conv_p(k, cin, cout):
        kw, kb = jax.random.split(k)
        w = jax.random.normal(kw, (cout, cin, 3), jnp.float32) * (1.0 / (cin * 3) ** 0.5)
        b = jax.random.normal(kb, (cout,), jnp.float32) * 0.01
        return dict(w=w, b=b,   # conv bias unused in kernels (cancels under BN)
                    gamma=jnp.ones((cout,), jnp.float32),
                    beta=jnp.zeros((cout,), jnp.float32))

    return dict(
        conv1=conv_p(ks[0], input_channels, 64),
        conv2=conv_p(ks[1], 64, 128),
        conv3=conv_p(ks[2], 128, 256),
        fc_w=jax.random.normal(ks[3], (feature_dim, 256), jnp.float32) * (1.0 / 256 ** 0.5),
        fc_b=jax.random.normal(ks[4], (feature_dim,), jnp.float32) * 0.01,
    )


def reference_forward(params, x):
    h = x
    for name, stride in (("conv1", 1), ("conv2", 2), ("conv3", 2)):
        p = params[name]
        y = lax.conv_general_dilated(h, p["w"], (stride,), [(1, 1)],
                                     dimension_numbers=("NCH", "OIH", "NCH"))
        y = y + p["b"][None, :, None]
        mean = jnp.mean(y, axis=(0, 2), keepdims=True)
        var = jnp.mean((y - mean) ** 2, axis=(0, 2), keepdims=True)
        y = (y - mean) * lax.rsqrt(var + EPS)
        y = p["gamma"][None, :, None] * y + p["beta"][None, :, None]
        h = jnp.maximum(y, 0.0)
    pooled = jnp.mean(h, axis=2)
    return pooled @ params["fc_w"].T + params["fc_b"]


# ----------------------------------------------------------------------------
if __name__ == "__main__":
    key = jax.random.PRNGKey(0)
    k_param, k_x = jax.random.split(key)

    B, C_IN, L, FEAT = 2, 4, 16, 32
    params = init_params(k_param, C_IN, FEAT)
    x = jax.random.normal(k_x, (B, C_IN, L), jnp.float32)

    fwd = jax.jit(simclr_ts_forward)
    out = jax.block_until_ready(fwd(params, x))

    ref = jax.block_until_ready(reference_forward(params, x))
    assert out.shape == (B, FEAT), out.shape
    err = float(jnp.max(jnp.abs(out - ref)))
    # bf16 MXU operands + bf16 intermediate activations vs. an f32 reference.
    assert jnp.allclose(out, ref, atol=5e-2, rtol=5e-2), f"max abs err {err}"
    print("KERNEL_OK")
</pallas_src>

<mosaic_0001>
module attributes {stable_mosaic.version = 11 : i64} {
  func.func @_conv_bn_relu_kernel(%arg0: i32, %arg1: memref<2x18x4xbf16, #tpu.memory_space<vmem>>, %arg2: memref<3x4x64xbf16, #tpu.memory_space<vmem>>, %arg3: memref<1x64xf32, #tpu.memory_space<vmem>>, %arg4: memref<1x64xf32, #tpu.memory_space<vmem>>, %arg5: memref<2x18x64xbf16, #tpu.memory_space<vmem>>) attributes {dimension_semantics = [#tpu.dimension_semantics<parallel>], iteration_bounds = array<i64: 1>, scalar_prefetch = 0 : i64, scratch_operands = 0 : i64, tpu.core_type = #tpu.core_type<tc>, window_params = [{transform_indices = @transform_0, window_bounds = array<i64: 2, 18, 4>}, {pipeline_mode = #tpu.pipeline_mode<synchronous>, transform_indices = @transform_1, window_bounds = array<i64: 3, 4, 64>}, {pipeline_mode = #tpu.pipeline_mode<synchronous>, transform_indices = @transform_2, window_bounds = array<i64: 1, 64>}, {pipeline_mode = #tpu.pipeline_mode<synchronous>, transform_indices = @transform_3, window_bounds = array<i64: 1, 64>}, {transform_indices = @transform_4, window_bounds = array<i64: 2, 18, 64>}]} {
    %cst = arith.constant 0.000000e+00 : bf16
    %0 = vector.broadcast %cst : bf16 to vector<2x18x64xbf16>
    %c0 = arith.constant 0 : index
    %c0_0 = arith.constant 0 : index
    %c0_1 = arith.constant 0 : index
    %1 = vector.load %arg5[%c0, %c0_0, %c0_1] : memref<2x18x64xbf16, #tpu.memory_space<vmem>>, vector<2x18x64xbf16>
    tpu.vector_store %arg5[%c0, %c0_0, %c0_1], %0 {strides = array<i32>} : memref<2x18x64xbf16, #tpu.memory_space<vmem>>, vector<2x18x64xbf16>,
    %c0_2 = arith.constant 0 : index
    %c0_3 = arith.constant 0 : index
    %c0_4 = arith.constant 0 : index
    %2 = vector.load %arg2[%c0_2, %c0_3, %c0_4] : memref<3x4x64xbf16, #tpu.memory_space<vmem>>, vector<1x4x64xbf16>
    %3 = vector.shape_cast %2 : vector<1x4x64xbf16> to vector<4x64xbf16>
    %c1 = arith.constant 1 : index
    %c0_5 = arith.constant 0 : index
    %c0_6 = arith.constant 0 : index
    %4 = vector.load %arg2[%c1, %c0_5, %c0_6] : memref<3x4x64xbf16, #tpu.memory_space<vmem>>, vector<1x4x64xbf16>
    %5 = vector.shape_cast %4 : vector<1x4x64xbf16> to vector<4x64xbf16>
    %c2 = arith.constant 2 : index
    %c0_7 = arith.constant 0 : index
    %c0_8 = arith.constant 0 : index
    %6 = vector.load %arg2[%c2, %c0_7, %c0_8] : memref<3x4x64xbf16, #tpu.memory_space<vmem>>, vector<1x4x64xbf16>
    %7 = vector.shape_cast %6 : vector<1x4x64xbf16> to vector<4x64xbf16>
    %c0_9 = arith.constant 0 : index
    %c0_10 = arith.constant 0 : index
    %8 = vector.load %arg3[%c0_9, %c0_10] : memref<1x64xf32, #tpu.memory_space<vmem>>, vector<1x64xf32>
    %c0_11 = arith.constant 0 : index
    %c0_12 = arith.constant 0 : index
    %9 = vector.load %arg4[%c0_11, %c0_12] : memref<1x64xf32, #tpu.memory_space<vmem>>, vector<1x64xf32>
    %c0_13 = arith.constant 0 : index
    %c0_14 = arith.constant 0 : index
    %c0_15 = arith.constant 0 : index
    %10 = vector.load %arg1[%c0_13, %c0_14, %c0_15] : memref<2x18x4xbf16, #tpu.memory_space<vmem>>, vector<1x18x4xbf16>
    %11 = vector.shape_cast %10 : vector<1x18x4xbf16> to vector<18x4xbf16>
    %12 = vector.extract_strided_slice %11 {offsets = [0, 0], sizes = [16, 4], strides = [1, 1]} : vector<18x4xbf16> to vector<16x4xbf16>
    %cst_16 = arith.constant dense<0.000000e+00> : vector<16x64xf32>
    %13 = tpu.matmul %12, %3, %cst_16 {dimension_numbers = #tpu.dot_dimension_numbers<[1], [0], [0], [1], [0, 0, 1, 1], [], []>} : vector<16x4xbf16>, vector<4x64xbf16>, vector<16x64xf32> -> vector<16x64xf32>
    %14 = vector.extract_strided_slice %11 {offsets = [1, 0], sizes = [16, 4], strides = [1, 1]} : vector<18x4xbf16> to vector<16x4xbf16>
    %cst_17 = arith.constant dense<0.000000e+00> : vector<16x64xf32>
    %15 = tpu.matmul %14, %5, %cst_17 {dimension_numbers = #tpu.dot_dimension_numbers<[1], [0], [0], [1], [0, 0, 1, 1], [], []>} : vector<16x4xbf16>, vector<4x64xbf16>, vector<16x64xf32> -> vector<16x64xf32>
    %16 = arith.addf %13, %15 : vector<16x64xf32>
    %17 = vector.extract_strided_slice %11 {offsets = [2, 0], sizes = [16, 4], strides = [1, 1]} : vector<18x4xbf16> to vector<16x4xbf16>
    %cst_18 = arith.constant dense<0.000000e+00> : vector<16x64xf32>
    %18 = tpu.matmul %17, %7, %cst_18 {dimension_numbers = #tpu.dot_dimension_numbers<[1], [0], [0], [1], [0, 0, 1, 1], [], []>} : vector<16x4xbf16>, vector<4x64xbf16>, vector<16x64xf32> -> vector<16x64xf32>
    %19 = arith.addf %16, %18 : vector<16x64xf32>
    %20 = vector.broadcast %8 : vector<1x64xf32> to vector<16x64xf32>
    %21 = arith.mulf %19, %20 : vector<16x64xf32>
    %22 = vector.broadcast %9 : vector<1x64xf32> to vector<16x64xf32>
    %23 = arith.addf %21, %22 : vector<16x64xf32>
    %cst_19 = arith.constant 0.000000e+00 : f32
    %24 = vector.broadcast %cst_19 : f32 to vector<16x64xf32>
    %25 = arith.maximumf %23, %24 : vector<16x64xf32>
    %26 = arith.truncf %25 : vector<16x64xf32> to vector<16x64xbf16>
    %c0_20 = arith.constant 0 : index
    %c1_21 = arith.constant 1 : index
    %c0_22 = arith.constant 0 : index
    %27 = vector.load %arg5[%c0_20, %c1_21, %c0_22] : memref<2x18x64xbf16, #tpu.memory_space<vmem>>, vector<1x16x64xbf16>
    %28 = vector.shape_cast %27 : vector<1x16x64xbf16> to vector<16x64xbf16>
    %29 = vector.shape_cast %26 : vector<16x64xbf16> to vector<1x16x64xbf16>
    tpu.vector_store %arg5[%c0_20, %c1_21, %c0_22], %29 {strides = array<i32>} : memref<2x18x64xbf16, #tpu.memory_space<vmem>>, vector<1x16x64xbf16>,
    %c1_23 = arith.constant 1 : index
    %c0_24 = arith.constant 0 : index
    %c0_25 = arith.constant 0 : index
    %30 = vector.load %arg1[%c1_23, %c0_24, %c0_25] : memref<2x18x4xbf16, #tpu.memory_space<vmem>>, vector<1x18x4xbf16>
    %31 = vector.shape_cast %30 : vector<1x18x4xbf16> to vector<18x4xbf16>
    %32 = vector.extract_strided_slice %31 {offsets = [0, 0], sizes = [16, 4], strides = [1, 1]} : vector<18x4xbf16> to vector<16x4xbf16>
    %cst_26 = arith.constant dense<0.000000e+00> : vector<16x64xf32>
    %33 = tpu.matmul %32, %3, %cst_26 {dimension_numbers = #tpu.dot_dimension_numbers<[1], [0], [0], [1], [0, 0, 1, 1], [], []>} : vector<16x4xbf16>, vector<4x64xbf16>, vector<16x64xf32> -> vector<16x64xf32>
    %34 = vector.extract_strided_slice %31 {offsets = [1, 0], sizes = [16, 4], strides = [1, 1]} : vector<18x4xbf16> to vector<16x4xbf16>
    %cst_27 = arith.constant dense<0.000000e+00> : vector<16x64xf32>
    %35 = tpu.matmul %34, %5, %cst_27 {dimension_numbers = #tpu.dot_dimension_numbers<[1], [0], [0], [1], [0, 0, 1, 1], [], []>} : vector<16x4xbf16>, vector<4x64xbf16>, vector<16x64xf32> -> vector<16x64xf32>
    %36 = arith.addf %33, %35 : vector<16x64xf32>
    %37 = vector.extract_strided_slice %31 {offsets = [2, 0], sizes = [16, 4], strides = [1, 1]} : vector<18x4xbf16> to vector<16x4xbf16>
    %cst_28 = arith.constant dense<0.000000e+00> : vector<16x64xf32>
    %38 = tpu.matmul %37, %7, %cst_28 {dimension_numbers = #tpu.dot_dimension_numbers<[1], [0], [0], [1], [0, 0, 1, 1], [], []>} : vector<16x4xbf16>, vector<4x64xbf16>, vector<16x64xf32> -> vector<16x64xf32>
    %39 = arith.addf %36, %38 : vector<16x64xf32>
    %40 = vector.broadcast %8 : vector<1x64xf32> to vector<16x64xf32>
    %41 = arith.mulf %39, %40 : vector<16x64xf32>
    %42 = vector.broadcast %9 : vector<1x64xf32> to vector<16x64xf32>
    %43 = arith.addf %41, %42 : vector<16x64xf32>
    %cst_29 = arith.constant 0.000000e+00 : f32
    %44 = vector.broadcast %cst_29 : f32 to vector<16x64xf32>
    %45 = arith.maximumf %43, %44 : vector<16x64xf32>
    %46 = arith.truncf %45 : vector<16x64xf32> to vector<16x64xbf16>
    %c1_30 = arith.constant 1 : index
    %c1_31 = arith.constant 1 : index
    %c0_32 = arith.constant 0 : index
    %47 = vector.load %arg5[%c1_30, %c1_31, %c0_32] : memref<2x18x64xbf16, #tpu.memory_space<vmem>>, vector<1x16x64xbf16>
    %48 = vector.shape_cast %47 : vector<1x16x64xbf16> to vector<16x64xbf16>
    %49 = vector.shape_cast %46 : vector<16x64xbf16> to vector<1x16x64xbf16>
    tpu.vector_store %arg5[%c1_30, %c1_31, %c0_32], %49 {strides = array<i32>} : memref<2x18x64xbf16, #tpu.memory_space<vmem>>, vector<1x16x64xbf16>,
    return
  }
  func.func @transform_0(%arg0: i32) -> (i32, i32, i32) {
    %c0_i32 = arith.constant 0 : i32
    %c0_i32_0 = arith.constant 0 : i32
    %c0_i32_1 = arith.constant 0 : i32
    return %arg0, %c0_i32, %c0_i32_0 : i32, i32, i32
  }
  func.func @transform_1(%arg0: i32) -> (i32, i32, i32) {
    %c0_i32 = arith.constant 0 : i32
    %c0_i32_0 = arith.constant 0 : i32
    %c0_i32_1 = arith.constant 0 : i32
    %c0_i32_2 = arith.constant 0 : i32
    return %c0_i32, %c0_i32_0, %c0_i32_1 : i32, i32, i32
  }
  func.func @transform_2(%arg0: i32) -> (i32, i32) {
    %c0_i32 = arith.constant 0 : i32
    %c0_i32_0 = arith.constant 0 : i32
    %c0_i32_1 = arith.constant 0 : i32
    return %c0_i32, %c0_i32_0 : i32, i32
  }
  func.func @transform_3(%arg0: i32) -> (i32, i32) {
    %c0_i32 = arith.constant 0 : i32
    %c0_i32_0 = arith.constant 0 : i32
    %c0_i32_1 = arith.constant 0 : i32
    return %c0_i32, %c0_i32_0 : i32, i32
  }
  func.func @transform_4(%arg0: i32) -> (i32, i32, i32) {
    %c0_i32 = arith.constant 0 : i32
    %c0_i32_0 = arith.constant 0 : i32
    %c0_i32_1 = arith.constant 0 : i32
    return %arg0, %c0_i32, %c0_i32_0 : i32, i32, i32
  }
}

module attributes {stable_mosaic.version = 11 : i64} {
  func.func @_conv_stats_kernel(%arg0: i32, %arg1: memref<2x18x4xbf16, #tpu.memory_space<vmem>>, %arg2: memref<3x4x64xbf16, #tpu.memory_space<vmem>>, %arg3: memref<1x64xf32, #tpu.memory_space<vmem>>, %arg4: memref<1x64xf32, #tpu.memory_space<vmem>>) attributes {dimension_semantics = [#tpu.dimension_semantics<arbitrary>], iteration_bounds = array<i64: 1>, scalar_prefetch = 0 : i64, scratch_operands = 0 : i64, tpu.core_type = #tpu.core_type<tc>, window_params = [{transform_indices = @transform_0, window_bounds = array<i64: 2, 18, 4>}, {pipeline_mode = #tpu.pipeline_mode<synchronous>, transform_indices = @transform_1, window_bounds = array<i64: 3, 4, 64>}, {pipeline_mode = #tpu.pipeline_mode<synchronous>, transform_indices = @transform_2, window_bounds = array<i64: 1, 64>}, {pipeline_mode = #tpu.pipeline_mode<synchronous>, transform_indices = @transform_3, window_bounds = array<i64: 1, 64>}]} {
    %c0_i32 = arith.constant 0 : i32
    %0 = arith.cmpi eq, %arg0, %c0_i32 : i32
    %1 = arith.extui %0 : i1 to i32
    %c0_i32_0 = arith.constant 0 : i32
    %2 = arith.cmpi ne, %1, %c0_i32_0 : i32
    scf.if %2 {
      %cst_32 = arith.constant 0.000000e+00 : f32
      %51 = vector.broadcast %cst_32 : f32 to vector<1x64xf32>
      %c0_33 = arith.constant 0 : index
      %c0_34 = arith.constant 0 : index
      %52 = vector.load %arg3[%c0_33, %c0_34] : memref<1x64xf32, #tpu.memory_space<vmem>>, vector<1x64xf32>
      tpu.vector_store %arg3[%c0_33, %c0_34], %51 {strides = array<i32>} : memref<1x64xf32, #tpu.memory_space<vmem>>, vector<1x64xf32>,
      %cst_35 = arith.constant 0.000000e+00 : f32
      %53 = vector.broadcast %cst_35 : f32 to vector<1x64xf32>
      %c0_36 = arith.constant 0 : index
      %c0_37 = arith.constant 0 : index
      %54 = vector.load %arg4[%c0_36, %c0_37] : memref<1x64xf32, #tpu.memory_space<vmem>>, vector<1x64xf32>
      tpu.vector_store %arg4[%c0_36, %c0_37], %53 {strides = array<i32>} : memref<1x64xf32, #tpu.memory_space<vmem>>, vector<1x64xf32>,
    } else {
    }
    %c0 = arith.constant 0 : index
    %c0_1 = arith.constant 0 : index
    %c0_2 = arith.constant 0 : index
    %3 = vector.load %arg2[%c0, %c0_1, %c0_2] : memref<3x4x64xbf16, #tpu.memory_space<vmem>>, vector<1x4x64xbf16>
    %4 = vector.shape_cast %3 : vector<1x4x64xbf16> to vector<4x64xbf16>
    %c1 = arith.constant 1 : index
    %c0_3 = arith.constant 0 : index
    %c0_4 = arith.constant 0 : index
    %5 = vector.load %arg2[%c1, %c0_3, %c0_4] : memref<3x4x64xbf16, #tpu.memory_space<vmem>>, vector<1x4x64xbf16>
    %6 = vector.shape_cast %5 : vector<1x4x64xbf16> to vector<4x64xbf16>
    %c2 = arith.constant 2 : index
    %c0_5 = arith.constant 0 : index
    %c0_6 = arith.constant 0 : index
    %7 = vector.load %arg2[%c2, %c0_5, %c0_6] : memref<3x4x64xbf16, #tpu.memory_space<vmem>>, vector<1x4x64xbf16>
    %8 = vector.shape_cast %7 : vector<1x4x64xbf16> to vector<4x64xbf16>
    %cst = arith.constant 0.000000e+00 : f32
    %9 = vector.broadcast %cst : f32 to vector<1x64xf32>
    %cst_7 = arith.constant 0.000000e+00 : f32
    %10 = vector.broadcast %cst_7 : f32 to vector<1x64xf32>
    %c0_8 = arith.constant 0 : index
    %c0_9 = arith.constant 0 : index
    %c0_10 = arith.constant 0 : index
    %11 = vector.load %arg1[%c0_8, %c0_9, %c0_10] : memref<2x18x4xbf16, #tpu.memory_space<vmem>>, vector<1x18x4xbf16>
    %12 = vector.shape_cast %11 : vector<1x18x4xbf16> to vector<18x4xbf16>
    %13 = vector.extract_strided_slice %12 {offsets = [0, 0], sizes = [16, 4], strides = [1, 1]} : vector<18x4xbf16> to vector<16x4xbf16>
    %cst_11 = arith.constant dense<0.000000e+00> : vector<16x64xf32>
    %14 = tpu.matmul %13, %4, %cst_11 {dimension_numbers = #tpu.dot_dimension_numbers<[1], [0], [0], [1], [0, 0, 1, 1], [], []>} : vector<16x4xbf16>, vector<4x64xbf16>, vector<16x64xf32> -> vector<16x64xf32>
    %15 = vector.extract_strided_slice %12 {offsets = [1, 0], sizes = [16, 4], strides = [1, 1]} : vector<18x4xbf16> to vector<16x4xbf16>
    %cst_12 = arith.constant dense<0.000000e+00> : vector<16x64xf32>
    %16 = tpu.matmul %15, %6, %cst_12 {dimension_numbers = #tpu.dot_dimension_numbers<[1], [0], [0], [1], [0, 0, 1, 1], [], []>} : vector<16x4xbf16>, vector<4x64xbf16>, vector<16x64xf32> -> vector<16x64xf32>
    %17 = arith.addf %14, %16 : vector<16x64xf32>
    %18 = vector.extract_strided_slice %12 {offsets = [2, 0], sizes = [16, 4], strides = [1, 1]} : vector<18x4xbf16> to vector<16x4xbf16>
    %cst_13 = arith.constant dense<0.000000e+00> : vector<16x64xf32>
    %19 = tpu.matmul %18, %8, %cst_13 {dimension_numbers = #tpu.dot_dimension_numbers<[1], [0], [0], [1], [0, 0, 1, 1], [], []>} : vector<16x4xbf16>, vector<4x64xbf16>, vector<16x64xf32> -> vector<16x64xf32>
    %20 = arith.addf %17, %19 : vector<16x64xf32>
    %cst_14 = arith.constant dense<0.000000e+00> : vector<64xf32>
    %21 = vector.multi_reduction <add>, %20, %cst_14 [0] : vector<16x64xf32> to vector<64xf32>
    %22 = vector.shape_cast %21 : vector<64xf32> to vector<1x64xf32>
    %23 = arith.addf %9, %22 : vector<1x64xf32>
    %24 = arith.mulf %20, %20 : vector<16x64xf32>
    %cst_15 = arith.constant dense<0.000000e+00> : vector<64xf32>
    %25 = vector.multi_reduction <add>, %24, %cst_15 [0] : vector<16x64xf32> to vector<64xf32>
    %26 = vector.shape_cast %25 : vector<64xf32> to vector<1x64xf32>
    %27 = arith.addf %10, %26 : vector<1x64xf32>
    %c1_16 = arith.constant 1 : index
    %c0_17 = arith.constant 0 : index
    %c0_18 = arith.constant 0 : index
    %28 = vector.load %arg1[%c1_16, %c0_17, %c0_18] : memref<2x18x4xbf16, #tpu.memory_space<vmem>>, vector<1x18x4xbf16>
    %29 = vector.shape_cast %28 : vector<1x18x4xbf16> to vector<18x4xbf16>
    %30 = vector.extract_strided_slice %29 {offsets = [0, 0], sizes = [16, 4], strides = [1, 1]} : vector<18x4xbf16> to vector<16x4xbf16>
    %cst_19 = arith.constant dense<0.000000e+00> : vector<16x64xf32>
    %31 = tpu.matmul %30, %4, %cst_19 {dimension_numbers = #tpu.dot_dimension_numbers<[1], [0], [0], [1], [0, 0, 1, 1], [], []>} : vector<16x4xbf16>, vector<4x64xbf16>, vector<16x64xf32> -> vector<16x64xf32>
    %32 = vector.extract_strided_slice %29 {offsets = [1, 0], sizes = [16, 4], strides = [1, 1]} : vector<18x4xbf16> to vector<16x4xbf16>
    %cst_20 = arith.constant dense<0.000000e+00> : vector<16x64xf32>
    %33 = tpu.matmul %32, %6, %cst_20 {dimension_numbers = #tpu.dot_dimension_numbers<[1], [0], [0], [1], [0, 0, 1, 1], [], []>} : vector<16x4xbf16>, vector<4x64xbf16>, vector<16x64xf32> -> vector<16x64xf32>
    %34 = arith.addf %31, %33 : vector<16x64xf32>
    %35 = vector.extract_strided_slice %29 {offsets = [2, 0], sizes = [16, 4], strides = [1, 1]} : vector<18x4xbf16> to vector<16x4xbf16>
    %cst_21 = arith.constant dense<0.000000e+00> : vector<16x64xf32>
    %36 = tpu.matmul %35, %8, %cst_21 {dimension_numbers = #tpu.dot_dimension_numbers<[1], [0], [0], [1], [0, 0, 1, 1], [], []>} : vector<16x4xbf16>, vector<4x64xbf16>, vector<16x64xf32> -> vector<16x64xf32>
    %37 = arith.addf %34, %36 : vector<16x64xf32>
    %cst_22 = arith.constant dense<0.000000e+00> : vector<64xf32>
    %38 = vector.multi_reduction <add>, %37, %cst_22 [0] : vector<16x64xf32> to vector<64xf32>
    %39 = vector.shape_cast %38 : vector<64xf32> to vector<1x64xf32>
    %40 = arith.addf %23, %39 : vector<1x64xf32>
    %41 = arith.mulf %37, %37 : vector<16x64xf32>
    %cst_23 = arith.constant dense<0.000000e+00> : vector<64xf32>
    %42 = vector.multi_reduction <add>, %41, %cst_23 [0] : vector<16x64xf32> to vector<64xf32>
    %43 = vector.shape_cast %42 : vector<64xf32> to vector<1x64xf32>
    %44 = arith.addf %27, %43 : vector<1x64xf32>
    %c0_24 = arith.constant 0 : index
    %c0_25 = arith.constant 0 : index
    %45 = vector.load %arg3[%c0_24, %c0_25] : memref<1x64xf32, #tpu.memory_space<vmem>>, vector<1x64xf32>
    %46 = arith.addf %45, %40 : vector<1x64xf32>
    %c0_26 = arith.constant 0 : index
    %c0_27 = arith.constant 0 : index
    %47 = vector.load %arg3[%c0_26, %c0_27] : memref<1x64xf32, #tpu.memory_space<vmem>>, vector<1x64xf32>
    tpu.vector_store %arg3[%c0_26, %c0_27], %46 {strides = array<i32>} : memref<1x64xf32, #tpu.memory_space<vmem>>, vector<1x64xf32>,
    %c0_28 = arith.constant 0 : index
    %c0_29 = arith.constant 0 : index
    %48 = vector.load %arg4[%c0_28, %c0_29] : memref<1x64xf32, #tpu.memory_space<vmem>>, vector<1x64xf32>
    %49 = arith.addf %48, %44 : vector<1x64xf32>
    %c0_30 = arith.constant 0 : index
    %c0_31 = arith.constant 0 : index
    %50 = vector.load %arg4[%c0_30, %c0_31] : memref<1x64xf32, #tpu.memory_space<vmem>>, vector<1x64xf32>
    tpu.vector_store %arg4[%c0_30, %c0_31], %49 {strides = array<i32>} : memref<1x64xf32, #tpu.memory_space<vmem>>, vector<1x64xf32>,
    return
  }
  func.func @transform_0(%arg0: i32) -> (i32, i32, i32) {
    %c0_i32 = arith.constant 0 : i32
    %c0_i32_0 = arith.constant 0 : i32
    %c0_i32_1 = arith.constant 0 : i32
    return %arg0, %c0_i32, %c0_i32_0 : i32, i32, i32
  }
  func.func @transform_1(%arg0: i32) -> (i32, i32, i32) {
    %c0_i32 = arith.constant 0 : i32
    %c0_i32_0 = arith.constant 0 : i32
    %c0_i32_1 = arith.constant 0 : i32
    %c0_i32_2 = arith.constant 0 : i32
    return %c0_i32, %c0_i32_0, %c0_i32_1 : i32, i32, i32
  }
  func.func @transform_2(%arg0: i32) -> (i32, i32) {
    %c0_i32 = arith.constant 0 : i32
    %c0_i32_0 = arith.constant 0 : i32
    %c0_i32_1 = arith.constant 0 : i32
    return %c0_i32, %c0_i32_0 : i32, i32
  }
  func.func @transform_3(%arg0: i32) -> (i32, i32) {
    %c0_i32 = arith.constant 0 : i32
    %c0_i32_0 = arith.constant 0 : i32
    %c0_i32_1 = arith.constant 0 : i32
    return %c0_i32, %c0_i32_0 : i32, i32
  }
}

module attributes {stable_mosaic.version = 11 : i64} {
  func.func @_conv_stats_kernel(%arg0: i32, %arg1: memref<2x9x128xbf16, #tpu.memory_space<vmem>>, %arg2: memref<2x128x128xbf16, #tpu.memory_space<vmem>>, %arg3: memref<1x128xf32, #tpu.memory_space<vmem>>, %arg4: memref<1x128xf32, #tpu.memory_space<vmem>>) attributes {dimension_semantics = [#tpu.dimension_semantics<arbitrary>], iteration_bounds = array<i64: 1>, scalar_prefetch = 0 : i64, scratch_operands = 0 : i64, tpu.core_type = #tpu.core_type<tc>, window_params = [{transform_indices = @transform_0, window_bounds = array<i64: 2, 9, 128>}, {pipeline_mode = #tpu.pipeline_mode<synchronous>, transform_indices = @transform_1, window_bounds = array<i64: 2, 128, 128>}, {pipeline_mode = #tpu.pipeline_mode<synchronous>, transform_indices = @transform_2, window_bounds = array<i64: 1, 128>}, {pipeline_mode = #tpu.pipeline_mode<synchronous>, transform_indices = @transform_3, window_bounds = array<i64: 1, 128>}]} {
    %c0_i32 = arith.constant 0 : i32
    %0 = arith.cmpi eq, %arg0, %c0_i32 : i32
    %1 = arith.extui %0 : i1 to i32
    %c0_i32_0 = arith.constant 0 : i32
    %2 = arith.cmpi ne, %1, %c0_i32_0 : i32
    scf.if %2 {
      %cst_28 = arith.constant 0.000000e+00 : f32
      %43 = vector.broadcast %cst_28 : f32 to vector<1x128xf32>
      %c0_29 = arith.constant 0 : index
      %c0_30 = arith.constant 0 : index
      %44 = vector.load %arg3[%c0_29, %c0_30] : memref<1x128xf32, #tpu.memory_space<vmem>>, vector<1x128xf32>
      tpu.vector_store %arg3[%c0_29, %c0_30], %43 {strides = array<i32>} : memref<1x128xf32, #tpu.memory_space<vmem>>, vector<1x128xf32>,
      %cst_31 = arith.constant 0.000000e+00 : f32
      %45 = vector.broadcast %cst_31 : f32 to vector<1x128xf32>
      %c0_32 = arith.constant 0 : index
      %c0_33 = arith.constant 0 : index
      %46 = vector.load %arg4[%c0_32, %c0_33] : memref<1x128xf32, #tpu.memory_space<vmem>>, vector<1x128xf32>
      tpu.vector_store %arg4[%c0_32, %c0_33], %45 {strides = array<i32>} : memref<1x128xf32, #tpu.memory_space<vmem>>, vector<1x128xf32>,
    } else {
    }
    %c0 = arith.constant 0 : index
    %c0_1 = arith.constant 0 : index
    %c0_2 = arith.constant 0 : index
    %3 = vector.load %arg2[%c0, %c0_1, %c0_2] : memref<2x128x128xbf16, #tpu.memory_space<vmem>>, vector<1x128x128xbf16>
    %4 = vector.shape_cast %3 : vector<1x128x128xbf16> to vector<128x128xbf16>
    %c1 = arith.constant 1 : index
    %c0_3 = arith.constant 0 : index
    %c0_4 = arith.constant 0 : index
    %5 = vector.load %arg2[%c1, %c0_3, %c0_4] : memref<2x128x128xbf16, #tpu.memory_space<vmem>>, vector<1x128x128xbf16>
    %6 = vector.shape_cast %5 : vector<1x128x128xbf16> to vector<128x128xbf16>
    %cst = arith.constant 0.000000e+00 : f32
    %7 = vector.broadcast %cst : f32 to vector<1x128xf32>
    %cst_5 = arith.constant 0.000000e+00 : f32
    %8 = vector.broadcast %cst_5 : f32 to vector<1x128xf32>
    %c0_6 = arith.constant 0 : index
    %c0_7 = arith.constant 0 : index
    %c0_8 = arith.constant 0 : index
    %9 = vector.load %arg1[%c0_6, %c0_7, %c0_8] : memref<2x9x128xbf16, #tpu.memory_space<vmem>>, vector<1x9x128xbf16>
    %10 = vector.shape_cast %9 : vector<1x9x128xbf16> to vector<9x128xbf16>
    %11 = vector.extract_strided_slice %10 {offsets = [0, 0], sizes = [8, 128], strides = [1, 1]} : vector<9x128xbf16> to vector<8x128xbf16>
    %cst_9 = arith.constant dense<0.000000e+00> : vector<8x128xf32>
    %12 = tpu.matmul %11, %4, %cst_9 {dimension_numbers = #tpu.dot_dimension_numbers<[1], [0], [0], [1], [0, 0, 1, 1], [], []>} : vector<8x128xbf16>, vector<128x128xbf16>, vector<8x128xf32> -> vector<8x128xf32>
    %13 = vector.extract_strided_slice %10 {offsets = [1, 0], sizes = [8, 128], strides = [1, 1]} : vector<9x128xbf16> to vector<8x128xbf16>
    %cst_10 = arith.constant dense<0.000000e+00> : vector<8x128xf32>
    %14 = tpu.matmul %13, %6, %cst_10 {dimension_numbers = #tpu.dot_dimension_numbers<[1], [0], [0], [1], [0, 0, 1, 1], [], []>} : vector<8x128xbf16>, vector<128x128xbf16>, vector<8x128xf32> -> vector<8x128xf32>
    %15 = arith.addf %12, %14 : vector<8x128xf32>
    %cst_11 = arith.constant dense<0.000000e+00> : vector<128xf32>
    %16 = vector.multi_reduction <add>, %15, %cst_11 [0] : vector<8x128xf32> to vector<128xf32>
    %17 = vector.shape_cast %16 : vector<128xf32> to vector<1x128xf32>
    %18 = arith.addf %7, %17 : vector<1x128xf32>
    %19 = arith.mulf %15, %15 : vector<8x128xf32>
    %cst_12 = arith.constant dense<0.000000e+00> : vector<128xf32>
    %20 = vector.multi_reduction <add>, %19, %cst_12 [0] : vector<8x128xf32> to vector<128xf32>
    %21 = vector.shape_cast %20 : vector<128xf32> to vector<1x128xf32>
    %22 = arith.addf %8, %21 : vector<1x128xf32>
    %c1_13 = arith.constant 1 : index
    %c0_14 = arith.constant 0 : index
    %c0_15 = arith.constant 0 : index
    %23 = vector.load %arg1[%c1_13, %c0_14, %c0_15] : memref<2x9x128xbf16, #tpu.memory_space<vmem>>, vector<1x9x128xbf16>
    %24 = vector.shape_cast %23 : vector<1x9x128xbf16> to vector<9x128xbf16>
    %25 = vector.extract_strided_slice %24 {offsets = [0, 0], sizes = [8, 128], strides = [1, 1]} : vector<9x128xbf16> to vector<8x128xbf16>
    %cst_16 = arith.constant dense<0.000000e+00> : vector<8x128xf32>
    %26 = tpu.matmul %25, %4, %cst_16 {dimension_numbers = #tpu.dot_dimension_numbers<[1], [0], [0], [1], [0, 0, 1, 1], [], []>} : vector<8x128xbf16>, vector<128x128xbf16>, vector<8x128xf32> -> vector<8x128xf32>
    %27 = vector.extract_strided_slice %24 {offsets = [1, 0], sizes = [8, 128], strides = [1, 1]} : vector<9x128xbf16> to vector<8x128xbf16>
    %cst_17 = arith.constant dense<0.000000e+00> : vector<8x128xf32>
    %28 = tpu.matmul %27, %6, %cst_17 {dimension_numbers = #tpu.dot_dimension_numbers<[1], [0], [0], [1], [0, 0, 1, 1], [], []>} : vector<8x128xbf16>, vector<128x128xbf16>, vector<8x128xf32> -> vector<8x128xf32>
    %29 = arith.addf %26, %28 : vector<8x128xf32>
    %cst_18 = arith.constant dense<0.000000e+00> : vector<128xf32>
    %30 = vector.multi_reduction <add>, %29, %cst_18 [0] : vector<8x128xf32> to vector<128xf32>
    %31 = vector.shape_cast %30 : vector<128xf32> to vector<1x128xf32>
    %32 = arith.addf %18, %31 : vector<1x128xf32>
    %33 = arith.mulf %29, %29 : vector<8x128xf32>
    %cst_19 = arith.constant dense<0.000000e+00> : vector<128xf32>
    %34 = vector.multi_reduction <add>, %33, %cst_19 [0] : vector<8x128xf32> to vector<128xf32>
    %35 = vector.shape_cast %34 : vector<128xf32> to vector<1x128xf32>
    %36 = arith.addf %22, %35 : vector<1x128xf32>
    %c0_20 = arith.constant 0 : index
    %c0_21 = arith.constant 0 : index
    %37 = vector.load %arg3[%c0_20, %c0_21] : memref<1x128xf32, #tpu.memory_space<vmem>>, vector<1x128xf32>
    %38 = arith.addf %37, %32 : vector<1x128xf32>
    %c0_22 = arith.constant 0 : index
    %c0_23 = arith.constant 0 : index
    %39 = vector.load %arg3[%c0_22, %c0_23] : memref<1x128xf32, #tpu.memory_space<vmem>>, vector<1x128xf32>
    tpu.vector_store %arg3[%c0_22, %c0_23], %38 {strides = array<i32>} : memref<1x128xf32, #tpu.memory_space<vmem>>, vector<1x128xf32>,
    %c0_24 = arith.constant 0 : index
    %c0_25 = arith.constant 0 : index
    %40 = vector.load %arg4[%c0_24, %c0_25] : memref<1x128xf32, #tpu.memory_space<vmem>>, vector<1x128xf32>
    %41 = arith.addf %40, %36 : vector<1x128xf32>
    %c0_26 = arith.constant 0 : index
    %c0_27 = arith.constant 0 : index
    %42 = vector.load %arg4[%c0_26, %c0_27] : memref<1x128xf32, #tpu.memory_space<vmem>>, vector<1x128xf32>
    tpu.vector_store %arg4[%c0_26, %c0_27], %41 {strides = array<i32>} : memref<1x128xf32, #tpu.memory_space<vmem>>, vector<1x128xf32>,
    return
  }
  func.func @transform_0(%arg0: i32) -> (i32, i32, i32) {
    %c0_i32 = arith.constant 0 : i32
    %c0_i32_0 = arith.constant 0 : i32
    %c0_i32_1 = arith.constant 0 : i32
    return %arg0, %c0_i32, %c0_i32_0 : i32, i32, i32
  }
  func.func @transform_1(%arg0: i32) -> (i32, i32, i32) {
    %c0_i32 = arith.constant 0 : i32
    %c0_i32_0 = arith.constant 0 : i32
    %c0_i32_1 = arith.constant 0 : i32
    %c0_i32_2 = arith.constant 0 : i32
    return %c0_i32, %c0_i32_0, %c0_i32_1 : i32, i32, i32
  }
  func.func @transform_2(%arg0: i32) -> (i32, i32) {
    %c0_i32 = arith.constant 0 : i32
    %c0_i32_0 = arith.constant 0 : i32
    %c0_i32_1 = arith.constant 0 : i32
    return %c0_i32, %c0_i32_0 : i32, i32
  }
  func.func @transform_3(%arg0: i32) -> (i32, i32) {
    %c0_i32 = arith.constant 0 : i32
    %c0_i32_0 = arith.constant 0 : i32
    %c0_i32_1 = arith.constant 0 : i32
    return %c0_i32, %c0_i32_0 : i32, i32
  }
}

module attributes {stable_mosaic.version = 11 : i64} {
  func.func @_conv_bn_relu_kernel(%arg0: i32, %arg1: memref<2x9x128xbf16, #tpu.memory_space<vmem>>, %arg2: memref<2x128x128xbf16, #tpu.memory_space<vmem>>, %arg3: memref<1x128xf32, #tpu.memory_space<vmem>>, %arg4: memref<1x128xf32, #tpu.memory_space<vmem>>, %arg5: memref<2x10x128xbf16, #tpu.memory_space<vmem>>) attributes {dimension_semantics = [#tpu.dimension_semantics<parallel>], iteration_bounds = array<i64: 1>, scalar_prefetch = 0 : i64, scratch_operands = 0 : i64, tpu.core_type = #tpu.core_type<tc>, window_params = [{transform_indices = @transform_0, window_bounds = array<i64: 2, 9, 128>}, {pipeline_mode = #tpu.pipeline_mode<synchronous>, transform_indices = @transform_1, window_bounds = array<i64: 2, 128, 128>}, {pipeline_mode = #tpu.pipeline_mode<synchronous>, transform_indices = @transform_2, window_bounds = array<i64: 1, 128>}, {pipeline_mode = #tpu.pipeline_mode<synchronous>, transform_indices = @transform_3, window_bounds = array<i64: 1, 128>}, {transform_indices = @transform_4, window_bounds = array<i64: 2, 10, 128>}]} {
    %cst = arith.constant 0.000000e+00 : bf16
    %0 = vector.broadcast %cst : bf16 to vector<2x10x128xbf16>
    %c0 = arith.constant 0 : index
    %c0_0 = arith.constant 0 : index
    %c0_1 = arith.constant 0 : index
    %1 = vector.load %arg5[%c0, %c0_0, %c0_1] : memref<2x10x128xbf16, #tpu.memory_space<vmem>>, vector<2x10x128xbf16>
    tpu.vector_store %arg5[%c0, %c0_0, %c0_1], %0 {strides = array<i32>} : memref<2x10x128xbf16, #tpu.memory_space<vmem>>, vector<2x10x128xbf16>,
    %c0_2 = arith.constant 0 : index
    %c0_3 = arith.constant 0 : index
    %c0_4 = arith.constant 0 : index
    %2 = vector.load %arg2[%c0_2, %c0_3, %c0_4] : memref<2x128x128xbf16, #tpu.memory_space<vmem>>, vector<1x128x128xbf16>
    %3 = vector.shape_cast %2 : vector<1x128x128xbf16> to vector<128x128xbf16>
    %c1 = arith.constant 1 : index
    %c0_5 = arith.constant 0 : index
    %c0_6 = arith.constant 0 : index
    %4 = vector.load %arg2[%c1, %c0_5, %c0_6] : memref<2x128x128xbf16, #tpu.memory_space<vmem>>, vector<1x128x128xbf16>
    %5 = vector.shape_cast %4 : vector<1x128x128xbf16> to vector<128x128xbf16>
    %c0_7 = arith.constant 0 : index
    %c0_8 = arith.constant 0 : index
    %6 = vector.load %arg3[%c0_7, %c0_8] : memref<1x128xf32, #tpu.memory_space<vmem>>, vector<1x128xf32>
    %c0_9 = arith.constant 0 : index
    %c0_10 = arith.constant 0 : index
    %7 = vector.load %arg4[%c0_9, %c0_10] : memref<1x128xf32, #tpu.memory_space<vmem>>, vector<1x128xf32>
    %c0_11 = arith.constant 0 : index
    %c0_12 = arith.constant 0 : index
    %c0_13 = arith.constant 0 : index
    %8 = vector.load %arg1[%c0_11, %c0_12, %c0_13] : memref<2x9x128xbf16, #tpu.memory_space<vmem>>, vector<1x9x128xbf16>
    %9 = vector.shape_cast %8 : vector<1x9x128xbf16> to vector<9x128xbf16>
    %10 = vector.extract_strided_slice %9 {offsets = [0, 0], sizes = [8, 128], strides = [1, 1]} : vector<9x128xbf16> to vector<8x128xbf16>
    %cst_14 = arith.constant dense<0.000000e+00> : vector<8x128xf32>
    %11 = tpu.matmul %10, %3, %cst_14 {dimension_numbers = #tpu.dot_dimension_numbers<[1], [0], [0], [1], [0, 0, 1, 1], [], []>} : vector<8x128xbf16>, vector<128x128xbf16>, vector<8x128xf32> -> vector<8x128xf32>
    %12 = vector.extract_strided_slice %9 {offsets = [1, 0], sizes = [8, 128], strides = [1, 1]} : vector<9x128xbf16> to vector<8x128xbf16>
    %cst_15 = arith.constant dense<0.000000e+00> : vector<8x128xf32>
    %13 = tpu.matmul %12, %5, %cst_15 {dimension_numbers = #tpu.dot_dimension_numbers<[1], [0], [0], [1], [0, 0, 1, 1], [], []>} : vector<8x128xbf16>, vector<128x128xbf16>, vector<8x128xf32> -> vector<8x128xf32>
    %14 = arith.addf %11, %13 : vector<8x128xf32>
    %15 = vector.broadcast %6 : vector<1x128xf32> to vector<8x128xf32>
    %16 = arith.mulf %14, %15 : vector<8x128xf32>
    %17 = vector.broadcast %7 : vector<1x128xf32> to vector<8x128xf32>
    %18 = arith.addf %16, %17 : vector<8x128xf32>
    %cst_16 = arith.constant 0.000000e+00 : f32
    %19 = vector.broadcast %cst_16 : f32 to vector<8x128xf32>
    %20 = arith.maximumf %18, %19 : vector<8x128xf32>
    %21 = arith.truncf %20 : vector<8x128xf32> to vector<8x128xbf16>
    %c0_17 = arith.constant 0 : index
    %c1_18 = arith.constant 1 : index
    %c0_19 = arith.constant 0 : index
    %22 = vector.load %arg5[%c0_17, %c1_18, %c0_19] : memref<2x10x128xbf16, #tpu.memory_space<vmem>>, vector<1x8x128xbf16>
    %23 = vector.shape_cast %22 : vector<1x8x128xbf16> to vector<8x128xbf16>
    %24 = vector.shape_cast %21 : vector<8x128xbf16> to vector<1x8x128xbf16>
    tpu.vector_store %arg5[%c0_17, %c1_18, %c0_19], %24 {strides = array<i32>} : memref<2x10x128xbf16, #tpu.memory_space<vmem>>, vector<1x8x128xbf16>,
    %c1_20 = arith.constant 1 : index
    %c0_21 = arith.constant 0 : index
    %c0_22 = arith.constant 0 : index
    %25 = vector.load %arg1[%c1_20, %c0_21, %c0_22] : memref<2x9x128xbf16, #tpu.memory_space<vmem>>, vector<1x9x128xbf16>
    %26 = vector.shape_cast %25 : vector<1x9x128xbf16> to vector<9x128xbf16>
    %27 = vector.extract_strided_slice %26 {offsets = [0, 0], sizes = [8, 128], strides = [1, 1]} : vector<9x128xbf16> to vector<8x128xbf16>
    %cst_23 = arith.constant dense<0.000000e+00> : vector<8x128xf32>
    %28 = tpu.matmul %27, %3, %cst_23 {dimension_numbers = #tpu.dot_dimension_numbers<[1], [0], [0], [1], [0, 0, 1, 1], [], []>} : vector<8x128xbf16>, vector<128x128xbf16>, vector<8x128xf32> -> vector<8x128xf32>
    %29 = vector.extract_strided_slice %26 {offsets = [1, 0], sizes = [8, 128], strides = [1, 1]} : vector<9x128xbf16> to vector<8x128xbf16>
    %cst_24 = arith.constant dense<0.000000e+00> : vector<8x128xf32>
    %30 = tpu.matmul %29, %5, %cst_24 {dimension_numbers = #tpu.dot_dimension_numbers<[1], [0], [0], [1], [0, 0, 1, 1], [], []>} : vector<8x128xbf16>, vector<128x128xbf16>, vector<8x128xf32> -> vector<8x128xf32>
    %31 = arith.addf %28, %30 : vector<8x128xf32>
    %32 = vector.broadcast %6 : vector<1x128xf32> to vector<8x128xf32>
    %33 = arith.mulf %31, %32 : vector<8x128xf32>
    %34 = vector.broadcast %7 : vector<1x128xf32> to vector<8x128xf32>
    %35 = arith.addf %33, %34 : vector<8x128xf32>
    %cst_25 = arith.constant 0.000000e+00 : f32
    %36 = vector.broadcast %cst_25 : f32 to vector<8x128xf32>
    %37 = arith.maximumf %35, %36 : vector<8x128xf32>
    %38 = arith.truncf %37 : vector<8x128xf32> to vector<8x128xbf16>
    %c1_26 = arith.constant 1 : index
    %c1_27 = arith.constant 1 : index
    %c0_28 = arith.constant 0 : index
    %39 = vector.load %arg5[%c1_26, %c1_27, %c0_28] : memref<2x10x128xbf16, #tpu.memory_space<vmem>>, vector<1x8x128xbf16>
    %40 = vector.shape_cast %39 : vector<1x8x128xbf16> to vector<8x128xbf16>
    %41 = vector.shape_cast %38 : vector<8x128xbf16> to vector<1x8x128xbf16>
    tpu.vector_store %arg5[%c1_26, %c1_27, %c0_28], %41 {strides = array<i32>} : memref<2x10x128xbf16, #tpu.memory_space<vmem>>, vector<1x8x128xbf16>,
    return
  }
  func.func @transform_0(%arg0: i32) -> (i32, i32, i32) {
    %c0_i32 = arith.constant 0 : i32
    %c0_i32_0 = arith.constant 0 : i32
    %c0_i32_1 = arith.constant 0 : i32
    return %arg0, %c0_i32, %c0_i32_0 : i32, i32, i32
  }
  func.func @transform_1(%arg0: i32) -> (i32, i32, i32) {
    %c0_i32 = arith.constant 0 : i32
    %c0_i32_0 = arith.constant 0 : i32
    %c0_i32_1 = arith.constant 0 : i32
    %c0_i32_2 = arith.constant 0 : i32
    return %c0_i32, %c0_i32_0, %c0_i32_1 : i32, i32, i32
  }
  func.func @transform_2(%arg0: i32) -> (i32, i32) {
    %c0_i32 = arith.constant 0 : i32
    %c0_i32_0 = arith.constant 0 : i32
    %c0_i32_1 = arith.constant 0 : i32
    return %c0_i32, %c0_i32_0 : i32, i32
  }
  func.func @transform_3(%arg0: i32) -> (i32, i32) {
    %c0_i32 = arith.constant 0 : i32
    %c0_i32_0 = arith.constant 0 : i32
    %c0_i32_1 = arith.constant 0 : i32
    return %c0_i32, %c0_i32_0 : i32, i32
  }
  func.func @transform_4(%arg0: i32) -> (i32, i32, i32) {
    %c0_i32 = arith.constant 0 : i32
    %c0_i32_0 = arith.constant 0 : i32
    %c0_i32_1 = arith.constant 0 : i32
    return %arg0, %c0_i32, %c0_i32_0 : i32, i32, i32
  }
}

module attributes {stable_mosaic.version = 11 : i64} {
  func.func @_conv_stats_kernel(%arg0: i32, %arg1: memref<2x5x256xbf16, #tpu.memory_space<vmem>>, %arg2: memref<2x256x256xbf16, #tpu.memory_space<vmem>>, %arg3: memref<1x256xf32, #tpu.memory_space<vmem>>, %arg4: memref<1x256xf32, #tpu.memory_space<vmem>>) attributes {dimension_semantics = [#tpu.dimension_semantics<arbitrary>], iteration_bounds = array<i64: 1>, scalar_prefetch = 0 : i64, scratch_operands = 0 : i64, tpu.core_type = #tpu.core_type<tc>, window_params = [{transform_indices = @transform_0, window_bounds = array<i64: 2, 5, 256>}, {pipeline_mode = #tpu.pipeline_mode<synchronous>, transform_indices = @transform_1, window_bounds = array<i64: 2, 256, 256>}, {pipeline_mode = #tpu.pipeline_mode<synchronous>, transform_indices = @transform_2, window_bounds = array<i64: 1, 256>}, {pipeline_mode = #tpu.pipeline_mode<synchronous>, transform_indices = @transform_3, window_bounds = array<i64: 1, 256>}]} {
    %c0_i32 = arith.constant 0 : i32
    %0 = arith.cmpi eq, %arg0, %c0_i32 : i32
    %1 = arith.extui %0 : i1 to i32
    %c0_i32_0 = arith.constant 0 : i32
    %2 = arith.cmpi ne, %1, %c0_i32_0 : i32
    scf.if %2 {
      %cst_28 = arith.constant 0.000000e+00 : f32
      %43 = vector.broadcast %cst_28 : f32 to vector<1x256xf32>
      %c0_29 = arith.constant 0 : index
      %c0_30 = arith.constant 0 : index
      %44 = vector.load %arg3[%c0_29, %c0_30] : memref<1x256xf32, #tpu.memory_space<vmem>>, vector<1x256xf32>
      tpu.vector_store %arg3[%c0_29, %c0_30], %43 {strides = array<i32>} : memref<1x256xf32, #tpu.memory_space<vmem>>, vector<1x256xf32>,
      %cst_31 = arith.constant 0.000000e+00 : f32
      %45 = vector.broadcast %cst_31 : f32 to vector<1x256xf32>
      %c0_32 = arith.constant 0 : index
      %c0_33 = arith.constant 0 : index
      %46 = vector.load %arg4[%c0_32, %c0_33] : memref<1x256xf32, #tpu.memory_space<vmem>>, vector<1x256xf32>
      tpu.vector_store %arg4[%c0_32, %c0_33], %45 {strides = array<i32>} : memref<1x256xf32, #tpu.memory_space<vmem>>, vector<1x256xf32>,
    } else {
    }
    %c0 = arith.constant 0 : index
    %c0_1 = arith.constant 0 : index
    %c0_2 = arith.constant 0 : index
    %3 = vector.load %arg2[%c0, %c0_1, %c0_2] : memref<2x256x256xbf16, #tpu.memory_space<vmem>>, vector<1x256x256xbf16>
    %4 = vector.shape_cast %3 : vector<1x256x256xbf16> to vector<256x256xbf16>
    %c1 = arith.constant 1 : index
    %c0_3 = arith.constant 0 : index
    %c0_4 = arith.constant 0 : index
    %5 = vector.load %arg2[%c1, %c0_3, %c0_4] : memref<2x256x256xbf16, #tpu.memory_space<vmem>>, vector<1x256x256xbf16>
    %6 = vector.shape_cast %5 : vector<1x256x256xbf16> to vector<256x256xbf16>
    %cst = arith.constant 0.000000e+00 : f32
    %7 = vector.broadcast %cst : f32 to vector<1x256xf32>
    %cst_5 = arith.constant 0.000000e+00 : f32
    %8 = vector.broadcast %cst_5 : f32 to vector<1x256xf32>
    %c0_6 = arith.constant 0 : index
    %c0_7 = arith.constant 0 : index
    %c0_8 = arith.constant 0 : index
    %9 = vector.load %arg1[%c0_6, %c0_7, %c0_8] : memref<2x5x256xbf16, #tpu.memory_space<vmem>>, vector<1x5x256xbf16>
    %10 = vector.shape_cast %9 : vector<1x5x256xbf16> to vector<5x256xbf16>
    %11 = vector.extract_strided_slice %10 {offsets = [0, 0], sizes = [4, 256], strides = [1, 1]} : vector<5x256xbf16> to vector<4x256xbf16>
    %cst_9 = arith.constant dense<0.000000e+00> : vector<4x256xf32>
    %12 = tpu.matmul %11, %4, %cst_9 {dimension_numbers = #tpu.dot_dimension_numbers<[1], [0], [0], [1], [0, 0, 1, 1], [], []>} : vector<4x256xbf16>, vector<256x256xbf16>, vector<4x256xf32> -> vector<4x256xf32>
    %13 = vector.extract_strided_slice %10 {offsets = [1, 0], sizes = [4, 256], strides = [1, 1]} : vector<5x256xbf16> to vector<4x256xbf16>
    %cst_10 = arith.constant dense<0.000000e+00> : vector<4x256xf32>
    %14 = tpu.matmul %13, %6, %cst_10 {dimension_numbers = #tpu.dot_dimension_numbers<[1], [0], [0], [1], [0, 0, 1, 1], [], []>} : vector<4x256xbf16>, vector<256x256xbf16>, vector<4x256xf32> -> vector<4x256xf32>
    %15 = arith.addf %12, %14 : vector<4x256xf32>
    %cst_11 = arith.constant dense<0.000000e+00> : vector<256xf32>
    %16 = vector.multi_reduction <add>, %15, %cst_11 [0] : vector<4x256xf32> to vector<256xf32>
    %17 = vector.shape_cast %16 : vector<256xf32> to vector<1x256xf32>
    %18 = arith.addf %7, %17 : vector<1x256xf32>
    %19 = arith.mulf %15, %15 : vector<4x256xf32>
    %cst_12 = arith.constant dense<0.000000e+00> : vector<256xf32>
    %20 = vector.multi_reduction <add>, %19, %cst_12 [0] : vector<4x256xf32> to vector<256xf32>
    %21 = vector.shape_cast %20 : vector<256xf32> to vector<1x256xf32>
    %22 = arith.addf %8, %21 : vector<1x256xf32>
    %c1_13 = arith.constant 1 : index
    %c0_14 = arith.constant 0 : index
    %c0_15 = arith.constant 0 : index
    %23 = vector.load %arg1[%c1_13, %c0_14, %c0_15] : memref<2x5x256xbf16, #tpu.memory_space<vmem>>, vector<1x5x256xbf16>
    %24 = vector.shape_cast %23 : vector<1x5x256xbf16> to vector<5x256xbf16>
    %25 = vector.extract_strided_slice %24 {offsets = [0, 0], sizes = [4, 256], strides = [1, 1]} : vector<5x256xbf16> to vector<4x256xbf16>
    %cst_16 = arith.constant dense<0.000000e+00> : vector<4x256xf32>
    %26 = tpu.matmul %25, %4, %cst_16 {dimension_numbers = #tpu.dot_dimension_numbers<[1], [0], [0], [1], [0, 0, 1, 1], [], []>} : vector<4x256xbf16>, vector<256x256xbf16>, vector<4x256xf32> -> vector<4x256xf32>
    %27 = vector.extract_strided_slice %24 {offsets = [1, 0], sizes = [4, 256], strides = [1, 1]} : vector<5x256xbf16> to vector<4x256xbf16>
    %cst_17 = arith.constant dense<0.000000e+00> : vector<4x256xf32>
    %28 = tpu.matmul %27, %6, %cst_17 {dimension_numbers = #tpu.dot_dimension_numbers<[1], [0], [0], [1], [0, 0, 1, 1], [], []>} : vector<4x256xbf16>, vector<256x256xbf16>, vector<4x256xf32> -> vector<4x256xf32>
    %29 = arith.addf %26, %28 : vector<4x256xf32>
    %cst_18 = arith.constant dense<0.000000e+00> : vector<256xf32>
    %30 = vector.multi_reduction <add>, %29, %cst_18 [0] : vector<4x256xf32> to vector<256xf32>
    %31 = vector.shape_cast %30 : vector<256xf32> to vector<1x256xf32>
    %32 = arith.addf %18, %31 : vector<1x256xf32>
    %33 = arith.mulf %29, %29 : vector<4x256xf32>
    %cst_19 = arith.constant dense<0.000000e+00> : vector<256xf32>
    %34 = vector.multi_reduction <add>, %33, %cst_19 [0] : vector<4x256xf32> to vector<256xf32>
    %35 = vector.shape_cast %34 : vector<256xf32> to vector<1x256xf32>
    %36 = arith.addf %22, %35 : vector<1x256xf32>
    %c0_20 = arith.constant 0 : index
    %c0_21 = arith.constant 0 : index
    %37 = vector.load %arg3[%c0_20, %c0_21] : memref<1x256xf32, #tpu.memory_space<vmem>>, vector<1x256xf32>
    %38 = arith.addf %37, %32 : vector<1x256xf32>
    %c0_22 = arith.constant 0 : index
    %c0_23 = arith.constant 0 : index
    %39 = vector.load %arg3[%c0_22, %c0_23] : memref<1x256xf32, #tpu.memory_space<vmem>>, vector<1x256xf32>
    tpu.vector_store %arg3[%c0_22, %c0_23], %38 {strides = array<i32>} : memref<1x256xf32, #tpu.memory_space<vmem>>, vector<1x256xf32>,
    %c0_24 = arith.constant 0 : index
    %c0_25 = arith.constant 0 : index
    %40 = vector.load %arg4[%c0_24, %c0_25] : memref<1x256xf32, #tpu.memory_space<vmem>>, vector<1x256xf32>
    %41 = arith.addf %40, %36 : vector<1x256xf32>
    %c0_26 = arith.constant 0 : index
    %c0_27 = arith.constant 0 : index
    %42 = vector.load %arg4[%c0_26, %c0_27] : memref<1x256xf32, #tpu.memory_space<vmem>>, vector<1x256xf32>
    tpu.vector_store %arg4[%c0_26, %c0_27], %41 {strides = array<i32>} : memref<1x256xf32, #tpu.memory_space<vmem>>, vector<1x256xf32>,
    return
  }
  func.func @transform_0(%arg0: i32) -> (i32, i32, i32) {
    %c0_i32 = arith.constant 0 : i32
    %c0_i32_0 = arith.constant 0 : i32
    %c0_i32_1 = arith.constant 0 : i32
    return %arg0, %c0_i32, %c0_i32_0 : i32, i32, i32
  }
  func.func @transform_1(%arg0: i32) -> (i32, i32, i32) {
    %c0_i32 = arith.constant 0 : i32
    %c0_i32_0 = arith.constant 0 : i32
    %c0_i32_1 = arith.constant 0 : i32
    %c0_i32_2 = arith.constant 0 : i32
    return %c0_i32, %c0_i32_0, %c0_i32_1 : i32, i32, i32
  }
  func.func @transform_2(%arg0: i32) -> (i32, i32) {
    %c0_i32 = arith.constant 0 : i32
    %c0_i32_0 = arith.constant 0 : i32
    %c0_i32_1 = arith.constant 0 : i32
    return %c0_i32, %c0_i32_0 : i32, i32
  }
  func.func @transform_3(%arg0: i32) -> (i32, i32) {
    %c0_i32 = arith.constant 0 : i32
    %c0_i32_0 = arith.constant 0 : i32
    %c0_i32_1 = arith.constant 0 : i32
    return %c0_i32, %c0_i32_0 : i32, i32
  }
}

module attributes {stable_mosaic.version = 11 : i64} {
  func.func @_conv_bn_relu_pool_fc_kernel(%arg0: i32, %arg1: memref<2x5x256xbf16, #tpu.memory_space<vmem>>, %arg2: memref<2x256x256xbf16, #tpu.memory_space<vmem>>, %arg3: memref<1x256xf32, #tpu.memory_space<vmem>>, %arg4: memref<1x256xf32, #tpu.memory_space<vmem>>, %arg5: memref<256x32xf32, #tpu.memory_space<vmem>>, %arg6: memref<1x32xf32, #tpu.memory_space<vmem>>, %arg7: memref<2x32xf32, #tpu.memory_space<vmem>>) attributes {dimension_semantics = [#tpu.dimension_semantics<parallel>], iteration_bounds = array<i64: 1>, scalar_prefetch = 0 : i64, scratch_operands = 0 : i64, tpu.core_type = #tpu.core_type<tc>, window_params = [{transform_indices = @transform_0, window_bounds = array<i64: 2, 5, 256>}, {pipeline_mode = #tpu.pipeline_mode<synchronous>, transform_indices = @transform_1, window_bounds = array<i64: 2, 256, 256>}, {pipeline_mode = #tpu.pipeline_mode<synchronous>, transform_indices = @transform_2, window_bounds = array<i64: 1, 256>}, {pipeline_mode = #tpu.pipeline_mode<synchronous>, transform_indices = @transform_3, window_bounds = array<i64: 1, 256>}, {pipeline_mode = #tpu.pipeline_mode<synchronous>, transform_indices = @transform_4, window_bounds = array<i64: 256, 32>}, {pipeline_mode = #tpu.pipeline_mode<synchronous>, transform_indices = @transform_5, window_bounds = array<i64: 1, 32>}, {transform_indices = @transform_6, window_bounds = array<i64: 2, 32>}]} {
    %c0 = arith.constant 0 : index
    %c0_0 = arith.constant 0 : index
    %c0_1 = arith.constant 0 : index
    %0 = vector.load %arg2[%c0, %c0_0, %c0_1] : memref<2x256x256xbf16, #tpu.memory_space<vmem>>, vector<1x256x256xbf16>
    %1 = vector.shape_cast %0 : vector<1x256x256xbf16> to vector<256x256xbf16>
    %c1 = arith.constant 1 : index
    %c0_2 = arith.constant 0 : index
    %c0_3 = arith.constant 0 : index
    %2 = vector.load %arg2[%c1, %c0_2, %c0_3] : memref<2x256x256xbf16, #tpu.memory_space<vmem>>, vector<1x256x256xbf16>
    %3 = vector.shape_cast %2 : vector<1x256x256xbf16> to vector<256x256xbf16>
    %c0_4 = arith.constant 0 : index
    %c0_5 = arith.constant 0 : index
    %4 = vector.load %arg3[%c0_4, %c0_5] : memref<1x256xf32, #tpu.memory_space<vmem>>, vector<1x256xf32>
    %c0_6 = arith.constant 0 : index
    %c0_7 = arith.constant 0 : index
    %5 = vector.load %arg4[%c0_6, %c0_7] : memref<1x256xf32, #tpu.memory_space<vmem>>, vector<1x256xf32>
    %c0_8 = arith.constant 0 : index
    %c0_9 = arith.constant 0 : index
    %6 = vector.load %arg5[%c0_8, %c0_9] : memref<256x32xf32, #tpu.memory_space<vmem>>, vector<256x32xf32>
    %c0_10 = arith.constant 0 : index
    %c0_11 = arith.constant 0 : index
    %7 = vector.load %arg6[%c0_10, %c0_11] : memref<1x32xf32, #tpu.memory_space<vmem>>, vector<1x32xf32>
    %c0_12 = arith.constant 0 : index
    %c0_13 = arith.constant 0 : index
    %c0_14 = arith.constant 0 : index
    %8 = vector.load %arg1[%c0_12, %c0_13, %c0_14] : memref<2x5x256xbf16, #tpu.memory_space<vmem>>, vector<1x5x256xbf16>
    %9 = vector.shape_cast %8 : vector<1x5x256xbf16> to vector<5x256xbf16>
    %10 = vector.extract_strided_slice %9 {offsets = [0, 0], sizes = [4, 256], strides = [1, 1]} : vector<5x256xbf16> to vector<4x256xbf16>
    %cst = arith.constant dense<0.000000e+00> : vector<4x256xf32>
    %11 = tpu.matmul %10, %1, %cst {dimension_numbers = #tpu.dot_dimension_numbers<[1], [0], [0], [1], [0, 0, 1, 1], [], []>} : vector<4x256xbf16>, vector<256x256xbf16>, vector<4x256xf32> -> vector<4x256xf32>
    %12 = vector.extract_strided_slice %9 {offsets = [1, 0], sizes = [4, 256], strides = [1, 1]} : vector<5x256xbf16> to vector<4x256xbf16>
    %cst_15 = arith.constant dense<0.000000e+00> : vector<4x256xf32>
    %13 = tpu.matmul %12, %3, %cst_15 {dimension_numbers = #tpu.dot_dimension_numbers<[1], [0], [0], [1], [0, 0, 1, 1], [], []>} : vector<4x256xbf16>, vector<256x256xbf16>, vector<4x256xf32> -> vector<4x256xf32>
    %14 = arith.addf %11, %13 : vector<4x256xf32>
    %15 = vector.broadcast %4 : vector<1x256xf32> to vector<4x256xf32>
    %16 = arith.mulf %14, %15 : vector<4x256xf32>
    %17 = vector.broadcast %5 : vector<1x256xf32> to vector<4x256xf32>
    %18 = arith.addf %16, %17 : vector<4x256xf32>
    %cst_16 = arith.constant 0.000000e+00 : f32
    %19 = vector.broadcast %cst_16 : f32 to vector<4x256xf32>
    %20 = arith.maximumf %18, %19 : vector<4x256xf32>
    %cst_17 = arith.constant dense<0.000000e+00> : vector<256xf32>
    %21 = vector.multi_reduction <add>, %20, %cst_17 [0] : vector<4x256xf32> to vector<256xf32>
    %22 = vector.shape_cast %21 : vector<256xf32> to vector<1x256xf32>
    %cst_18 = arith.constant 2.500000e-01 : f32
    %23 = vector.broadcast %cst_18 : f32 to vector<1x256xf32>
    %24 = arith.mulf %22, %23 : vector<1x256xf32>
    %cst_19 = arith.constant dense<0.000000e+00> : vector<1x32xf32>
    %25 = tpu.matmul %24, %6, %cst_19 {dimension_numbers = #tpu.dot_dimension_numbers<[1], [0], [0], [1], [0, 0, 1, 1], [], []>} : vector<1x256xf32>, vector<256x32xf32>, vector<1x32xf32> -> vector<1x32xf32>
    %26 = arith.addf %25, %7 : vector<1x32xf32>
    %c0_20 = arith.constant 0 : index
    %c0_21 = arith.constant 0 : index
    %27 = vector.load %arg7[%c0_20, %c0_21] : memref<2x32xf32, #tpu.memory_space<vmem>>, vector<1x32xf32>
    tpu.vector_store %arg7[%c0_20, %c0_21], %26 {strides = array<i32>} : memref<2x32xf32, #tpu.memory_space<vmem>>, vector<1x32xf32>,
    %c1_22 = arith.constant 1 : index
    %c0_23 = arith.constant 0 : index
    %c0_24 = arith.constant 0 : index
    %28 = vector.load %arg1[%c1_22, %c0_23, %c0_24] : memref<2x5x256xbf16, #tpu.memory_space<vmem>>, vector<1x5x256xbf16>
    %29 = vector.shape_cast %28 : vector<1x5x256xbf16> to vector<5x256xbf16>
    %30 = vector.extract_strided_slice %29 {offsets = [0, 0], sizes = [4, 256], strides = [1, 1]} : vector<5x256xbf16> to vector<4x256xbf16>
    %cst_25 = arith.constant dense<0.000000e+00> : vector<4x256xf32>
    %31 = tpu.matmul %30, %1, %cst_25 {dimension_numbers = #tpu.dot_dimension_numbers<[1], [0], [0], [1], [0, 0, 1, 1], [], []>} : vector<4x256xbf16>, vector<256x256xbf16>, vector<4x256xf32> -> vector<4x256xf32>
    %32 = vector.extract_strided_slice %29 {offsets = [1, 0], sizes = [4, 256], strides = [1, 1]} : vector<5x256xbf16> to vector<4x256xbf16>
    %cst_26 = arith.constant dense<0.000000e+00> : vector<4x256xf32>
    %33 = tpu.matmul %32, %3, %cst_26 {dimension_numbers = #tpu.dot_dimension_numbers<[1], [0], [0], [1], [0, 0, 1, 1], [], []>} : vector<4x256xbf16>, vector<256x256xbf16>, vector<4x256xf32> -> vector<4x256xf32>
    %34 = arith.addf %31, %33 : vector<4x256xf32>
    %35 = vector.broadcast %4 : vector<1x256xf32> to vector<4x256xf32>
    %36 = arith.mulf %34, %35 : vector<4x256xf32>
    %37 = vector.broadcast %5 : vector<1x256xf32> to vector<4x256xf32>
    %38 = arith.addf %36, %37 : vector<4x256xf32>
    %cst_27 = arith.constant 0.000000e+00 : f32
    %39 = vector.broadcast %cst_27 : f32 to vector<4x256xf32>
    %40 = arith.maximumf %38, %39 : vector<4x256xf32>
    %cst_28 = arith.constant dense<0.000000e+00> : vector<256xf32>
    %41 = vector.multi_reduction <add>, %40, %cst_28 [0] : vector<4x256xf32> to vector<256xf32>
    %42 = vector.shape_cast %41 : vector<256xf32> to vector<1x256xf32>
    %cst_29 = arith.constant 2.500000e-01 : f32
    %43 = vector.broadcast %cst_29 : f32 to vector<1x256xf32>
    %44 = arith.mulf %42, %43 : vector<1x256xf32>
    %cst_30 = arith.constant dense<0.000000e+00> : vector<1x32xf32>
    %45 = tpu.matmul %44, %6, %cst_30 {dimension_numbers = #tpu.dot_dimension_numbers<[1], [0], [0], [1], [0, 0, 1, 1], [], []>} : vector<1x256xf32>, vector<256x32xf32>, vector<1x32xf32> -> vector<1x32xf32>
    %46 = arith.addf %45, %7 : vector<1x32xf32>
    %c1_31 = arith.constant 1 : index
    %c0_32 = arith.constant 0 : index
    %47 = vector.load %arg7[%c1_31, %c0_32] : memref<2x32xf32, #tpu.memory_space<vmem>>, vector<1x32xf32>
    tpu.vector_store %arg7[%c1_31, %c0_32], %46 {strides = array<i32>} : memref<2x32xf32, #tpu.memory_space<vmem>>, vector<1x32xf32>,
    return
  }
  func.func @transform_0(%arg0: i32) -> (i32, i32, i32) {
    %c0_i32 = arith.constant 0 : i32
    %c0_i32_0 = arith.constant 0 : i32
    %c0_i32_1 = arith.constant 0 : i32
    return %arg0, %c0_i32, %c0_i32_0 : i32, i32, i32
  }
  func.func @transform_1(%arg0: i32) -> (i32, i32, i32) {
    %c0_i32 = arith.constant 0 : i32
    %c0_i32_0 = arith.constant 0 : i32
    %c0_i32_1 = arith.constant 0 : i32
    %c0_i32_2 = arith.constant 0 : i32
    return %c0_i32, %c0_i32_0, %c0_i32_1 : i32, i32, i32
  }
  func.func @transform_2(%arg0: i32) -> (i32, i32) {
    %c0_i32 = arith.constant 0 : i32
    %c0_i32_0 = arith.constant 0 : i32
    %c0_i32_1 = arith.constant 0 : i32
    return %c0_i32, %c0_i32_0 : i32, i32
  }
  func.func @transform_3(%arg0: i32) -> (i32, i32) {
    %c0_i32 = arith.constant 0 : i32
    %c0_i32_0 = arith.constant 0 : i32
    %c0_i32_1 = arith.constant 0 : i32
    return %c0_i32, %c0_i32_0 : i32, i32
  }
  func.func @transform_4(%arg0: i32) -> (i32, i32) {
    %c0_i32 = arith.constant 0 : i32
    %c0_i32_0 = arith.constant 0 : i32
    %c0_i32_1 = arith.constant 0 : i32
    return %c0_i32, %c0_i32_0 : i32, i32
  }
  func.func @transform_5(%arg0: i32) -> (i32, i32) {
    %c0_i32 = arith.constant 0 : i32
    %c0_i32_0 = arith.constant 0 : i32
    %c0_i32_1 = arith.constant 0 : i32
    return %c0_i32, %c0_i32_0 : i32, i32
  }
  func.func @transform_6(%arg0: i32) -> (i32, i32) {
    %c0_i32 = arith.constant 0 : i32
    %c0_i32_0 = arith.constant 0 : i32
    return %arg0, %c0_i32 : i32, i32
  }
}

</mosaic_0001>

<bundles_post_ra>
// kernel: simclr_ts_forward.6
= control target key start
LH: loop header
LB: loop body
LE: loop exit
PB: predicated region body
PF: predicated region fallthrough
CT: control target
= control target key end

     0   :  { %vm54_vm0 = vcmask 1041408   ;;  %v487_v0 = vmov 0.0   ;;  %vm488_vm1 = vmmov 0   ;;  %vm50_vm2 = vcmask 31744   ;;  %s591_s1 = inlined_call_operand.vmem [shape: bf16[3,4,64], index: 1, kind: input, shape index: {}]   ;;  %s592_s0 = inlined_call_operand.vmem [shape: bf16[2,18,4], index: 0, kind: input, shape index: {}]   ;;  %s593_s2 = inlined_call_operand.vmem [shape: f32[1,64], index: 2, kind: output, shape index: {0}]   ;;  %s594_s3 = inlined_call_operand.vmem [shape: f32[1,64], index: 3, kind: output, shape index: {1}]  }
   0x1   :  { %451 = vmatprep.subr.bf16.mxu1 %v487_v0  ;;  %v21_v1 = vld [vmem:[%s591_s1] sm:$0x3]  ;;  %445 = vmatprep.subr.bf16.mxu0 %v487_v0  ;;  %v418_v2 = vld [vmem:[%s591_s1 + $0x2] sm:$0x3]  ;;  %v485_v7 = vld [vmem:[%s592_s0 + $0xc] sm:$0xff]   ;;  %vm145_vm4 = vcmask 1046528  }
   0x2   :  { %v102_v3 = vsel %vm54_vm0, %v21_v1, 0  ;;  %453 = vmatprep.mubr.msk.bf16.mxu1 %vm488_vm1, %v487_v0  ;;  %v56_v4 = vsel %vm54_vm0, %v418_v2, 0  ;;  %v483_v5 = vld [vmem:[%s592_s0] sm:$0xff]   ;;  %447 = vmatprep.mubr.msk.bf16.mxu0 %vm488_vm1, %v487_v0  ;;  %v484_v6 = vld [vmem:[%s592_s0 + $0x8] ss:$0 sps:$4 sm:$0x11]  }
   0x3   :  { %452 = vmatpush3.bf16.msra.mxu1 %v102_v3  ;;  %446 = vmatpush3.bf16.msra.mxu0 %v56_v4  ;;  %v39_v8 = vshrl.u32 %v483_v5, 16  ;;  %v41_v9 = vshll.u32 %v483_v5, 16  ;;  %v419_v10 = vld [vmem:[%s591_s1 + $0x4] sm:$0x3]  ;;  %v46_v11 = vshll.u32 %v484_v6, 16  ;;  %v234_v15 = vshrl.u32 %v485_v7, 16 }
   0x4   :  { %457 = vmatprep.subr.bf16.mxu0 %v487_v0  ;;  %463 = vmatprep.subr.bf16.mxu1 %v487_v0  ;;  %v486_v13 = vld [vmem:[%s592_s0 + $0x14] ss:$0 sps:$4 sm:$0x11]   ;;  %vm37_vm3 = vsmask.f32 7424  ;;  %v236_v16 = vshll.u32 %v485_v7, 16 }
   0x5   :  { %v43_v12 = vrot.slane %v41_v9, 1  ;;  %v48_v14 = vrot.slane %v46_v11, 1  ;;  %v241_v18 = vshll.u32 %v486_v13, 16  ;;  %v153_v19 = vsel %vm54_vm0, %v419_v10, 0 }
   0x6   :  { %454 = vmatmul.mubr.msk.bf16.vlgmr.msra.gmra.mxu1 %vm50_vm2, %v483_v5  ;;  %v238_v20 = vrot.slane %v236_v16, 1  ;;  %v146_v24 = vrot.slane %v483_v5, 1  ;;  %v147_v25 = vrot.slane %v484_v6, 1  ;;  %v332_v27 = vrot.slane %v485_v7, 1 }
   0x7   :  { %464 = vmatpush3.bf16.msra.mxu1 %v56_v4  ;;  %465 = vmatprep.mubr.msk.bf16.mxu1 %vm488_vm1, %v487_v0  ;;  %v44_v17 = vor.u32 %v43_v12, %v39_v8  ;;  %v243_v22 = vrot.slane %v241_v18, 1  ;;  %v333_v28 = vrot.slane %v486_v13, 1  ;;  %vm18_vm5 = vcmask 516096  }
   0x8   :  { %475 = vmatprep.subr.bf16.mxu1 %v487_v0  ;;  %v239_v23 = vor.u32 %v238_v20, %v234_v15  ;;  %v148_v29 = vsel %vm145_vm4, %v146_v24, %v147_v25  ;;  %19 = vst.msk [vmem:[%s593_s2] sm:$0x1] %vm18_vm5, %v487_v0  ;;  %20 = vst.msk [vmem:[%s594_s3] sm:$0x1] %vm18_vm5, %v487_v0  ;;  %vm198_vm6 = vcmask 523264  }
   0x9   :  { %v49_v21 = vsel %vm37_vm3, %v44_v17, %v48_v14  ;;  %v334_v30 = vsel %vm145_vm4, %v332_v27, %v333_v28 }
   0xa   :  { %448 = vmatmul.mubr.msk.bf16.vlgmr.msra.gmra.mxu0 %vm50_vm2, %v49_v21  ;;  %v244_v26 = vsel %vm37_vm3, %v239_v23, %v243_v22 }
   0xb   :  { %458 = vmatpush3.bf16.msra.mxu0 %v153_v19  ;;  %459 = vmatprep.mubr.msk.bf16.mxu0 %vm488_vm1, %v487_v0 }
   0xc   :  { %469 = vmatprep.subr.bf16.mxu0 %v487_v0 }
   0xe   :  { %466 = vmatmul.mubr.msk.bf16.vlgmr.msra.gmra.mxu1 %vm50_vm2, %v244_v26 }
   0xf   :  { %476 = vmatpush3.bf16.msra.mxu1 %v153_v19  ;;  %477 = vmatprep.mubr.msk.bf16.mxu1 %vm488_vm1, %v487_v0 }
  0x12   :  { %460 = vmatmul.mubr.msk.bf16.vlgmr.msra.gmra.mxu0 %vm50_vm2, %v148_v29 }
  0x13   :  { %470 = vmatpush3.bf16.msra.mxu0 %v102_v3  ;;  %471 = vmatprep.mubr.msk.bf16.mxu0 %vm488_vm1, %v487_v0 }
  0x16   :  { %478 = vmatmul.mubr.msk.bf16.vlgmr.msra.gmra.mxu1 %vm50_vm2, %v334_v30 }
  0x1a   :  { %472 = vmatmul.mubr.msk.bf16.vlgmr.msra.gmra.mxu0 %vm50_vm2, %v485_v7 }
  0xc6   :  { %v138_v31 = vpop.f32.mrf.mxu1 }
  0xc8   :  { %v455_v32 = vpop.f32.mrf.mxu1 }
  0xca   :  { %v141_v33 = vpop.f32.mrf.mxu1  ;;  %v92_v34 = vpop.f32.mrf.mxu0 }
  0xcb   :  { %v139_v41 = vadd.f32 %v138_v31, %v92_v34 }
  0xcc   :  { %v456_v35 = vpop.f32.mrf.mxu1  ;;  %v449_v36 = vpop.f32.mrf.mxu0 }
  0xce   :  { %v282_v37 = vpop.f32.mrf.mxu1  ;;  %v95_v38 = vpop.f32.mrf.mxu0 }
  0xcf   :  { %v142_v47 = vadd.f32 %v141_v33, %v95_v38 }
  0xd0   :  { %v467_v39 = vpop.f32.mrf.mxu1  ;;  %v450_v40 = vpop.f32.mrf.mxu0 }
  0xd2   :  { %v285_v42 = vpop.f32.mrf.mxu1  ;;  %v189_v43 = vpop.f32.mrf.mxu0 }
  0xd3   :  { %v196_v44 = vadd.f32 %v189_v43, %v139_v41  ;;  %v407_v41 = vld [vmem:[%s594_s3] sm:$0x1] }
  0xd4   :  { %v468_v45 = vpop.f32.mrf.mxu1  ;;  %v461_v46 = vpop.f32.mrf.mxu0 }
  0xd5   :  { %v209_v50 = vmul.f32 %v196_v44, %v196_v44  ;;  %v199_v54 = vsel %vm198_vm6, %v196_v44, 0.0 }
  0xd6   :  { %v372_v48 = vpop.f32.mrf.mxu1  ;;  %v192_v49 = vpop.f32.mrf.mxu0 }
  0xd7   :  { %v197_v51 = vadd.f32 %v192_v49, %v142_v47  ;;  %v211_v60 = vsel %vm198_vm6, %v209_v50, 0.0 }
  0xd8   :  { %v479_v52 = vpop.f32.mrf.mxu1  ;;  %v462_v53 = vpop.f32.mrf.mxu0 }
  0xd9   :  { %v200_v55 = vsel %vm198_vm6, %v197_v51, 0.0  ;;  %v210_v56 = vmul.f32 %v197_v51, %v197_v51 }
  0xda   :  { %v375_v57 = vpop.f32.mrf.mxu1  ;;  %v201_v58 = vadd.f32 %v200_v55, %v199_v54  ;;  %v325_v59 = vpop.f32.mrf.mxu0 }
  0xdb   :  { %v212_v61 = vsel %vm198_vm6, %v210_v56, 0.0  ;;  %v326_v62 = vadd.f32 %v325_v59, %v282_v37  ;;  %v403_v37 = vld [vmem:[%s593_s2] sm:$0x1] }
  0xdc   :  { %v480_v63 = vpop.f32.mrf.mxu1  ;;  %v202_v0 = vrot.slane %v201_v58, 4  ;;  %v213_v1 = vadd.f32 %v212_v61, %v211_v60  ;;  %v473_v2 = vpop.f32.mrf.mxu0 }
  0xdd   :  { %v379_v3 = vadd.f32 %v372_v48, %v326_v62 }
  0xde   :  { %v214_v4 = vrot.slane %v213_v1, 4  ;;  %v328_v5 = vpop.f32.mrf.mxu0  ;;  %v203_v7 = vadd.f32 %v202_v0, %v201_v58 }
  0xdf   :  { %v329_v6 = vadd.f32 %v328_v5, %v285_v42  ;;  %v391_v9 = vmul.f32 %v379_v3, %v379_v3  ;;  %v381_v12 = vsel %vm198_vm6, %v379_v3, 0.0 }
  0xe0   :  { %v474_v8 = vpop.f32.mrf.mxu0  ;;  %v215_v11 = vadd.f32 %v214_v4, %v213_v1  ;;  %v204_v15 = vrot.slane %v203_v7, 2 }
  0xe1   :  { %v380_v10 = vadd.f32 %v375_v57, %v329_v6  ;;  %v393_v17 = vsel %vm198_vm6, %v391_v9, 0.0 }
  0xe2   :  { %v216_v19 = vrot.slane %v215_v11, 2  ;;  %v205_v22 = vadd.f32 %v204_v15, %v203_v7 }
  0xe3   :  { %v382_v13 = vsel %vm198_vm6, %v380_v10, 0.0  ;;  %v392_v14 = vmul.f32 %v380_v10, %v380_v10 }
  0xe4   :  { %v383_v16 = vadd.f32 %v382_v13, %v381_v12  ;;  %v217_v25 = vadd.f32 %v216_v19, %v215_v11  ;;  %v206_v28 = vrot.slane %v205_v22, 1 }
  0xe5   :  { %v394_v18 = vsel %vm198_vm6, %v392_v14, 0.0 }
  0xe6   :  { %v384_v20 = vrot.slane %v383_v16, 4  ;;  %v395_v21 = vadd.f32 %v394_v18, %v393_v17  ;;  %v218_v31 = vrot.slane %v217_v25, 1  ;;  %v207_v34 = vadd.f32 %v206_v28, %v205_v22 }
  0xe8   :  { %v385_v23 = vadd.f32 %v384_v20, %v383_v16  ;;  %v396_v24 = vrot.slane %v395_v21, 4  ;;  %v219_v38 = vadd.f32 %v218_v31, %v217_v25 }
  0xea   :  { %v386_v26 = vrot.slane %v385_v23, 2  ;;  %v397_v27 = vadd.f32 %v396_v24, %v395_v21 }
  0xec   :  { %v387_v29 = vadd.f32 %v386_v26, %v385_v23  ;;  %v398_v30 = vrot.slane %v397_v27, 2 }
  0xee   :  { %v388_v32 = vrot.slane %v387_v29, 1  ;;  %v399_v33 = vadd.f32 %v398_v30, %v397_v27 }
  0xf0   :  { %v389_v35 = vadd.f32 %v388_v32, %v387_v29  ;;  %v400_v36 = vrot.slane %v399_v33, 1 }
  0xf2   :  { %v390_v39 = vadd.f32 %v389_v35, %v207_v34  ;;  %v401_v40 = vadd.f32 %v400_v36, %v399_v33 }
  0xf4   :  { %v402_v42 = vadd.f32 %v401_v40, %v219_v38  ;;  %v404_v43 = vadd.f32 %v403_v37, %v390_v39 }
  0xf6   :  { %406 = vst.msk [vmem:[%s593_s2] sm:$0x1] %vm18_vm5, %v404_v43  ;;  %v408_v44 = vadd.f32 %v407_v41, %v402_v42 }
  0xf8   :  { %409 = vst.msk [vmem:[%s594_s3] sm:$0x1] %vm18_vm5, %v408_v44 }

// kernel: simclr_ts_forward.8
= control target key start
LH: loop header
LB: loop body
LE: loop exit
PB: predicated region body
PF: predicated region fallthrough
CT: control target
= control target key end

     0   :  { %v556_v0 = vmov 0.0   ;;  %vm557_vm0 = vmmov 0   ;;  %s698_s1 = inlined_call_operand.vmem [shape: bf16[2,128,128], index: 1, kind: input, shape index: {}]   ;;  %s699_s0 = inlined_call_operand.vmem [shape: bf16[2,9,128], index: 0, kind: input, shape index: {}]   ;;  %s700_s2 = inlined_call_operand.vmem [shape: f32[1,128], index: 2, kind: output, shape index: {0}]   ;;  %s701_s3 = inlined_call_operand.vmem [shape: f32[1,128], index: 3, kind: output, shape index: {1}]  }
   0x1   :  { %456 = vmatprep.subr.bf16.mxu0 %v556_v0  ;;  %476 = vmatprep.subr.bf16.mxu1 %v556_v0  ;;  %v538_v1 = vld [vmem:[%s698_s1 + $0x78] sm:$0xff]   ;;  %v540_v3 = vld [vmem:[%s698_s1 + $0x70] sm:$0xff]   ;;  %v542_v5 = vld [vmem:[%s698_s1 + $0x68] sm:$0xff]   ;;  %18 = vst [vmem:[%s700_s2] sm:$0x1] %v556_v0 }
   0x2   :  { %v539_v2 = vld [vmem:[%s698_s1 + $0x38] sm:$0xff]   ;;  %472 = vmatprep.mubr.msk.bf16.mxu0 %vm557_vm0, %v556_v0  ;;  %492 = vmatprep.mubr.msk.bf16.mxu1 %vm557_vm0, %v556_v0  ;;  %v541_v4 = vld [vmem:[%s698_s1 + $0x30] sm:$0xff]   ;;  %v543_v6 = vld [vmem:[%s698_s1 + $0x28] sm:$0xff]   ;;  %19 = vst [vmem:[%s701_s3] sm:$0x1] %v556_v0 }
   0x3   :  { %457 = vmatpush3.bf16.msra.mxu0 %v538_v1  ;;  %477 = vmatpush3.bf16.msra.mxu1 %v539_v2  ;;  %v544_v7 = vld [vmem:[%s698_s1 + $0x60] sm:$0xff]   ;;  %v546_v9 = vld [vmem:[%s698_s1 + $0x58] sm:$0xff]   ;;  %v548_v14 = vld [vmem:[%s698_s1 + $0x50] sm:$0xff]  }
   0x4   :  { %458 = vmatprep.subr.bf16.mxu0 %v556_v0  ;;  %478 = vmatprep.subr.bf16.mxu1 %v556_v0  ;;  %v545_v8 = vld [vmem:[%s698_s1 + $0x20] sm:$0xff]   ;;  %v547_v10 = vld [vmem:[%s698_s1 + $0x18] sm:$0xff]   ;;  %v549_v15 = vld [vmem:[%s698_s1 + $0x10] sm:$0xff]  }
   0x5   :  { %v53_v11 = vld [vmem:[%s699_s0] sm:$0xf]  ;;  %v54_v12 = vld [vmem:[%s699_s0 + $0x4] sm:$0x1]  ;;  %v550_v17 = vld [vmem:[%s698_s1 + $0x48] sm:$0xff]  }
   0x6   :  { %v400_v13 = vcombine.low %v53_v11, %v54_v12  ;;  %v551_v18 = vld [vmem:[%s698_s1 + $0x8] sm:$0xff]   ;;  %v552_v21 = vld [vmem:[%s698_s1 + $0x40] sm:$0xff]  }
   0x7   :  { %459 = vmatpush3.bf16.msra.mxu0 %v540_v3  ;;  %479 = vmatpush3.bf16.msra.mxu1 %v541_v4  ;;  %v553_v22 = vld [vmem:[%s698_s1] sm:$0xff]   ;;  %v417_v24 = vld [vmem:[%s699_s0 + $0x8] sm:$0xf]  ;;  %v418_v25 = vld [vmem:[%s699_s0 + $0xc] sm:$0x1] }
   0x8   :  { %460 = vmatprep.subr.bf16.mxu0 %v556_v0  ;;  %480 = vmatprep.subr.bf16.mxu1 %v556_v0  ;;  %v63_v16 = vshll.u32 %v400_v13, 16  ;;  %v61_v19 = vshrl.u32 %v400_v13, 16  ;;  %v419_v26 = vcombine.low %v417_v24, %v418_v25 }
   0x9   :  { %v373_v13 = vld [vmem:[%s701_s3] sm:$0x1] }
   0xa   :  { %v65_v20 = vrot.slane %v63_v16, 1  ;;  %v270_v27 = vshll.u32 %v419_v26, 16  ;;  %v268_v28 = vshrl.u32 %v419_v26, 16 }
   0xb   :  { %461 = vmatpush3.bf16.msra.mxu0 %v542_v5  ;;  %481 = vmatpush3.bf16.msra.mxu1 %v543_v6 }
   0xc   :  { %462 = vmatprep.subr.bf16.mxu0 %v556_v0  ;;  %482 = vmatprep.subr.bf16.mxu1 %v556_v0  ;;  %v66_v23 = vor.u32 %v65_v20, %v61_v19  ;;  %v272_v29 = vrot.slane %v270_v27, 1 }
   0xe   :  { %v273_v30 = vor.u32 %v272_v29, %v268_v28 }
   0xf   :  { %463 = vmatpush3.bf16.msra.mxu0 %v544_v7  ;;  %483 = vmatpush3.bf16.msra.mxu1 %v545_v8 }
  0x10   :  { %464 = vmatprep.subr.bf16.mxu0 %v556_v0  ;;  %484 = vmatprep.subr.bf16.mxu1 %v556_v0 }
  0x13   :  { %465 = vmatpush3.bf16.msra.mxu0 %v546_v9  ;;  %485 = vmatpush3.bf16.msra.mxu1 %v547_v10 }
  0x14   :  { %466 = vmatprep.subr.bf16.mxu0 %v556_v0  ;;  %486 = vmatprep.subr.bf16.mxu1 %v556_v0 }
  0x17   :  { %467 = vmatpush3.bf16.msra.mxu0 %v548_v14  ;;  %487 = vmatpush3.bf16.msra.mxu1 %v549_v15 }
  0x18   :  { %468 = vmatprep.subr.bf16.mxu0 %v556_v0  ;;  %488 = vmatprep.subr.bf16.mxu1 %v556_v0 }
  0x1b   :  { %469 = vmatpush3.bf16.msra.mxu0 %v550_v17  ;;  %489 = vmatpush3.bf16.msra.mxu1 %v551_v18 }
  0x1c   :  { %470 = vmatprep.subr.bf16.mxu0 %v556_v0  ;;  %490 = vmatprep.subr.bf16.mxu1 %v556_v0 }
  0x1f   :  { %471 = vmatpush3.bf16.msra.mxu0 %v552_v21  ;;  %491 = vmatpush3.bf16.msra.mxu1 %v553_v22 }
  0x20   :  { %496 = vmatprep.subr.bf16.mxu0 %v556_v0  ;;  %516 = vmatprep.subr.bf16.mxu1 %v556_v0 }
  0x22   :  { %473 = vmatmul.mubr.bf16.vlgmr.msra.gmra.mxu0 %v66_v23  ;;  %493 = vmatmul.mubr.bf16.vlgmr.msra.gmra.mxu1 %v53_v11 }
  0x23   :  { %497 = vmatpush3.bf16.msra.mxu0 %v538_v1  ;;  %517 = vmatpush3.bf16.msra.mxu1 %v539_v2 }
  0x24   :  { %498 = vmatprep.subr.bf16.mxu0 %v556_v0  ;;  %518 = vmatprep.subr.bf16.mxu1 %v556_v0 }
  0x25   :  { %512 = vmatprep.mubr.msk.bf16.mxu0 %vm557_vm0, %v556_v0  ;;  %532 = vmatprep.mubr.msk.bf16.mxu1 %vm557_vm0, %v556_v0 }
  0x27   :  { %499 = vmatpush3.bf16.msra.mxu0 %v540_v3  ;;  %519 = vmatpush3.bf16.msra.mxu1 %v541_v4 }
  0x28   :  { %500 = vmatprep.subr.bf16.mxu0 %v556_v0  ;;  %520 = vmatprep.subr.bf16.mxu1 %v556_v0 }
  0x2b   :  { %501 = vmatpush3.bf16.msra.mxu0 %v542_v5  ;;  %521 = vmatpush3.bf16.msra.mxu1 %v543_v6 }
  0x2c   :  { %502 = vmatprep.subr.bf16.mxu0 %v556_v0  ;;  %522 = vmatprep.subr.bf16.mxu1 %v556_v0 }
  0x2f   :  { %503 = vmatpush3.bf16.msra.mxu0 %v544_v7  ;;  %523 = vmatpush3.bf16.msra.mxu1 %v545_v8 }
  0x30   :  { %504 = vmatprep.subr.bf16.mxu0 %v556_v0  ;;  %524 = vmatprep.subr.bf16.mxu1 %v556_v0 }
  0x33   :  { %505 = vmatpush3.bf16.msra.mxu0 %v546_v9  ;;  %525 = vmatpush3.bf16.msra.mxu1 %v547_v10  ;;  %v370_v9 = vld [vmem:[%s700_s2] sm:$0x1] }
  0x34   :  { %506 = vmatprep.subr.bf16.mxu0 %v556_v0  ;;  %526 = vmatprep.subr.bf16.mxu1 %v556_v0 }
  0x37   :  { %507 = vmatpush3.bf16.msra.mxu0 %v548_v14  ;;  %527 = vmatpush3.bf16.msra.mxu1 %v549_v15 }
  0x38   :  { %508 = vmatprep.subr.bf16.mxu0 %v556_v0  ;;  %528 = vmatprep.subr.bf16.mxu1 %v556_v0 }
  0x3b   :  { %509 = vmatpush3.bf16.msra.mxu0 %v550_v17  ;;  %529 = vmatpush3.bf16.msra.mxu1 %v551_v18 }
  0x3c   :  { %510 = vmatprep.subr.bf16.mxu0 %v556_v0  ;;  %530 = vmatprep.subr.bf16.mxu1 %v556_v0 }
  0x3f   :  { %511 = vmatpush3.bf16.msra.mxu0 %v552_v21  ;;  %531 = vmatpush3.bf16.msra.mxu1 %v553_v22 }
  0x42   :  { %513 = vmatmul.mubr.bf16.vlgmr.msra.gmra.mxu0 %v273_v30  ;;  %533 = vmatmul.mubr.bf16.vlgmr.msra.gmra.mxu1 %v417_v24 }
  0xe2   :  { %v150_v31 = vpop.f32.mrf.mxu0  ;;  %v238_v32 = vpop.f32.mrf.mxu1 }
  0xe3   :  { %v239_v39 = vadd.f32 %v238_v32, %v150_v31 }
  0xe4   :  { %v474_v33 = vpop.f32.mrf.mxu0  ;;  %v494_v34 = vpop.f32.mrf.mxu1 }
  0xe5   :  { %v251_v40 = vmul.f32 %v239_v39, %v239_v39  ;;  %v244_v41 = vrot.slane %v239_v39, 4 }
  0xe6   :  { %v153_v35 = vpop.f32.mrf.mxu0  ;;  %v241_v36 = vpop.f32.mrf.mxu1 }
  0xe7   :  { %v252_v42 = vrot.slane %v251_v40, 4  ;;  %v245_v43 = vadd.f32 %v244_v41, %v239_v39 }
  0xe8   :  { %v475_v37 = vpop.f32.mrf.mxu0  ;;  %v495_v38 = vpop.f32.mrf.mxu1 }
  0xe9   :  { %v253_v44 = vadd.f32 %v252_v42, %v251_v40  ;;  %v246_v47 = vrot.slane %v245_v43, 2 }
  0xeb   :  { %v254_v51 = vrot.slane %v253_v44, 2  ;;  %v247_v56 = vadd.f32 %v246_v47, %v245_v43 }
  0xed   :  { %v255_v61 = vadd.f32 %v254_v51, %v253_v44  ;;  %v248_v0 = vrot.slane %v247_v56, 1 }
  0xef   :  { %v256_v3 = vrot.slane %v255_v61, 1  ;;  %v249_v6 = vadd.f32 %v248_v0, %v247_v56 }
  0xf1   :  { %v257_v10 = vadd.f32 %v256_v3, %v255_v61 }
 0x102   :  { %v309_v45 = vpop.f32.mrf.mxu0  ;;  %v349_v46 = vpop.f32.mrf.mxu1 }
 0x103   :  { %v350_v48 = vadd.f32 %v349_v46, %v309_v45 }
 0x104   :  { %v514_v49 = vpop.f32.mrf.mxu0  ;;  %v534_v50 = vpop.f32.mrf.mxu1 }
 0x105   :  { %v355_v52 = vrot.slane %v350_v48, 4  ;;  %v362_v53 = vmul.f32 %v350_v48, %v350_v48 }
 0x106   :  { %v312_v54 = vpop.f32.mrf.mxu0  ;;  %v352_v55 = vpop.f32.mrf.mxu1 }
 0x107   :  { %v356_v57 = vadd.f32 %v355_v52, %v350_v48  ;;  %v363_v58 = vrot.slane %v362_v53, 4 }
 0x108   :  { %v515_v59 = vpop.f32.mrf.mxu0  ;;  %v535_v60 = vpop.f32.mrf.mxu1 }
 0x109   :  { %v357_v62 = vrot.slane %v356_v57, 2  ;;  %v364_v63 = vadd.f32 %v363_v58, %v362_v53 }
 0x10b   :  { %v358_v1 = vadd.f32 %v357_v62, %v356_v57  ;;  %v365_v2 = vrot.slane %v364_v63, 2 }
 0x10d   :  { %v359_v4 = vrot.slane %v358_v1, 1  ;;  %v366_v5 = vadd.f32 %v365_v2, %v364_v63 }
 0x10f   :  { %v360_v7 = vadd.f32 %v359_v4, %v358_v1  ;;  %v367_v8 = vrot.slane %v366_v5, 1 }
 0x111   :  { %v361_v11 = vadd.f32 %v360_v7, %v249_v6  ;;  %v368_v12 = vadd.f32 %v367_v8, %v366_v5 }
 0x113   :  { %v369_v14 = vadd.f32 %v368_v12, %v257_v10  ;;  %v371_v15 = vadd.f32 %v370_v9, %v361_v11 }
 0x115   :  { %372 = vst [vmem:[%s700_s2] sm:$0x1] %v371_v15  ;;  %v374_v16 = vadd.f32 %v373_v13, %v369_v14 }
 0x117   :  { %375 = vst [vmem:[%s701_s3] sm:$0x1] %v374_v16 }

// kernel: simclr_ts_forward.7
= control target key start
LH: loop header
LB: loop body
LE: loop exit
PB: predicated region body
PF: predicated region fallthrough
CT: control target
= control target key end

     0   :  { %vm61_vm0 = vcmask 1041408   ;;  %v553_v0 = vmov 0.0   ;;  %vm554_vm1 = vmmov 0   ;;  %vm57_vm2 = vcmask 31744   ;;  %s707_s1 = inlined_call_operand.vmem [shape: bf16[3,4,64], index: 1, kind: input, shape index: {}]   ;;  %s708_s0 = inlined_call_operand.vmem [shape: bf16[2,18,4], index: 0, kind: input, shape index: {}]   ;;  %s709_s4 = inlined_call_operand.vmem [shape: bf16[2,18,64], index: 4, kind: output, shape index: {}]   ;;  %s710_s2 = inlined_call_operand.vmem [shape: f32[1,64], index: 2, kind: input, shape index: {}]   ;;  %s711_s3 = inlined_call_operand.vmem [shape: f32[1,64], index: 3, kind: input, shape index: {}]  }
   0x1   :  { %516 = vmatprep.subr.bf16.mxu1 %v553_v0  ;;  %v26_v1 = vld [vmem:[%s707_s1] sm:$0x3]  ;;  %510 = vmatprep.subr.bf16.mxu0 %v553_v0  ;;  %v468_v2 = vld [vmem:[%s707_s1 + $0x2] sm:$0x3]  ;;  %v551_v7 = vld [vmem:[%s708_s0 + $0xc] sm:$0xff]   ;;  %vm152_vm4 = vcmask 1046528  }
   0x2   :  { %v109_v3 = vsel %vm61_vm0, %v26_v1, 0  ;;  %518 = vmatprep.mubr.msk.bf16.mxu1 %vm554_vm1, %v553_v0  ;;  %v63_v4 = vsel %vm61_vm0, %v468_v2, 0  ;;  %v549_v5 = vld [vmem:[%s708_s0] sm:$0xff]   ;;  %512 = vmatprep.mubr.msk.bf16.mxu0 %vm554_vm1, %v553_v0  ;;  %v550_v6 = vld [vmem:[%s708_s0 + $0x8] ss:$0 sps:$4 sm:$0x11]  }
   0x3   :  { %517 = vmatpush3.bf16.msra.mxu1 %v109_v3  ;;  %511 = vmatpush3.bf16.msra.mxu0 %v63_v4  ;;  %v46_v8 = vshrl.u32 %v549_v5, 16  ;;  %v48_v9 = vshll.u32 %v549_v5, 16  ;;  %v469_v10 = vld [vmem:[%s707_s1 + $0x4] sm:$0x3]  ;;  %v53_v11 = vshll.u32 %v550_v6, 16  ;;  %v277_v15 = vshrl.u32 %v551_v7, 16 }
   0x4   :  { %522 = vmatprep.subr.bf16.mxu0 %v553_v0  ;;  %528 = vmatprep.subr.bf16.mxu1 %v553_v0  ;;  %v552_v13 = vld [vmem:[%s708_s0 + $0x14] ss:$0 sps:$4 sm:$0x11]   ;;  %vm44_vm3 = vsmask.f32 7424  ;;  %v279_v16 = vshll.u32 %v551_v7, 16 }
   0x5   :  { %v50_v12 = vrot.slane %v48_v9, 1  ;;  %v55_v14 = vrot.slane %v53_v11, 1  ;;  %v284_v18 = vshll.u32 %v552_v13, 16  ;;  %v160_v19 = vsel %vm61_vm0, %v469_v10, 0  ;;  %v475_v44 = vld [vmem:[%s710_s2] ss:$0 sm:$0xff] }
   0x6   :  { %519 = vmatmul.mubr.msk.bf16.vlgmr.msra.gmra.mxu1 %vm57_vm2, %v549_v5  ;;  %v281_v20 = vrot.slane %v279_v16, 1  ;;  %v153_v24 = vrot.slane %v549_v5, 1  ;;  %v154_v25 = vrot.slane %v550_v6, 1  ;;  %v375_v27 = vrot.slane %v551_v7, 1  ;;  %v476_v48 = vld [vmem:[%s711_s3] ss:$0 sm:$0xff] }
   0x7   :  { %529 = vmatpush3.bf16.msra.mxu1 %v63_v4  ;;  %530 = vmatprep.mubr.msk.bf16.mxu1 %vm554_vm1, %v553_v0  ;;  %v51_v17 = vor.u32 %v50_v12, %v46_v8  ;;  %v286_v22 = vrot.slane %v284_v18, 1  ;;  %v376_v28 = vrot.slane %v552_v13, 1  ;;  %vm18_vm5 = vcmask 519168  }
   0x8   :  { %540 = vmatprep.subr.bf16.mxu1 %v553_v0  ;;  %v282_v23 = vor.u32 %v281_v20, %v277_v15  ;;  %v155_v29 = vsel %vm152_vm4, %v153_v24, %v154_v25  ;;  %v555_v31 = vmov 0   ;;  %vm21_vm6 = vcmask 516096  }
   0x9   :  { %v56_v21 = vsel %vm44_vm3, %v51_v17, %v55_v14  ;;  %v377_v30 = vsel %vm152_vm4, %v375_v27, %v376_v28  ;;  %19 = vst.msk [vmem:[%s709_s4] sm:$0xf] %vm18_vm5, %v555_v31  ;;  %20 = vst.msk [vmem:[%s709_s4 + $0x4] sm:$0xf] %vm18_vm5, %v555_v31  ;;  %vm253_vm7 = vsmask.f32 7938 }
   0xa   :  { %513 = vmatmul.mubr.msk.bf16.vlgmr.msra.gmra.mxu0 %vm57_vm2, %v56_v21  ;;  %v287_v26 = vsel %vm44_vm3, %v282_v23, %v286_v22  ;;  %23 = vst.msk [vmem:[%s709_s4 + $0xc] sm:$0xf] %vm18_vm5, %v555_v31  ;;  %24 = vst.msk [vmem:[%s709_s4 + $0x10] sm:$0xf] %vm18_vm5, %v555_v31  ;;  %vm229_vm9 = vsmask.f32 256 }
   0xb   :  { %523 = vmatpush3.bf16.msra.mxu0 %v160_v19  ;;  %524 = vmatprep.mubr.msk.bf16.mxu0 %vm554_vm1, %v553_v0  ;;  %22 = vst.msk [vmem:[%s709_s4 + $0x8] sm:$0x1] %vm21_vm6, %v555_v31  ;;  %25 = vst.msk [vmem:[%s709_s4 + $0x14] sm:$0x1] %vm21_vm6, %v555_v31  ;;  %vm230_vm10 = vsmask.f32 4368 }
   0xc   :  { %534 = vmatprep.subr.bf16.mxu0 %v553_v0  ;;  %vm650_vm8 = vmand %vm18_vm5, %vm253_vm7 }
   0xd   :  { %vm659_vm11 = vmor %vm229_vm9, %vm230_vm10 }
   0xe   :  { %531 = vmatmul.mubr.msk.bf16.vlgmr.msra.gmra.mxu1 %vm57_vm2, %v287_v26  ;;  %vm667_vm12 = vmand %vm21_vm6, %vm229_vm9 }
   0xf   :  { %541 = vmatpush3.bf16.msra.mxu1 %v160_v19  ;;  %542 = vmatprep.mubr.msk.bf16.mxu1 %vm554_vm1, %v553_v0 }
  0x10   :  { %v255_v13 = vld [vmem:[%s709_s4] sm:$0xf] }
  0x12   :  { %525 = vmatmul.mubr.msk.bf16.vlgmr.msra.gmra.mxu0 %vm57_vm2, %v155_v29  ;;  %v261_v24 = vld [vmem:[%s709_s4 + $0x8] sm:$0x1] }
  0x13   :  { %535 = vmatpush3.bf16.msra.mxu0 %v109_v3  ;;  %536 = vmatprep.mubr.msk.bf16.mxu0 %vm554_vm1, %v553_v0 }
  0x16   :  { %543 = vmatmul.mubr.msk.bf16.vlgmr.msra.gmra.mxu1 %vm57_vm2, %v377_v30 }
  0x1a   :  { %537 = vmatmul.mubr.msk.bf16.vlgmr.msra.gmra.mxu0 %vm57_vm2, %v551_v7 }
  0xc6   :  { %v145_v32 = vpop.f32.mrf.mxu1 }
  0xc8   :  { %v520_v33 = vpop.f32.mrf.mxu1 }
  0xca   :  { %v148_v34 = vpop.f32.mrf.mxu1  ;;  %v99_v35 = vpop.f32.mrf.mxu0 }
  0xcb   :  { %v146_v42 = vadd.f32 %v145_v32, %v99_v35 }
  0xcc   :  { %v521_v36 = vpop.f32.mrf.mxu1  ;;  %v514_v37 = vpop.f32.mrf.mxu0 }
  0xce   :  { %v325_v38 = vpop.f32.mrf.mxu1  ;;  %v102_v39 = vpop.f32.mrf.mxu0 }
  0xcf   :  { %v149_v50 = vadd.f32 %v148_v34, %v102_v39  ;;  %v489_v39 = vld [vmem:[%s709_s4 + $0xc] sm:$0xf] }
  0xd0   :  { %v532_v40 = vpop.f32.mrf.mxu1  ;;  %v515_v41 = vpop.f32.mrf.mxu0 }
  0xd2   :  { %v328_v43 = vpop.f32.mrf.mxu1  ;;  %v196_v45 = vpop.f32.mrf.mxu0 }
  0xd3   :  { %v203_v46 = vadd.f32 %v196_v45, %v146_v42  ;;  %v492_v45 = vld [vmem:[%s709_s4 + $0x14] sm:$0x1] }
  0xd4   :  { %v533_v47 = vpop.f32.mrf.mxu1  ;;  %v526_v49 = vpop.f32.mrf.mxu0 }
  0xd5   :  { %v211_v51 = vmul.f32 %v475_v44, %v203_v46 }
  0xd6   :  { %v415_v52 = vpop.f32.mrf.mxu1  ;;  %v199_v53 = vpop.f32.mrf.mxu0 }
  0xd7   :  { %v219_v54 = vadd.f32 %v476_v48, %v211_v51  ;;  %v204_v55 = vadd.f32 %v199_v53, %v149_v50 }
  0xd8   :  { %v544_v56 = vpop.f32.mrf.mxu1  ;;  %v527_v57 = vpop.f32.mrf.mxu0 }
  0xd9   :  { %v221_v58 = vmax.f32 %v219_v54, 0.0  ;;  %v212_v59 = vmul.f32 %v475_v44, %v204_v55 }
  0xda   :  { %v418_v60 = vpop.f32.mrf.mxu1  ;;  %v368_v61 = vpop.f32.mrf.mxu0 }
  0xdb   :  { %v494_v62 = vpack.c.bf16 %v221_v58, %v221_v58  ;;  %v220_v63 = vadd.f32 %v476_v48, %v212_v59  ;;  %v369_v0 = vadd.f32 %v368_v61, %v325_v38 }
  0xdc   :  { %v545_v1 = vpop.f32.mrf.mxu1  ;;  %v538_v2 = vpop.f32.mrf.mxu0 }
  0xdd   :  { %v233_v3 = vshrl.u32 %v494_v62, 16  ;;  %v222_v4 = vmax.f32 %v220_v63, 0.0  ;;  %v422_v5 = vadd.f32 %v415_v52, %v369_v0  ;;  %v236_v6 = vshll.u32 %v494_v62, 16 }
  0xde   :  { %v371_v7 = vpop.f32.mrf.mxu0 }
  0xdf   :  { %v235_v8 = vrot.slane %v233_v3, 7  ;;  %v495_v9 = vpack.c.bf16 %v222_v4, %v222_v4  ;;  %v424_v10 = vmul.f32 %v475_v44, %v422_v5  ;;  %v372_v11 = vadd.f32 %v371_v7, %v328_v43 }
  0xe0   :  { %v539_v14 = vpop.f32.mrf.mxu0 }
  0xe1   :  { %v238_v15 = vor.u32 %v236_v6, %v235_v8  ;;  %v241_v16 = vshrl.u32 %v495_v9, 16  ;;  %v426_v17 = vadd.f32 %v476_v48, %v424_v10  ;;  %v423_v18 = vadd.f32 %v418_v60, %v372_v11 }
  0xe2   :  { %v244_v22 = vshll.u32 %v495_v9, 16  ;;  %v239_v27 = vrot.slane %v235_v8, 4 }
  0xe3   :  { %v256_v19 = vsel %vm650_vm8, %v238_v15, %v255_v13  ;;  %v243_v21 = vrot.slane %v241_v16, 7  ;;  %v428_v25 = vmax.f32 %v426_v17, 0.0  ;;  %v425_v26 = vmul.f32 %v475_v44, %v423_v18 }
  0xe4   :  { %257 = vst [vmem:[%s709_s4] sm:$0xf] %v256_v19 }
  0xe5   :  { %v246_v28 = vor.u32 %v244_v22, %v243_v21  ;;  %v248_v29 = vrot.slane %v243_v21, 4  ;;  %v496_v30 = vpack.c.bf16 %v428_v25, %v428_v25  ;;  %v427_v31 = vadd.f32 %v476_v48, %v425_v26 }
  0xe7   :  { %v247_v32 = vsel %vm659_vm11, %v239_v27, %v246_v28  ;;  %v262_v33 = vsel %vm667_vm12, %v248_v29, %v261_v24  ;;  %v437_v34 = vshrl.u32 %v496_v30, 16  ;;  %v429_v35 = vmax.f32 %v427_v31, 0.0 }
  0xe8   :  { %258 = vst.msk [vmem:[%s709_s4 + $0x4] sm:$0xf] %vm18_vm5, %v247_v32  ;;  %263 = vst [vmem:[%s709_s4 + $0x8] sm:$0x1] %v262_v33  ;;  %v440_v37 = vshll.u32 %v496_v30, 16 }
  0xe9   :  { %v439_v36 = vrot.slane %v437_v34, 7  ;;  %v497_v38 = vpack.c.bf16 %v429_v35, %v429_v35 }
  0xeb   :  { %v442_v40 = vor.u32 %v440_v37, %v439_v36  ;;  %v445_v41 = vshrl.u32 %v497_v38, 16  ;;  %v448_v44 = vshll.u32 %v497_v38, 16  ;;  %v443_v46 = vrot.slane %v439_v36, 4 }
  0xed   :  { %v458_v42 = vsel %vm650_vm8, %v442_v40, %v489_v39  ;;  %v447_v43 = vrot.slane %v445_v41, 7 }
  0xee   :  { %490 = vst [vmem:[%s709_s4 + $0xc] sm:$0xf] %v458_v42 }
  0xef   :  { %v450_v47 = vor.u32 %v448_v44, %v447_v43  ;;  %v452_v48 = vrot.slane %v447_v43, 4 }
  0xf1   :  { %v451_v49 = vsel %vm659_vm11, %v443_v46, %v450_v47  ;;  %v462_v50 = vsel %vm667_vm12, %v452_v48, %v492_v45 }
  0xf2   :  { %491 = vst.msk [vmem:[%s709_s4 + $0x10] sm:$0xf] %vm18_vm5, %v451_v49  ;;  %493 = vst [vmem:[%s709_s4 + $0x14] sm:$0x1] %v462_v50 }

// kernel: simclr_ts_forward.9
= control target key start
LH: loop header
LB: loop body
LE: loop exit
PB: predicated region body
PF: predicated region fallthrough
CT: control target
= control target key end

     0   :  { %v596_v0 = vmov 0.0   ;;  %vm597_vm0 = vmmov 0   ;;  %v598_v31 = vmov 0   ;;  %vm277_vm1 = vcmask 1043456   ;;  %s782_s1 = inlined_call_operand.vmem [shape: bf16[2,128,128], index: 1, kind: input, shape index: {}]   ;;  %s783_s0 = inlined_call_operand.vmem [shape: bf16[2,9,128], index: 0, kind: input, shape index: {}]   ;;  %s784_s4 = inlined_call_operand.vmem [shape: bf16[2,10,128], index: 4, kind: output, shape index: {}]   ;;  %s785_s2 = inlined_call_operand.vmem [shape: f32[1,128], index: 2, kind: input, shape index: {}]   ;;  %s786_s3 = inlined_call_operand.vmem [shape: f32[1,128], index: 3, kind: input, shape index: {}]  }
   0x1   :  { %495 = vmatprep.subr.bf16.mxu0 %v596_v0  ;;  %515 = vmatprep.subr.bf16.mxu1 %v596_v0  ;;  %v578_v1 = vld [vmem:[%s782_s1 + $0x78] sm:$0xff]   ;;  %v580_v3 = vld [vmem:[%s782_s1 + $0x70] sm:$0xff]   ;;  %v582_v5 = vld [vmem:[%s782_s1 + $0x68] sm:$0xff]   ;;  %18 = vst [vmem:[%s784_s4] sm:$0xf] %v598_v31  ;;  %vm278_vm2 = vsmask.f32 7938 }
   0x2   :  { %v579_v2 = vld [vmem:[%s782_s1 + $0x38] sm:$0xff]   ;;  %511 = vmatprep.mubr.msk.bf16.mxu0 %vm597_vm0, %v596_v0  ;;  %531 = vmatprep.mubr.msk.bf16.mxu1 %vm597_vm0, %v596_v0  ;;  %v581_v4 = vld [vmem:[%s782_s1 + $0x30] sm:$0xff]   ;;  %v583_v6 = vld [vmem:[%s782_s1 + $0x28] sm:$0xff]   ;;  %19 = vst [vmem:[%s784_s4 + $0x4] sm:$0x1] %v598_v31  ;;  %vm283_vm3 = vcmask 1040384  }
   0x3   :  { %496 = vmatpush3.bf16.msra.mxu0 %v578_v1  ;;  %516 = vmatpush3.bf16.msra.mxu1 %v579_v2  ;;  %v584_v7 = vld [vmem:[%s782_s1 + $0x60] sm:$0xff]   ;;  %v586_v9 = vld [vmem:[%s782_s1 + $0x58] sm:$0xff]   ;;  %v588_v14 = vld [vmem:[%s782_s1 + $0x50] sm:$0xff]   ;;  %20 = vst [vmem:[%s784_s4 + $0x8] sm:$0xf] %v598_v31 }
   0x4   :  { %497 = vmatprep.subr.bf16.mxu0 %v596_v0  ;;  %517 = vmatprep.subr.bf16.mxu1 %v596_v0  ;;  %v585_v8 = vld [vmem:[%s782_s1 + $0x20] sm:$0xff]   ;;  %v587_v10 = vld [vmem:[%s782_s1 + $0x18] sm:$0xff]   ;;  %v589_v15 = vld [vmem:[%s782_s1 + $0x10] sm:$0xff]   ;;  %21 = vst [vmem:[%s784_s4 + $0xc] sm:$0x1] %v598_v31 }
   0x5   :  { %v57_v11 = vld [vmem:[%s783_s0] sm:$0xf]  ;;  %v58_v12 = vld [vmem:[%s783_s0 + $0x4] sm:$0x1]  ;;  %v590_v17 = vld [vmem:[%s782_s1 + $0x48] sm:$0xff]  }
   0x6   :  { %v429_v13 = vcombine.low %v57_v11, %v58_v12  ;;  %v591_v18 = vld [vmem:[%s782_s1 + $0x8] sm:$0xff]   ;;  %v592_v21 = vld [vmem:[%s782_s1 + $0x40] sm:$0xff]   ;;  %vm284_vm4 = vsmask.f32 256  ;;  %vm742_vm5 = vmand %vm277_vm1, %vm278_vm2 }
   0x7   :  { %498 = vmatpush3.bf16.msra.mxu0 %v580_v3  ;;  %518 = vmatpush3.bf16.msra.mxu1 %v581_v4  ;;  %v593_v22 = vld [vmem:[%s782_s1] sm:$0xff]   ;;  %v449_v24 = vld [vmem:[%s783_s0 + $0x8] sm:$0xf]  ;;  %v450_v25 = vld [vmem:[%s783_s0 + $0xc] sm:$0x1] }
   0x8   :  { %499 = vmatprep.subr.bf16.mxu0 %v596_v0  ;;  %519 = vmatprep.subr.bf16.mxu1 %v596_v0  ;;  %v67_v16 = vshll.u32 %v429_v13, 16  ;;  %v65_v19 = vshrl.u32 %v429_v13, 16  ;;  %v451_v26 = vcombine.low %v449_v24, %v450_v25  ;;  %v446_v33 = vld [vmem:[%s785_s2] ss:$0 sm:$0xff]  ;;  %vm749_vm6 = vmand %vm283_vm3, %vm284_vm4 }
   0x9   :  { %v447_v37 = vld [vmem:[%s786_s3] ss:$0 sm:$0xff]  ;;  %v286_v53 = vld [vmem:[%s784_s4 + $0x4] sm:$0x1] }
   0xa   :  { %v69_v20 = vrot.slane %v67_v16, 1  ;;  %v300_v27 = vshll.u32 %v451_v26, 16  ;;  %v298_v28 = vshrl.u32 %v451_v26, 16  ;;  %v280_v51 = vld [vmem:[%s784_s4] sm:$0xf] }
   0xb   :  { %500 = vmatpush3.bf16.msra.mxu0 %v582_v5  ;;  %520 = vmatpush3.bf16.msra.mxu1 %v583_v6 }
   0xc   :  { %501 = vmatprep.subr.bf16.mxu0 %v596_v0  ;;  %521 = vmatprep.subr.bf16.mxu1 %v596_v0  ;;  %v70_v23 = vor.u32 %v69_v20, %v65_v19  ;;  %v302_v29 = vrot.slane %v300_v27, 1 }
   0xe   :  { %v303_v30 = vor.u32 %v302_v29, %v298_v28 }
   0xf   :  { %502 = vmatpush3.bf16.msra.mxu0 %v584_v7  ;;  %522 = vmatpush3.bf16.msra.mxu1 %v585_v8 }
  0x10   :  { %503 = vmatprep.subr.bf16.mxu0 %v596_v0  ;;  %523 = vmatprep.subr.bf16.mxu1 %v596_v0 }
  0x13   :  { %504 = vmatpush3.bf16.msra.mxu0 %v586_v9  ;;  %524 = vmatpush3.bf16.msra.mxu1 %v587_v10 }
  0x14   :  { %505 = vmatprep.subr.bf16.mxu0 %v596_v0  ;;  %525 = vmatprep.subr.bf16.mxu1 %v596_v0 }
  0x17   :  { %506 = vmatpush3.bf16.msra.mxu0 %v588_v14  ;;  %526 = vmatpush3.bf16.msra.mxu1 %v589_v15 }
  0x18   :  { %507 = vmatprep.subr.bf16.mxu0 %v596_v0  ;;  %527 = vmatprep.subr.bf16.mxu1 %v596_v0 }
  0x1b   :  { %508 = vmatpush3.bf16.msra.mxu0 %v590_v17  ;;  %528 = vmatpush3.bf16.msra.mxu1 %v591_v18 }
  0x1c   :  { %509 = vmatprep.subr.bf16.mxu0 %v596_v0  ;;  %529 = vmatprep.subr.bf16.mxu1 %v596_v0 }
  0x1f   :  { %510 = vmatpush3.bf16.msra.mxu0 %v592_v21  ;;  %530 = vmatpush3.bf16.msra.mxu1 %v593_v22 }
  0x20   :  { %535 = vmatprep.subr.bf16.mxu0 %v596_v0  ;;  %555 = vmatprep.subr.bf16.mxu1 %v596_v0 }
  0x22   :  { %512 = vmatmul.mubr.bf16.vlgmr.msra.gmra.mxu0 %v70_v23  ;;  %532 = vmatmul.mubr.bf16.vlgmr.msra.gmra.mxu1 %v57_v11  ;;  %v455_v11 = vld [vmem:[%s784_s4 + $0xc] sm:$0x1] }
  0x23   :  { %536 = vmatpush3.bf16.msra.mxu0 %v578_v1  ;;  %556 = vmatpush3.bf16.msra.mxu1 %v579_v2 }
  0x24   :  { %537 = vmatprep.subr.bf16.mxu0 %v596_v0  ;;  %557 = vmatprep.subr.bf16.mxu1 %v596_v0 }
  0x25   :  { %551 = vmatprep.mubr.msk.bf16.mxu0 %vm597_vm0, %v596_v0  ;;  %571 = vmatprep.mubr.msk.bf16.mxu1 %vm597_vm0, %v596_v0 }
  0x27   :  { %538 = vmatpush3.bf16.msra.mxu0 %v580_v3  ;;  %558 = vmatpush3.bf16.msra.mxu1 %v581_v4 }
  0x28   :  { %539 = vmatprep.subr.bf16.mxu0 %v596_v0  ;;  %559 = vmatprep.subr.bf16.mxu1 %v596_v0 }
  0x2b   :  { %540 = vmatpush3.bf16.msra.mxu0 %v582_v5  ;;  %560 = vmatpush3.bf16.msra.mxu1 %v583_v6 }
  0x2c   :  { %541 = vmatprep.subr.bf16.mxu0 %v596_v0  ;;  %561 = vmatprep.subr.bf16.mxu1 %v596_v0 }
  0x2f   :  { %542 = vmatpush3.bf16.msra.mxu0 %v584_v7  ;;  %562 = vmatpush3.bf16.msra.mxu1 %v585_v8 }
  0x30   :  { %543 = vmatprep.subr.bf16.mxu0 %v596_v0  ;;  %563 = vmatprep.subr.bf16.mxu1 %v596_v0 }
  0x33   :  { %544 = vmatpush3.bf16.msra.mxu0 %v586_v9  ;;  %564 = vmatpush3.bf16.msra.mxu1 %v587_v10  ;;  %v453_v10 = vld [vmem:[%s784_s4 + $0x8] sm:$0xf] }
  0x34   :  { %545 = vmatprep.subr.bf16.mxu0 %v596_v0  ;;  %565 = vmatprep.subr.bf16.mxu1 %v596_v0 }
  0x37   :  { %546 = vmatpush3.bf16.msra.mxu0 %v588_v14  ;;  %566 = vmatpush3.bf16.msra.mxu1 %v589_v15 }
  0x38   :  { %547 = vmatprep.subr.bf16.mxu0 %v596_v0  ;;  %567 = vmatprep.subr.bf16.mxu1 %v596_v0 }
  0x3b   :  { %548 = vmatpush3.bf16.msra.mxu0 %v590_v17  ;;  %568 = vmatpush3.bf16.msra.mxu1 %v591_v18 }
  0x3c   :  { %549 = vmatprep.subr.bf16.mxu0 %v596_v0  ;;  %569 = vmatprep.subr.bf16.mxu1 %v596_v0 }
  0x3f   :  { %550 = vmatpush3.bf16.msra.mxu0 %v592_v21  ;;  %570 = vmatpush3.bf16.msra.mxu1 %v593_v22 }
  0x42   :  { %552 = vmatmul.mubr.bf16.vlgmr.msra.gmra.mxu0 %v303_v30  ;;  %572 = vmatmul.mubr.bf16.vlgmr.msra.gmra.mxu1 %v449_v24 }
  0xe2   :  { %v154_v32 = vpop.f32.mrf.mxu0  ;;  %v242_v34 = vpop.f32.mrf.mxu1 }
  0xe3   :  { %v243_v35 = vadd.f32 %v242_v34, %v154_v32 }
  0xe4   :  { %v513_v36 = vpop.f32.mrf.mxu0  ;;  %v533_v38 = vpop.f32.mrf.mxu1 }
  0xe5   :  { %v254_v39 = vmul.f32 %v446_v33, %v243_v35 }
  0xe6   :  { %v157_v40 = vpop.f32.mrf.mxu0  ;;  %v245_v41 = vpop.f32.mrf.mxu1 }
  0xe7   :  { %v261_v42 = vadd.f32 %v447_v37, %v254_v39 }
  0xe8   :  { %v514_v43 = vpop.f32.mrf.mxu0  ;;  %v534_v44 = vpop.f32.mrf.mxu1 }
  0xe9   :  { %v262_v45 = vmax.f32 %v261_v42, 0.0 }
  0xeb   :  { %v457_v46 = vpack.c.bf16 %v262_v45, %v262_v45 }
  0xed   :  { %v268_v47 = vshrl.u32 %v457_v46, 16  ;;  %v271_v48 = vshll.u32 %v457_v46, 16 }
  0xef   :  { %v270_v49 = vrot.slane %v268_v47, 7 }
  0xf1   :  { %v273_v54 = vor.u32 %v271_v48, %v270_v49  ;;  %v274_v55 = vrot.slane %v270_v49, 4 }
  0xf3   :  { %v281_v56 = vsel %vm742_vm5, %v273_v54, %v280_v51  ;;  %v287_v57 = vsel %vm749_vm6, %v274_v55, %v286_v53 }
  0xf4   :  { %282 = vst [vmem:[%s784_s4] sm:$0xf] %v281_v56  ;;  %288 = vst [vmem:[%s784_s4 + $0x4] sm:$0x1] %v287_v57 }
 0x102   :  { %v339_v58 = vpop.f32.mrf.mxu0  ;;  %v379_v59 = vpop.f32.mrf.mxu1 }
 0x103   :  { %v380_v60 = vadd.f32 %v379_v59, %v339_v58 }
 0x104   :  { %v553_v61 = vpop.f32.mrf.mxu0  ;;  %v573_v62 = vpop.f32.mrf.mxu1 }
 0x105   :  { %v385_v63 = vmul.f32 %v446_v33, %v380_v60 }
 0x106   :  { %v342_v0 = vpop.f32.mrf.mxu0  ;;  %v382_v1 = vpop.f32.mrf.mxu1 }
 0x107   :  { %v386_v2 = vadd.f32 %v447_v37, %v385_v63 }
 0x108   :  { %v554_v3 = vpop.f32.mrf.mxu0  ;;  %v574_v4 = vpop.f32.mrf.mxu1 }
 0x109   :  { %v387_v5 = vmax.f32 %v386_v2, 0.0 }
 0x10b   :  { %v458_v6 = vpack.c.bf16 %v387_v5, %v387_v5 }
 0x10d   :  { %v393_v7 = vshrl.u32 %v458_v6, 16  ;;  %v396_v9 = vshll.u32 %v458_v6, 16 }
 0x10f   :  { %v395_v8 = vrot.slane %v393_v7, 7 }
 0x111   :  { %v398_v12 = vor.u32 %v396_v9, %v395_v8  ;;  %v399_v13 = vrot.slane %v395_v8, 4 }
 0x113   :  { %v404_v14 = vsel %vm742_vm5, %v398_v12, %v453_v10  ;;  %v407_v15 = vsel %vm749_vm6, %v399_v13, %v455_v11 }
 0x114   :  { %454 = vst [vmem:[%s784_s4 + $0x8] sm:$0xf] %v404_v14  ;;  %456 = vst [vmem:[%s784_s4 + $0xc] sm:$0x1] %v407_v15 }

// kernel: simclr_ts_forward.10
= control target key start
LH: loop header
LB: loop body
LE: loop exit
PB: predicated region body
PF: predicated region fallthrough
CT: control target
= control target key end

     0   :  { %vm514_vm1 = vcmask 1043456   ;;  %s1469_s1 = inlined_call_operand.vmem [shape: bf16[2,256,256], index: 1, kind: input, shape index: {}]   ;;  %s1470_s0 = inlined_call_operand.vmem [shape: bf16[2,5,256], index: 0, kind: input, shape index: {}]   ;;  %s1471_s2 = inlined_call_operand.vmem [shape: f32[1,256], index: 2, kind: output, shape index: {0}]   ;;  %s1472_s3 = inlined_call_operand.vmem [shape: f32[1,256], index: 3, kind: output, shape index: {1}]  }
   0x1   :  { %v972_v0 = vld [vmem:[%s1469_s1 + $0x174] ss:$8 sps:$4 sm:$0xff]   ;;  %v983_v2 = vld [vmem:[%s1469_s1 + $0x170] ss:$8 sps:$4 sm:$0xff]   ;;  %v994_v4 = vld [vmem:[%s1469_s1 + $0x164] ss:$8 sps:$4 sm:$0xff]  }
   0x2   :  { %v977_v1 = vld [vmem:[%s1469_s1 + $0x74] ss:$8 sps:$4 sm:$0xff]   ;;  %270 = vmatprep.subr.bf16.mxu0 %v972_v0  ;;  %v988_v3 = vld [vmem:[%s1469_s1 + $0x70] ss:$8 sps:$4 sm:$0xff]   ;;  %v1001_v5 = vld [vmem:[%s1469_s1 + $0x64] ss:$8 sps:$4 sm:$0xff]  }
   0x3   :  { %473 = vmatprep.subr.bf16.mxu1 %v977_v1  ;;  %271 = vmatpush1.bf16.msra.mxu0 %v983_v2  ;;  %v1006_v6 = vld [vmem:[%s1469_s1 + $0x160] ss:$8 sps:$4 sm:$0xff]   ;;  %v1018_v8 = vld [vmem:[%s1469_s1 + $0x154] ss:$8 sps:$4 sm:$0xff]   ;;  %v1028_v10 = vld [vmem:[%s1469_s1 + $0x150] ss:$8 sps:$4 sm:$0xff]  }
   0x4   :  { %474 = vmatpush1.bf16.msra.mxu1 %v988_v3  ;;  %272 = vmatprep.subr.bf16.mxu0 %v994_v4  ;;  %v1012_v7 = vld [vmem:[%s1469_s1 + $0x60] ss:$8 sps:$4 sm:$0xff]   ;;  %v1023_v9 = vld [vmem:[%s1469_s1 + $0x54] ss:$8 sps:$4 sm:$0xff]   ;;  %v1033_v11 = vld [vmem:[%s1469_s1 + $0x50] ss:$8 sps:$4 sm:$0xff]  }
   0x5   :  { %475 = vmatprep.subr.bf16.mxu1 %v1001_v5  ;;  %v1040_v12 = vld [vmem:[%s1469_s1 + $0x144] ss:$8 sps:$4 sm:$0xff]   ;;  %v1052_v14 = vld [vmem:[%s1469_s1 + $0x140] ss:$8 sps:$4 sm:$0xff]   ;;  %v1064_v16 = vld [vmem:[%s1469_s1 + $0x134] ss:$8 sps:$4 sm:$0xff]  }
   0x6   :  { %v1047_v13 = vld [vmem:[%s1469_s1 + $0x44] ss:$8 sps:$4 sm:$0xff]   ;;  %v1059_v15 = vld [vmem:[%s1469_s1 + $0x40] ss:$8 sps:$4 sm:$0xff]   ;;  %v1071_v17 = vld [vmem:[%s1469_s1 + $0x34] ss:$8 sps:$4 sm:$0xff]  }
   0x7   :  { %273 = vmatpush1.bf16.msra.mxu0 %v1006_v6  ;;  %v1076_v18 = vld [vmem:[%s1469_s1 + $0x130] ss:$8 sps:$4 sm:$0xff]   ;;  %v1088_v20 = vld [vmem:[%s1469_s1 + $0x124] ss:$8 sps:$4 sm:$0xff]   ;;  %v1100_v22 = vld [vmem:[%s1469_s1 + $0x120] ss:$8 sps:$4 sm:$0xff]  }
   0x8   :  { %476 = vmatpush1.bf16.msra.mxu1 %v1012_v7  ;;  %274 = vmatprep.subr.bf16.mxu0 %v1018_v8  ;;  %v1081_v19 = vld [vmem:[%s1469_s1 + $0x30] ss:$8 sps:$4 sm:$0xff]   ;;  %v1095_v21 = vld [vmem:[%s1469_s1 + $0x24] ss:$8 sps:$4 sm:$0xff]   ;;  %v1107_v23 = vld [vmem:[%s1469_s1 + $0x20] ss:$8 sps:$4 sm:$0xff]  }
   0x9   :  { %477 = vmatprep.subr.bf16.mxu1 %v1023_v9  ;;  %v1112_v24 = vld [vmem:[%s1469_s1 + $0x114] ss:$8 sps:$4 sm:$0xff]   ;;  %v1124_v26 = vld [vmem:[%s1469_s1 + $0x110] ss:$8 sps:$4 sm:$0xff]   ;;  %v1136_v28 = vld [vmem:[%s1469_s1 + $0x104] ss:$8 sps:$4 sm:$0xff]  }
   0xa   :  { %v1119_v25 = vld [vmem:[%s1469_s1 + $0x14] ss:$8 sps:$4 sm:$0xff]   ;;  %v1129_v27 = vld [vmem:[%s1469_s1 + $0x10] ss:$8 sps:$4 sm:$0xff]   ;;  %v1143_v29 = vld [vmem:[%s1469_s1 + $0x4] ss:$8 sps:$4 sm:$0xff]  }
   0xb   :  { %275 = vmatpush1.bf16.msra.mxu0 %v1028_v10  ;;  %v1148_v30 = vld [vmem:[%s1469_s1 + $0x100] ss:$8 sps:$4 sm:$0xff]   ;;  %v1160_v32 = vld [vmem:[%s1469_s1 + $0x1f4] ss:$8 sps:$4 sm:$0xff]   ;;  %v1172_v34 = vld [vmem:[%s1469_s1 + $0x1f0] ss:$8 sps:$4 sm:$0xff]  }
   0xc   :  { %478 = vmatpush1.bf16.msra.mxu1 %v1033_v11  ;;  %276 = vmatprep.subr.bf16.mxu0 %v1040_v12  ;;  %v1155_v31 = vld [vmem:[%s1469_s1] ss:$8 sps:$4 sm:$0xff]   ;;  %v1167_v33 = vld [vmem:[%s1469_s1 + $0xf4] ss:$8 sps:$4 sm:$0xff]   ;;  %v1177_v35 = vld [vmem:[%s1469_s1 + $0xf0] ss:$8 sps:$4 sm:$0xff]  }
   0xd   :  { %479 = vmatprep.subr.bf16.mxu1 %v1047_v13  ;;  %v1184_v36 = vld [vmem:[%s1469_s1 + $0x1e4] ss:$8 sps:$4 sm:$0xff]   ;;  %v1196_v38 = vld [vmem:[%s1469_s1 + $0x1e0] ss:$8 sps:$4 sm:$0xff]   ;;  %v1208_v40 = vld [vmem:[%s1469_s1 + $0x1d4] ss:$8 sps:$4 sm:$0xff]  }
   0xe   :  { %v1191_v37 = vld [vmem:[%s1469_s1 + $0xe4] ss:$8 sps:$4 sm:$0xff]   ;;  %v1203_v39 = vld [vmem:[%s1469_s1 + $0xe0] ss:$8 sps:$4 sm:$0xff]   ;;  %v1215_v41 = vld [vmem:[%s1469_s1 + $0xd4] ss:$8 sps:$4 sm:$0xff]  }
   0xf   :  { %277 = vmatpush1.bf16.msra.mxu0 %v1052_v14  ;;  %v1220_v42 = vld [vmem:[%s1469_s1 + $0x1d0] ss:$8 sps:$4 sm:$0xff]   ;;  %v1232_v44 = vld [vmem:[%s1469_s1 + $0x1c4] ss:$8 sps:$4 sm:$0xff]   ;;  %v1249_v48 = vld [vmem:[%s1469_s1 + $0x1c0] ss:$8 sps:$4 sm:$0xff]  }
  0x10   :  { %480 = vmatpush1.bf16.msra.mxu1 %v1059_v15  ;;  %278 = vmatprep.subr.bf16.mxu0 %v1064_v16  ;;  %v1225_v43 = vld [vmem:[%s1469_s1 + $0xd0] ss:$8 sps:$4 sm:$0xff]   ;;  %v1239_v45 = vld [vmem:[%s1469_s1 + $0xc4] ss:$8 sps:$4 sm:$0xff]   ;;  %v1254_v49 = vld [vmem:[%s1469_s1 + $0xc0] ss:$8 sps:$4 sm:$0xff]  }
  0x11   :  { %481 = vmatprep.subr.bf16.mxu1 %v1071_v17  ;;  %v88_v46 = vld [vmem:[%s1470_s0] sm:$0x77]  ;;  %v1261_v50 = vld [vmem:[%s1469_s1 + $0x1b4] ss:$8 sps:$4 sm:$0xff]   ;;  %v1273_v55 = vld [vmem:[%s1469_s1 + $0x1b0] ss:$8 sps:$4 sm:$0xff]  }
  0x12   :  { %v777_v47 = vcombine.high %v88_v46, %v88_v46  ;;  %v1266_v51 = vld [vmem:[%s1469_s1 + $0xb4] ss:$8 sps:$4 sm:$0xff]   ;;  %1483 = vst [vmem:[#allocation2_spill] sm:$0xff] %v1273_v55  ;;  %v1278_v56 = vld [vmem:[%s1469_s1 + $0xb0] ss:$8 sps:$4 sm:$0xff]   ;;  %v776_v60 = vcombine.low %v88_v46, %v88_v46 }
  0x13   :  { %279 = vmatpush1.bf16.msra.mxu0 %v1076_v18  ;;  %1484 = vst [vmem:[#allocation3_spill] sm:$0xff] %v1278_v56  ;;  %v1285_v57 = vld [vmem:[%s1469_s1 + $0x1a4] ss:$8 sps:$4 sm:$0xff]   ;;  %v1302_v62 = vld [vmem:[%s1469_s1 + $0x1a0] ss:$8 sps:$4 sm:$0xff]  }
  0x14   :  { %482 = vmatpush1.bf16.msra.mxu1 %v1081_v19  ;;  %280 = vmatprep.subr.bf16.mxu0 %v1088_v20  ;;  %v102_v52 = vshrl.u32 %v777_v47, 16  ;;  %v104_v53 = vshll.u32 %v777_v47, 16  ;;  %1485 = vst [vmem:[#allocation4_spill] sm:$0xff] %v1285_v57  ;;  %v1290_v58 = vld [vmem:[%s1469_s1 + $0xa4] ss:$8 sps:$4 sm:$0xff]   ;;  %1488 = vst [vmem:[#allocation7_spill] sm:$0xff] %v1302_v62 }
  0x15   :  { %483 = vmatprep.subr.bf16.mxu1 %v1095_v21  ;;  %505 = vmatprep.mubr.bf16.mxu1 %v777_v47  ;;  %1486 = vst [vmem:[#allocation5_spill] sm:$0xff] %v1290_v58  ;;  %v1295_v61 = vld [vmem:[%s1470_s0 + $0x8] sm:$0x77]  ;;  %v1314_v46 = vld [vmem:[%s1469_s1 + $0x194] ss:$8 sps:$4 sm:$0xff]  }
  0x16   :  { %v106_v54 = vrot.slane %v104_v53, 1  ;;  %1487 = vst [vmem:[#allocation6_spill] sm:$0xff] %v1295_v61  ;;  %v1307_v63 = vld [vmem:[%s1469_s1 + $0xa0] ss:$8 sps:$4 sm:$0xff]   ;;  %1490 = vst [vmem:[#allocation9_spill] sm:$0xff] %v1314_v46  ;;  %v97_v53 = vshll.u32 %v776_v60, 16 }
  0x17   :  { %281 = vmatpush1.bf16.msra.mxu0 %v1100_v22  ;;  %1489 = vst [vmem:[#allocation8_spill] sm:$0xff] %v1307_v63  ;;  %v1319_v47 = vld [vmem:[%s1469_s1 + $0x94] ss:$8 sps:$4 sm:$0xff]  }
  0x18   :  { %484 = vmatpush1.bf16.msra.mxu1 %v1107_v23  ;;  %282 = vmatprep.subr.bf16.mxu0 %v1112_v24  ;;  %v107_v59 = vor.u32 %v106_v54, %v102_v52  ;;  %1491 = vst [vmem:[#allocation10_spill] sm:$0xff] %v1319_v47  ;;  %v844_v52 = vcombine.high %v1295_v61, %v1295_v61  ;;  %v1328_v54 = vld [vmem:[%s1469_s1 + $0x190] ss:$8 sps:$4 sm:$0xff]  }
  0x19   :  { %485 = vmatprep.subr.bf16.mxu1 %v1119_v25 }
  0x1a   :  { %302 = vmatprep.mubr.bf16.mxu0 %v107_v59  ;;  %v1333_v59 = vld [vmem:[%s1469_s1 + $0x90] ss:$8 sps:$4 sm:$0xff]  }
  0x1b   :  { %283 = vmatpush1.bf16.msra.mxu0 %v1124_v26  ;;  %1492 = vst [vmem:[#allocation11_spill] sm:$0xff] %v1333_v59 }
  0x1c   :  { %486 = vmatpush1.bf16.msra.mxu1 %v1129_v27  ;;  %284 = vmatprep.subr.bf16.mxu0 %v1136_v28 }
  0x1d   :  { %487 = vmatprep.subr.bf16.mxu1 %v1143_v29 }
  0x1f   :  { %285 = vmatpush1.bf16.msra.mxu0 %v1148_v30 }
  0x20   :  { %488 = vmatpush1.bf16.msra.mxu1 %v1155_v31  ;;  %286 = vmatprep.subr.bf16.mxu0 %v1160_v32 }
  0x21   :  { %489 = vmatprep.subr.bf16.mxu1 %v1167_v33 }
  0x23   :  { %287 = vmatpush2.bf16.msra.mxu0 %v1172_v34 }
  0x24   :  { %490 = vmatpush2.bf16.msra.mxu1 %v1177_v35  ;;  %288 = vmatprep.subr.bf16.mxu0 %v1184_v36 }
  0x25   :  { %491 = vmatprep.subr.bf16.mxu1 %v1191_v37 }
  0x27   :  { %289 = vmatpush2.bf16.msra.mxu0 %v1196_v38 }
  0x28   :  { %492 = vmatpush2.bf16.msra.mxu1 %v1203_v39  ;;  %290 = vmatprep.subr.bf16.mxu0 %v1208_v40 }
  0x29   :  { %493 = vmatprep.subr.bf16.mxu1 %v1215_v41 }
  0x2b   :  { %291 = vmatpush2.bf16.msra.mxu0 %v1220_v42 }
  0x2c   :  { %494 = vmatpush2.bf16.msra.mxu1 %v1225_v43  ;;  %292 = vmatprep.subr.bf16.mxu0 %v1232_v44 }
  0x2d   :  { %495 = vmatprep.subr.bf16.mxu1 %v1239_v45 }
  0x2f   :  { %293 = vmatpush2.bf16.msra.mxu0 %v1249_v48 }
  0x30   :  { %496 = vmatpush2.bf16.msra.mxu1 %v1254_v49  ;;  %294 = vmatprep.subr.bf16.mxu0 %v1261_v50 }
  0x31   :  { %497 = vmatprep.subr.bf16.mxu1 %v1266_v51 }
  0x33   :  { %295 = vmatpush2.bf16.msra.mxu0 %v1273_v55  ;;  %v564_v55 = vshrl.u32 %v844_v52, 16 }
  0x34   :  { %498 = vmatpush2.bf16.msra.mxu1 %v1278_v56  ;;  %296 = vmatprep.subr.bf16.mxu0 %v1285_v57  ;;  %v95_v57 = vshrl.u32 %v776_v60, 16  ;;  %v99_v56 = vrot.slane %v97_v53, 1 }
  0x35   :  { %499 = vmatprep.subr.bf16.mxu1 %v1290_v58  ;;  %v566_v58 = vshll.u32 %v844_v52, 16 }
  0x36   :  { %v100_v61 = vor.u32 %v99_v56, %v95_v57 }
  0x37   :  { %297 = vmatpush2.bf16.msra.mxu0 %v1302_v62  ;;  %v1340_v62 = vld [vmem:[%s1469_s1 + $0x184] ss:$8 sps:$4 sm:$0xff]   ;;  %v568_v53 = vrot.slane %v566_v58, 1 }
  0x38   :  { %500 = vmatpush2.bf16.msra.mxu1 %v1307_v63  ;;  %298 = vmatprep.subr.bf16.mxu0 %v1314_v46  ;;  %v1345_v63 = vld [vmem:[%s1469_s1 + $0x84] ss:$8 sps:$4 sm:$0xff]   ;;  %v1357_v46 = vld [vmem:[%s1469_s1 + $0x80] ss:$8 sps:$4 sm:$0xff]  }
  0x39   :  { %501 = vmatprep.subr.bf16.mxu1 %v1319_v47  ;;  %v1352_v47 = vld [vmem:[%s1469_s1 + $0x180] ss:$8 sps:$4 sm:$0xff]  }
  0x3b   :  { %299 = vmatpush2.bf16.msra.mxu0 %v1328_v54 }
  0x3c   :  { %502 = vmatpush2.bf16.msra.mxu1 %v1333_v59  ;;  %300 = vmatprep.subr.bf16.mxu0 %v1340_v62  ;;  %v569_v59 = vor.u32 %v568_v53, %v564_v55 }
  0x3d   :  { %503 = vmatprep.subr.bf16.mxu1 %v1345_v63 }
  0x3f   :  { %301 = vmatpush2.bf16.msra.mxu0 %v1352_v47 }
  0x40   :  { %504 = vmatpush2.bf16.msra.mxu1 %v1357_v46  ;;  %572 = vmatprep.subr.bf16.mxu0 %v972_v0  ;;  %v1493_v0 = vld [vmem:[#allocation6_spill] sm:$0xff] }
  0x41   :  { %615 = vmatprep.subr.bf16.mxu1 %v977_v1  ;;  %v843_v1 = vcombine.low %v1493_v0, %v1493_v0 }
  0x42   :  { %303 = vmatmul.mubr.bf16.vlgmr.msra.gmra.mxu0 %v100_v61 }
  0x43   :  { %506 = vmatmul.mubr.bf16.vlgmr.msra.gmra.mxu1 %v776_v60  ;;  %573 = vmatpush1.bf16.msra.mxu0 %v983_v2  ;;  %v1494_v2 = vld [vmem:[#allocation2_spill] sm:$0xff] }
  0x44   :  { %616 = vmatpush1.bf16.msra.mxu1 %v988_v3  ;;  %574 = vmatprep.subr.bf16.mxu0 %v994_v4  ;;  %v1495_v3 = vld [vmem:[#allocation3_spill] sm:$0xff]  ;;  %v1496_v4 = vld [vmem:[#allocation4_spill] sm:$0xff] }
  0x45   :  { %617 = vmatprep.subr.bf16.mxu1 %v1001_v5  ;;  %604 = vmatprep.mubr.bf16.mxu0 %v569_v59  ;;  %v1497_v5 = vld [vmem:[#allocation5_spill] sm:$0xff] }
  0x46   :  { %647 = vmatprep.mubr.bf16.mxu1 %v844_v52 }
  0x47   :  { %575 = vmatpush1.bf16.msra.mxu0 %v1006_v6  ;;  %v559_v6 = vshll.u32 %v843_v1, 16 }
  0x48   :  { %618 = vmatpush1.bf16.msra.mxu1 %v1012_v7  ;;  %576 = vmatprep.subr.bf16.mxu0 %v1018_v8  ;;  %v1498_v7 = vld [vmem:[#allocation7_spill] sm:$0xff]  ;;  %v1499_v8 = vld [vmem:[#allocation8_spill] sm:$0xff] }
  0x49   :  { %619 = vmatprep.subr.bf16.mxu1 %v1023_v9  ;;  %v1500_v9 = vld [vmem:[#allocation9_spill] sm:$0xff] }
  0x4b   :  { %577 = vmatpush1.bf16.msra.mxu0 %v1028_v10  ;;  %v1501_v10 = vld [vmem:[#allocation10_spill] sm:$0xff] }
  0x4c   :  { %620 = vmatpush1.bf16.msra.mxu1 %v1033_v11  ;;  %578 = vmatprep.subr.bf16.mxu0 %v1040_v12  ;;  %v557_v11 = vshrl.u32 %v843_v1, 16  ;;  %v561_v12 = vrot.slane %v559_v6, 1 }
  0x4d   :  { %621 = vmatprep.subr.bf16.mxu1 %v1047_v13  ;;  %v1502_v13 = vld [vmem:[#allocation11_spill] sm:$0xff] }
  0x4f   :  { %579 = vmatpush1.bf16.msra.mxu0 %v1052_v14  ;;  %v562_v14 = vor.u32 %v561_v12, %v557_v11 }
  0x50   :  { %622 = vmatpush1.bf16.msra.mxu1 %v1059_v15  ;;  %580 = vmatprep.subr.bf16.mxu0 %v1064_v16  ;;  %v17_v15 = vlaneseq }
  0x51   :  { %623 = vmatprep.subr.bf16.mxu1 %v1071_v17  ;;  %v947_v17 = vmov 0.0  }
  0x52   :  { %vm1430_vm0 = vcmp.lt.s32.totalorder %v17_v15, 256 }
  0x53   :  { %581 = vmatpush1.bf16.msra.mxu0 %v1076_v18  ;;  %21 = vst.msk [vmem:[%s1471_s2] sm:$0x3] %vm1430_vm0, %v947_v17  ;;  %22 = vst.msk [vmem:[%s1472_s3] sm:$0x3] %vm1430_vm0, %v947_v17 }
  0x54   :  { %624 = vmatpush1.bf16.msra.mxu1 %v1081_v19  ;;  %582 = vmatprep.subr.bf16.mxu0 %v1088_v20 }
  0x55   :  { %625 = vmatprep.subr.bf16.mxu1 %v1095_v21 }
  0x57   :  { %583 = vmatpush1.bf16.msra.mxu0 %v1100_v22 }
  0x58   :  { %626 = vmatpush1.bf16.msra.mxu1 %v1107_v23  ;;  %584 = vmatprep.subr.bf16.mxu0 %v1112_v24 }
  0x59   :  { %627 = vmatprep.subr.bf16.mxu1 %v1119_v25 }
  0x5b   :  { %585 = vmatpush1.bf16.msra.mxu0 %v1124_v26 }
  0x5c   :  { %628 = vmatpush1.bf16.msra.mxu1 %v1129_v27  ;;  %586 = vmatprep.subr.bf16.mxu0 %v1136_v28 }
  0x5d   :  { %629 = vmatprep.subr.bf16.mxu1 %v1143_v29 }
  0x5f   :  { %587 = vmatpush1.bf16.msra.mxu0 %v1148_v30 }
  0x60   :  { %630 = vmatpush1.bf16.msra.mxu1 %v1155_v31  ;;  %588 = vmatprep.subr.bf16.mxu0 %v1160_v32 }
  0x61   :  { %631 = vmatprep.subr.bf16.mxu1 %v1167_v33 }
  0x63   :  { %589 = vmatpush2.bf16.msra.mxu0 %v1172_v34 }
  0x64   :  { %632 = vmatpush2.bf16.msra.mxu1 %v1177_v35  ;;  %590 = vmatprep.subr.bf16.mxu0 %v1184_v36 }
  0x65   :  { %633 = vmatprep.subr.bf16.mxu1 %v1191_v37 }
  0x67   :  { %591 = vmatpush2.bf16.msra.mxu0 %v1196_v38 }
  0x68   :  { %634 = vmatpush2.bf16.msra.mxu1 %v1203_v39  ;;  %592 = vmatprep.subr.bf16.mxu0 %v1208_v40 }
  0x69   :  { %635 = vmatprep.subr.bf16.mxu1 %v1215_v41 }
  0x6b   :  { %593 = vmatpush2.bf16.msra.mxu0 %v1220_v42 }
  0x6c   :  { %636 = vmatpush2.bf16.msra.mxu1 %v1225_v43  ;;  %594 = vmatprep.subr.bf16.mxu0 %v1232_v44 }
  0x6d   :  { %637 = vmatprep.subr.bf16.mxu1 %v1239_v45 }
  0x6f   :  { %595 = vmatpush2.bf16.msra.mxu0 %v1249_v48 }
  0x70   :  { %638 = vmatpush2.bf16.msra.mxu1 %v1254_v49  ;;  %596 = vmatprep.subr.bf16.mxu0 %v1261_v50 }
  0x71   :  { %639 = vmatprep.subr.bf16.mxu1 %v1266_v51 }
  0x73   :  { %597 = vmatpush2.bf16.msra.mxu0 %v1494_v2 }
  0x74   :  { %640 = vmatpush2.bf16.msra.mxu1 %v1495_v3  ;;  %598 = vmatprep.subr.bf16.mxu0 %v1496_v4 }
  0x75   :  { %641 = vmatprep.subr.bf16.mxu1 %v1497_v5 }
  0x77   :  { %599 = vmatpush2.bf16.msra.mxu0 %v1498_v7 }
  0x78   :  { %642 = vmatpush2.bf16.msra.mxu1 %v1499_v8  ;;  %600 = vmatprep.subr.bf16.mxu0 %v1500_v9 }
  0x79   :  { %643 = vmatprep.subr.bf16.mxu1 %v1501_v10  ;;  %v948_v10 = vmov 1966171168  }
  0x7a   :  { %v695_v11 = vunpack.c.l.s4 %v948_v10 }
  0x7b   :  { %601 = vmatpush2.bf16.msra.mxu0 %v1328_v54 }
  0x7c   :  { %644 = vmatpush2.bf16.msra.mxu1 %v1502_v13  ;;  %602 = vmatprep.subr.bf16.mxu0 %v1340_v62 }
  0x7d   :  { %645 = vmatprep.subr.bf16.mxu1 %v1345_v63 }
  0x7f   :  { %603 = vmatpush2.bf16.msra.mxu0 %v1352_v47 }
  0x80   :  { %646 = vmatpush2.bf16.msra.mxu1 %v1357_v46 }
  0x82   :  { %605 = vmatmul.mubr.bf16.vlgmr.msra.gmra.mxu0 %v562_v14 }
  0x83   :  { %648 = vmatmul.mubr.bf16.vlgmr.msra.gmra.mxu1 %v843_v1 }
 0x102   :  { %v304_v18 = vpop.f32.mrf.mxu0 }
 0x103   :  { %v507_v19 = vpop.f32.mrf.mxu1 }
 0x104   :  { %v508_v20 = vadd.f32 %v507_v19, %v304_v18  ;;  %v306_v21 = vpop.f32.mrf.mxu0 }
 0x105   :  { %v509_v22 = vpop.f32.mrf.mxu1 }
 0x106   :  { %v510_v23 = vadd.f32 %v509_v22, %v306_v21  ;;  %v308_v24 = vpop.f32.mrf.mxu0  ;;  %v531_v28 = vmul.f32 %v508_v20, %v508_v20  ;;  %v515_v30 = vsel %vm514_vm1, %v508_v20, 0.0 }
 0x107   :  { %v511_v25 = vpop.f32.mrf.mxu1  ;;  %v516_v33 = vrot.slane %v515_v30, 4 }
 0x108   :  { %v309_v26 = vpop.f32.mrf.mxu0  ;;  %v532_v29 = vmul.f32 %v510_v23, %v510_v23  ;;  %v522_v31 = vsel %vm514_vm1, %v510_v23, 0.0  ;;  %v533_v32 = vsel %vm514_vm1, %v531_v28, 0.0 }
 0x109   :  { %v512_v27 = vpop.f32.mrf.mxu1  ;;  %v523_v35 = vrot.slane %v522_v31, 4  ;;  %v534_v36 = vrot.slane %v533_v32, 4  ;;  %v517_v38 = vadd.f32 %v516_v33, %v515_v30  ;;  %v696_v26 = vunpack.c.0.s8 %v695_v11 }
 0x10a   :  { %v540_v34 = vsel %vm514_vm1, %v532_v29, 0.0  ;;  %v698_v27 = vshrl.u32 %v17_v15, 7 }
 0x10b   :  { %v541_v37 = vrot.slane %v540_v34, 4  ;;  %v524_v39 = vadd.f32 %v523_v35, %v522_v31  ;;  %v535_v40 = vadd.f32 %v534_v36, %v533_v32  ;;  %v518_v45 = vrot.slane %v517_v38, 2 }
 0x10d   :  { %v542_v43 = vadd.f32 %v541_v37, %v540_v34  ;;  %v525_v50 = vrot.slane %v524_v39, 2  ;;  %v536_v57 = vrot.slane %v535_v40, 2  ;;  %v519_v1 = vadd.f32 %v518_v45, %v517_v38 }
 0x10e   :  { %v699_v38 = vsub.s32 %v696_v26, %v698_v27 }
 0x10f   :  { %v543_v62 = vrot.slane %v542_v43, 2  ;;  %v526_v2 = vadd.f32 %v525_v50, %v524_v39  ;;  %v537_v8 = vadd.f32 %v536_v57, %v535_v40  ;;  %v520_v18 = vrot.slane %v519_v1, 1 }
 0x111   :  { %v544_v9 = vadd.f32 %v543_v62, %v542_v43  ;;  %v527_v19 = vrot.slane %v526_v2, 1  ;;  %v538_v24 = vrot.slane %v537_v8, 1  ;;  %v521_v32 = vadd.f32 %v520_v18, %v519_v1 }
 0x113   :  { %v545_v25 = vrot.slane %v544_v9, 1  ;;  %v528_v33 = vadd.f32 %v527_v19, %v526_v2  ;;  %v539_v37 = vadd.f32 %v538_v24, %v537_v8 }
 0x115   :  { %v546_v39 = vadd.f32 %v545_v25, %v544_v9 }
 0x142   :  { %v606_v41 = vpop.f32.mrf.mxu0 }
 0x143   :  { %v649_v42 = vpop.f32.mrf.mxu1 }
 0x144   :  { %v650_v44 = vadd.f32 %v649_v42, %v606_v41  ;;  %v608_v48 = vpop.f32.mrf.mxu0 }
 0x145   :  { %v651_v49 = vpop.f32.mrf.mxu1 }
 0x146   :  { %v656_v51 = vsel %vm514_vm1, %v650_v44, 0.0  ;;  %v672_v55 = vmul.f32 %v650_v44, %v650_v44  ;;  %v652_v56 = vadd.f32 %v651_v49, %v608_v48  ;;  %v610_v60 = vpop.f32.mrf.mxu0  ;;  %v690_v49 = vld [vmem:[%s1471_s2] sm:$0x3] }
 0x147   :  { %v657_v58 = vrot.slane %v656_v51, 4  ;;  %v653_v61 = vpop.f32.mrf.mxu1 }
 0x148   :  { %v674_v63 = vsel %vm514_vm1, %v672_v55, 0.0  ;;  %v663_v46 = vsel %vm514_vm1, %v652_v56, 0.0  ;;  %v673_v47 = vmul.f32 %v652_v56, %v652_v56  ;;  %v611_v53 = vpop.f32.mrf.mxu0  ;;  %v715_v55 = vld [vmem:[%s1472_s3] sm:$0x3] }
 0x149   :  { %v658_v52 = vadd.f32 %v657_v58, %v656_v51  ;;  %v675_v54 = vrot.slane %v674_v63, 4  ;;  %v664_v59 = vrot.slane %v663_v46, 4  ;;  %v654_v0 = vpop.f32.mrf.mxu1 }
 0x14a   :  { %v681_v3 = vsel %vm514_vm1, %v673_v47, 0.0 }
 0x14b   :  { %v659_v4 = vrot.slane %v658_v52, 2  ;;  %v676_v5 = vadd.f32 %v675_v54, %v674_v63  ;;  %v665_v6 = vadd.f32 %v664_v59, %v663_v46  ;;  %v682_v7 = vrot.slane %v681_v3, 4 }
 0x14d   :  { %v660_v12 = vadd.f32 %v659_v4, %v658_v52  ;;  %v677_v13 = vrot.slane %v676_v5, 2  ;;  %v666_v14 = vrot.slane %v665_v6, 2  ;;  %v683_v17 = vadd.f32 %v682_v7, %v681_v3 }
 0x14f   :  { %v661_v20 = vrot.slane %v660_v12, 1  ;;  %v678_v21 = vadd.f32 %v677_v13, %v676_v5  ;;  %v667_v22 = vadd.f32 %v666_v14, %v665_v6  ;;  %v684_v23 = vrot.slane %v683_v17, 2 }
 0x151   :  { %v662_v28 = vadd.f32 %v661_v20, %v660_v12  ;;  %v679_v29 = vrot.slane %v678_v21, 1  ;;  %v668_v30 = vrot.slane %v667_v22, 1  ;;  %v685_v31 = vadd.f32 %v684_v23, %v683_v17 }
 0x153   :  { %v680_v34 = vadd.f32 %v679_v29, %v678_v21  ;;  %v669_v35 = vadd.f32 %v668_v30, %v667_v22  ;;  %v686_v36 = vrot.slane %v685_v31, 1  ;;  %v670_v40 = vadd.f32 %v662_v28, %v521_v32 }
 0x155   :  { %v671_v41 = vadd.f32 %v669_v35, %v528_v33  ;;  %v687_v42 = vadd.f32 %v686_v36, %v685_v31  ;;  %v688_v43 = vadd.f32 %v680_v34, %v539_v37 }
 0x157   :  { %v689_v44 = vadd.f32 %v687_v42, %v546_v39  ;;  %v693_v45 = vcombine.low %v670_v40, %v671_v41 }
 0x159   :  { %v700_v48 = vrot.slane %v693_v45, %v699_v38  ;;  %v718_v15 = vcombine.low %v688_v43, %v689_v44 }
 0x15b   :  { %v707_v50 = vrot.slane %v700_v48, %v699_v38  ;;  %v725_v51 = vrot.slane %v718_v15, %v699_v38 }
 0x15d   :  { %v709_v56 = vadd.f32 %v707_v50, %v690_v49  ;;  %v732_v57 = vrot.slane %v725_v51, %v699_v38 }
 0x15f   :  { %714 = vst.msk [vmem:[%s1471_s2] sm:$0x3] %vm1430_vm0, %v709_v56  ;;  %v734_v58 = vadd.f32 %v732_v57, %v715_v55 }
 0x161   :  { %735 = vst.msk [vmem:[%s1472_s3] sm:$0x3] %vm1430_vm0, %v734_v58 }

// kernel: simclr_ts_forward.11
= control target key start
LH: loop header
LB: loop body
LE: loop exit
PB: predicated region body
PF: predicated region fallthrough
CT: control target
= control target key end

     0   :  { %s1845_s0 = inlined_call_operand.vmem [shape: bf16[2,5,256], index: 0, kind: input, shape index: {}]   ;;  %s1846_s1 = inlined_call_operand.vmem [shape: bf16[2,256,256], index: 1, kind: input, shape index: {}]   ;;  %s1847_s2 = inlined_call_operand.vmem [shape: f32[1,256], index: 2, kind: input, shape index: {}]   ;;  %s1848_s3 = inlined_call_operand.vmem [shape: f32[1,256], index: 3, kind: input, shape index: {}]   ;;  %s1849_s4 = inlined_call_operand.vmem [shape: f32[256,32], index: 4, kind: input, shape index: {}]   ;;  %s1850_s5 = inlined_call_operand.vmem [shape: f32[1,32], index: 5, kind: input, shape index: {}]   ;;  %s1851_s6 = inlined_call_operand.hbm [shape: f32[2,32], index: 6, kind: output, shape index: {}]  }
   0x1   :  { %v1214_v0 = vld [vmem:[%s1846_s1 + $0x174] ss:$8 sps:$4 sm:$0xff]   ;;  %v1225_v2 = vld [vmem:[%s1846_s1 + $0x170] ss:$8 sps:$4 sm:$0xff]   ;;  %v1236_v4 = vld [vmem:[%s1846_s1 + $0x164] ss:$8 sps:$4 sm:$0xff]  }
   0x2   :  { %v1219_v1 = vld [vmem:[%s1846_s1 + $0x74] ss:$8 sps:$4 sm:$0xff]   ;;  %306 = vmatprep.subr.bf16.mxu0 %v1214_v0  ;;  %v1230_v3 = vld [vmem:[%s1846_s1 + $0x70] ss:$8 sps:$4 sm:$0xff]   ;;  %v1243_v5 = vld [vmem:[%s1846_s1 + $0x64] ss:$8 sps:$4 sm:$0xff]  }
   0x3   :  { %509 = vmatprep.subr.bf16.mxu1 %v1219_v1  ;;  %307 = vmatpush1.bf16.msra.mxu0 %v1225_v2  ;;  %v1248_v6 = vld [vmem:[%s1846_s1 + $0x160] ss:$8 sps:$4 sm:$0xff]   ;;  %v1260_v8 = vld [vmem:[%s1846_s1 + $0x154] ss:$8 sps:$4 sm:$0xff]   ;;  %v1270_v10 = vld [vmem:[%s1846_s1 + $0x150] ss:$8 sps:$4 sm:$0xff]  }
   0x4   :  { %510 = vmatpush1.bf16.msra.mxu1 %v1230_v3  ;;  %308 = vmatprep.subr.bf16.mxu0 %v1236_v4  ;;  %v1254_v7 = vld [vmem:[%s1846_s1 + $0x60] ss:$8 sps:$4 sm:$0xff]   ;;  %v1265_v9 = vld [vmem:[%s1846_s1 + $0x54] ss:$8 sps:$4 sm:$0xff]   ;;  %v1275_v11 = vld [vmem:[%s1846_s1 + $0x50] ss:$8 sps:$4 sm:$0xff]  }
   0x5   :  { %511 = vmatprep.subr.bf16.mxu1 %v1243_v5  ;;  %v1282_v12 = vld [vmem:[%s1846_s1 + $0x144] ss:$8 sps:$4 sm:$0xff]   ;;  %v1294_v14 = vld [vmem:[%s1846_s1 + $0x140] ss:$8 sps:$4 sm:$0xff]   ;;  %v1306_v16 = vld [vmem:[%s1846_s1 + $0x134] ss:$8 sps:$4 sm:$0xff]  }
   0x6   :  { %v1289_v13 = vld [vmem:[%s1846_s1 + $0x44] ss:$8 sps:$4 sm:$0xff]   ;;  %v1301_v15 = vld [vmem:[%s1846_s1 + $0x40] ss:$8 sps:$4 sm:$0xff]   ;;  %v1313_v17 = vld [vmem:[%s1846_s1 + $0x34] ss:$8 sps:$4 sm:$0xff]  }
   0x7   :  { %309 = vmatpush1.bf16.msra.mxu0 %v1248_v6  ;;  %v1318_v18 = vld [vmem:[%s1846_s1 + $0x130] ss:$8 sps:$4 sm:$0xff]   ;;  %v1330_v20 = vld [vmem:[%s1846_s1 + $0x124] ss:$8 sps:$4 sm:$0xff]   ;;  %v1342_v22 = vld [vmem:[%s1846_s1 + $0x120] ss:$8 sps:$4 sm:$0xff]  }
   0x8   :  { %512 = vmatpush1.bf16.msra.mxu1 %v1254_v7  ;;  %310 = vmatprep.subr.bf16.mxu0 %v1260_v8  ;;  %v1323_v19 = vld [vmem:[%s1846_s1 + $0x30] ss:$8 sps:$4 sm:$0xff]   ;;  %v1337_v21 = vld [vmem:[%s1846_s1 + $0x24] ss:$8 sps:$4 sm:$0xff]   ;;  %v1349_v23 = vld [vmem:[%s1846_s1 + $0x20] ss:$8 sps:$4 sm:$0xff]  }
   0x9   :  { %513 = vmatprep.subr.bf16.mxu1 %v1265_v9  ;;  %v1354_v24 = vld [vmem:[%s1846_s1 + $0x114] ss:$8 sps:$4 sm:$0xff]   ;;  %v1366_v26 = vld [vmem:[%s1846_s1 + $0x110] ss:$8 sps:$4 sm:$0xff]   ;;  %v1378_v28 = vld [vmem:[%s1846_s1 + $0x104] ss:$8 sps:$4 sm:$0xff]  }
   0xa   :  { %v1361_v25 = vld [vmem:[%s1846_s1 + $0x14] ss:$8 sps:$4 sm:$0xff]   ;;  %v1371_v27 = vld [vmem:[%s1846_s1 + $0x10] ss:$8 sps:$4 sm:$0xff]   ;;  %v1385_v29 = vld [vmem:[%s1846_s1 + $0x4] ss:$8 sps:$4 sm:$0xff]  }
   0xb   :  { %311 = vmatpush1.bf16.msra.mxu0 %v1270_v10  ;;  %v1390_v30 = vld [vmem:[%s1846_s1 + $0x100] ss:$8 sps:$4 sm:$0xff]   ;;  %v1402_v32 = vld [vmem:[%s1846_s1 + $0x1f4] ss:$8 sps:$4 sm:$0xff]   ;;  %v1414_v34 = vld [vmem:[%s1846_s1 + $0x1f0] ss:$8 sps:$4 sm:$0xff]  }
   0xc   :  { %514 = vmatpush1.bf16.msra.mxu1 %v1275_v11  ;;  %312 = vmatprep.subr.bf16.mxu0 %v1282_v12  ;;  %v1397_v31 = vld [vmem:[%s1846_s1] ss:$8 sps:$4 sm:$0xff]   ;;  %v1409_v33 = vld [vmem:[%s1846_s1 + $0xf4] ss:$8 sps:$4 sm:$0xff]   ;;  %v1419_v35 = vld [vmem:[%s1846_s1 + $0xf0] ss:$8 sps:$4 sm:$0xff]  }
   0xd   :  { %515 = vmatprep.subr.bf16.mxu1 %v1289_v13  ;;  %v1426_v36 = vld [vmem:[%s1846_s1 + $0x1e4] ss:$8 sps:$4 sm:$0xff]   ;;  %v1438_v38 = vld [vmem:[%s1846_s1 + $0x1e0] ss:$8 sps:$4 sm:$0xff]   ;;  %v1450_v40 = vld [vmem:[%s1846_s1 + $0x1d4] ss:$8 sps:$4 sm:$0xff]  }
   0xe   :  { %v1433_v37 = vld [vmem:[%s1846_s1 + $0xe4] ss:$8 sps:$4 sm:$0xff]   ;;  %v1445_v39 = vld [vmem:[%s1846_s1 + $0xe0] ss:$8 sps:$4 sm:$0xff]   ;;  %v1457_v41 = vld [vmem:[%s1846_s1 + $0xd4] ss:$8 sps:$4 sm:$0xff]  }
   0xf   :  { %313 = vmatpush1.bf16.msra.mxu0 %v1294_v14  ;;  %v1462_v42 = vld [vmem:[%s1846_s1 + $0x1d0] ss:$8 sps:$4 sm:$0xff]   ;;  %v1474_v44 = vld [vmem:[%s1846_s1 + $0x1c4] ss:$8 sps:$4 sm:$0xff]   ;;  %v1491_v48 = vld [vmem:[%s1846_s1 + $0x1c0] ss:$8 sps:$4 sm:$0xff]  }
  0x10   :  { %516 = vmatpush1.bf16.msra.mxu1 %v1301_v15  ;;  %314 = vmatprep.subr.bf16.mxu0 %v1306_v16  ;;  %v1467_v43 = vld [vmem:[%s1846_s1 + $0xd0] ss:$8 sps:$4 sm:$0xff]   ;;  %v1481_v45 = vld [vmem:[%s1846_s1 + $0xc4] ss:$8 sps:$4 sm:$0xff]   ;;  %v1496_v49 = vld [vmem:[%s1846_s1 + $0xc0] ss:$8 sps:$4 sm:$0xff]  }
  0x11   :  { %517 = vmatprep.subr.bf16.mxu1 %v1313_v17  ;;  %v124_v46 = vld [vmem:[%s1845_s0] sm:$0x77]  ;;  %1861 = vst [vmem:[#allocation5_spill] sm:$0xff] %v1496_v49  ;;  %v1501_v50 = vld [vmem:[%s1846_s1 + $0x1b4] ss:$8 sps:$4 sm:$0xff]  }
  0x12   :  { %v914_v47 = vcombine.high %v124_v46, %v124_v46  ;;  %v1508_v51 = vld [vmem:[%s1846_s1 + $0xb4] ss:$8 sps:$4 sm:$0xff]  }
  0x13   :  { %315 = vmatpush1.bf16.msra.mxu0 %v1318_v18  ;;  %1862 = vst [vmem:[#allocation6_spill] sm:$0xff] %v1508_v51 }
  0x14   :  { %518 = vmatpush1.bf16.msra.mxu1 %v1323_v19  ;;  %316 = vmatprep.subr.bf16.mxu0 %v1330_v20  ;;  %v138_v52 = vshrl.u32 %v914_v47, 16  ;;  %v140_v53 = vshll.u32 %v914_v47, 16 }
  0x15   :  { %519 = vmatprep.subr.bf16.mxu1 %v1337_v21 }
  0x17   :  { %317 = vmatpush1.bf16.msra.mxu0 %v1342_v22 }
  0x18   :  { %520 = vmatpush1.bf16.msra.mxu1 %v1349_v23  ;;  %318 = vmatprep.subr.bf16.mxu0 %v1354_v24 }
  0x19   :  { %521 = vmatprep.subr.bf16.mxu1 %v1361_v25 }
  0x1b   :  { %319 = vmatpush1.bf16.msra.mxu0 %v1366_v26 }
  0x1c   :  { %522 = vmatpush1.bf16.msra.mxu1 %v1371_v27  ;;  %320 = vmatprep.subr.bf16.mxu0 %v1378_v28 }
  0x1d   :  { %523 = vmatprep.subr.bf16.mxu1 %v1385_v29 }
  0x1f   :  { %321 = vmatpush1.bf16.msra.mxu0 %v1390_v30 }
  0x20   :  { %524 = vmatpush1.bf16.msra.mxu1 %v1397_v31  ;;  %322 = vmatprep.subr.bf16.mxu0 %v1402_v32 }
  0x21   :  { %525 = vmatprep.subr.bf16.mxu1 %v1409_v33 }
  0x23   :  { %323 = vmatpush2.bf16.msra.mxu0 %v1414_v34 }
  0x24   :  { %526 = vmatpush2.bf16.msra.mxu1 %v1419_v35  ;;  %324 = vmatprep.subr.bf16.mxu0 %v1426_v36 }
  0x25   :  { %527 = vmatprep.subr.bf16.mxu1 %v1433_v37 }
  0x27   :  { %325 = vmatpush2.bf16.msra.mxu0 %v1438_v38 }
  0x28   :  { %528 = vmatpush2.bf16.msra.mxu1 %v1445_v39  ;;  %326 = vmatprep.subr.bf16.mxu0 %v1450_v40 }
  0x29   :  { %529 = vmatprep.subr.bf16.mxu1 %v1457_v41 }
  0x2b   :  { %327 = vmatpush2.bf16.msra.mxu0 %v1462_v42 }
  0x2c   :  { %530 = vmatpush2.bf16.msra.mxu1 %v1467_v43  ;;  %328 = vmatprep.subr.bf16.mxu0 %v1474_v44 }
  0x2d   :  { %531 = vmatprep.subr.bf16.mxu1 %v1481_v45 }
  0x2e   :  { %11 = vsyncpa [#allocation3], 0  ;;  %541 = vmatprep.mubr.bf16.mxu1 %v914_v47  ;;  %v142_v54 = vrot.slane %v140_v53, 1  ;;  %v1515_v55 = vld [vmem:[%s1846_s1 + $0x1b0] ss:$8 sps:$4 sm:$0xff]   ;;  %v913_v60 = vcombine.low %v124_v46, %v124_v46  ;;  %vm578_vm0 = vcmask 1043456  }
  0x2f   :  { %329 = vmatpush2.bf16.msra.mxu0 %v1491_v48  ;;  %v1520_v56 = vld [vmem:[%s1846_s1 + $0xb0] ss:$8 sps:$4 sm:$0xff]   ;;  %v1527_v57 = vld [vmem:[%s1846_s1 + $0x1a4] ss:$8 sps:$4 sm:$0xff]   ;;  %v1539_v61 = vld [vmem:[%s1846_s1 + $0x1a0] ss:$8 sps:$4 sm:$0xff]  }
  0x30   :  { %532 = vmatpush2.bf16.msra.mxu1 %v1496_v49  ;;  %1863 = vst [vmem:[#allocation7_spill] sm:$0xff] %v1520_v56  ;;  %330 = vmatprep.subr.bf16.mxu0 %v1501_v50  ;;  %v1532_v58 = vld [vmem:[%s1846_s1 + $0xa4] ss:$8 sps:$4 sm:$0xff]   ;;  %v143_v59 = vor.u32 %v142_v54, %v138_v52  ;;  %v1544_v62 = vld [vmem:[%s1846_s1 + $0xa0] ss:$8 sps:$4 sm:$0xff]   ;;  %v133_v47 = vshll.u32 %v913_v60, 16 }
  0x31   :  { %533 = vmatprep.subr.bf16.mxu1 %v1508_v51  ;;  %1864 = vst [vmem:[#allocation8_spill] sm:$0xff] %v1532_v58  ;;  %1865 = vst [vmem:[#allocation9_spill] sm:$0xff] %v1544_v62  ;;  %v1551_v63 = vld [vmem:[%s1846_s1 + $0x194] ss:$8 sps:$4 sm:$0xff]   ;;  %v1141_v52 = vld [vmem:[%s1846_s1 + $0x190] ss:$8 sps:$4 sm:$0xff]  }
  0x32   :  { %338 = vmatprep.mubr.bf16.mxu0 %v143_v59  ;;  %v1556_v46 = vld [vmem:[%s1846_s1 + $0x94] ss:$8 sps:$4 sm:$0xff]   ;;  %v1566_v53 = vld [vmem:[%s1846_s1 + $0x90] ss:$8 sps:$4 sm:$0xff]   ;;  %v1143_v54 = vld [vmem:[%s1846_s1 + $0x184] ss:$8 sps:$4 sm:$0xff]  }
  0x33   :  { %331 = vmatpush2.bf16.msra.mxu0 %v1515_v55  ;;  %1866 = vst [vmem:[#allocation10_spill] sm:$0xff] %v1556_v46  ;;  %1867 = vst [vmem:[#allocation11_spill] sm:$0xff] %v1566_v53  ;;  %v1576_v59 = vld [vmem:[%s1846_s1 + $0x84] ss:$8 sps:$4 sm:$0xff]   ;;  %v122_v51 = vld [vmem:[%s1849_s4 + $0xf8] sm:$0xff]  ;;  %vm665_vm1 = vcmask 253952  }
  0x34   :  { %534 = vmatpush2.bf16.msra.mxu1 %v1520_v56  ;;  %332 = vmatprep.subr.bf16.mxu0 %v1527_v57  ;;  %1868 = vst [vmem:[#allocation12_spill] sm:$0xff] %v1576_v59  ;;  %v1147_v56 = vld [vmem:[%s1846_s1 + $0x180] ss:$8 sps:$4 sm:$0xff]  }
  0x35   :  { %535 = vmatprep.subr.bf16.mxu1 %v1532_v58  ;;  %v135_v58 = vrot.slane %v133_v47, 1 }
  0x37   :  { %333 = vmatpush2.bf16.msra.mxu0 %v1539_v61 }
  0x38   :  { %536 = vmatpush2.bf16.msra.mxu1 %v1544_v62  ;;  %334 = vmatprep.subr.bf16.mxu0 %v1551_v63  ;;  %v131_v62 = vshrl.u32 %v913_v60, 16 }
  0x39   :  { %537 = vmatprep.subr.bf16.mxu1 %v1556_v46  ;;  %v1585_v46 = vld [vmem:[%s1846_s1 + $0x80] ss:$8 sps:$4 sm:$0xff]  }
  0x3a   :  { %1869 = vst [vmem:[#allocation13_spill] sm:$0xff] %v1585_v46  ;;  %v136_v47 = vor.u32 %v135_v58, %v131_v62  ;;  %v1606_v58 = vld [vmem:[%s1849_s4 + $0x70] sm:$0xff]  ;;  %v1612_v62 = vld [vmem:[%s1849_s4 + $0xe8] sm:$0xff] }
  0x3b   :  { %335 = vmatpush2.bf16.msra.mxu0 %v1141_v52 }
  0x3c   :  { %538 = vmatpush2.bf16.msra.mxu1 %v1566_v53  ;;  %336 = vmatprep.subr.bf16.mxu0 %v1143_v54  ;;  %v1595_v53 = vld [vmem:[%s1849_s4 + $0x78] sm:$0xff] }
  0x3d   :  { %539 = vmatprep.subr.bf16.mxu1 %v1576_v59  ;;  %v1601_v59 = vld [vmem:[%s1849_s4 + $0xf0] sm:$0xff] }
  0x3f   :  { %337 = vmatpush2.bf16.msra.mxu0 %v1147_v56 }
  0x40   :  { %540 = vmatpush2.bf16.msra.mxu1 %v1585_v46  ;;  %982 = vmatprep.subr.mxu0 %v122_v51 }
  0x41   :  { %690 = vmatprep.subr.bf16.mxu1 %v1214_v0  ;;  %v1619_v0 = vld [vmem:[%s1849_s4 + $0x68] sm:$0xff] }
  0x42   :  { %339 = vmatmul.mubr.bf16.vlgmr.msra.gmra.mxu0 %v136_v47 }
  0x43   :  { %542 = vmatmul.mubr.bf16.vlgmr.msra.gmra.mxu1 %v913_v60  ;;  %983 = vmatpush3.msra.mxu0 %v1595_v53 }
  0x44   :  { %691 = vmatpush1.bf16.msra.mxu1 %v1225_v2  ;;  %984 = vmatprep.subr.mxu0 %v1601_v59  ;;  %v1654_v2 = vld [vmem:[%s1849_s4 + $0xe0] sm:$0xff] }
  0x45   :  { %692 = vmatprep.subr.bf16.mxu1 %v1236_v4  ;;  %985 = vmatpush3.msra.mxu0 %v1606_v58  ;;  %v1660_v4 = vld [vmem:[%s1849_s4 + $0x60] sm:$0xff] }
  0x46   :  { %986 = vmatprep.subr.mxu0 %v1612_v62 }
  0x47   :  { %987 = vmatpush3.msra.mxu0 %v1619_v0 }
  0x48   :  { %693 = vmatpush1.bf16.msra.mxu1 %v1248_v6  ;;  %988 = vmatprep.subr.mxu0 %v1654_v2  ;;  %v1666_v6 = vld [vmem:[%s1849_s4 + $0xd8] sm:$0xff] }
  0x49   :  { %694 = vmatprep.subr.bf16.mxu1 %v1260_v8  ;;  %989 = vmatpush3.msra.mxu0 %v1660_v4  ;;  %v1672_v8 = vld [vmem:[%s1849_s4 + $0x58] sm:$0xff] }
  0x4a   :  { %990 = vmatprep.subr.mxu0 %v1666_v6 }
  0x4b   :  { %991 = vmatpush3.msra.mxu0 %v1672_v8 }
  0x4c   :  { %695 = vmatpush1.bf16.msra.mxu1 %v1270_v10  ;;  %v1678_v10 = vld [vmem:[%s1849_s4 + $0xd0] sm:$0xff] }
  0x4d   :  { %696 = vmatprep.subr.bf16.mxu1 %v1282_v12  ;;  %992 = vmatprep.subr.mxu0 %v1678_v10  ;;  %v1684_v12 = vld [vmem:[%s1849_s4 + $0x50] sm:$0xff] }
  0x4e   :  { %993 = vmatpush3.msra.mxu0 %v1684_v12 }
  0x50   :  { %697 = vmatpush1.bf16.msra.mxu1 %v1294_v14  ;;  %v1690_v14 = vld [vmem:[%s1849_s4 + $0xc8] sm:$0xff] }
  0x51   :  { %698 = vmatprep.subr.bf16.mxu1 %v1306_v16  ;;  %994 = vmatprep.subr.mxu0 %v1690_v14  ;;  %v1696_v16 = vld [vmem:[%s1849_s4 + $0x48] sm:$0xff] }
  0x52   :  { %995 = vmatpush3.msra.mxu0 %v1696_v16 }
  0x54   :  { %699 = vmatpush1.bf16.msra.mxu1 %v1318_v18  ;;  %v115_v18 = vld [vmem:[%s1849_s4 + $0xc0] sm:$0xff] }
  0x55   :  { %700 = vmatprep.subr.bf16.mxu1 %v1330_v20  ;;  %996 = vmatprep.subr.mxu0 %v115_v18  ;;  %v99_v20 = vld [vmem:[%s1849_s4 + $0x40] sm:$0xff] }
  0x56   :  { %997 = vmatpush3.msra.mxu0 %v99_v20 }
  0x58   :  { %701 = vmatpush1.bf16.msra.mxu1 %v1342_v22  ;;  %v114_v22 = vld [vmem:[%s1849_s4 + $0xb8] sm:$0xff] }
  0x59   :  { %702 = vmatprep.subr.bf16.mxu1 %v1354_v24  ;;  %998 = vmatprep.subr.mxu0 %v114_v22  ;;  %v98_v24 = vld [vmem:[%s1849_s4 + $0x38] sm:$0xff] }
  0x5a   :  { %999 = vmatpush3.msra.mxu0 %v98_v24 }
  0x5c   :  { %703 = vmatpush1.bf16.msra.mxu1 %v1366_v26  ;;  %v113_v26 = vld [vmem:[%s1849_s4 + $0xb0] sm:$0xff] }
  0x5d   :  { %704 = vmatprep.subr.bf16.mxu1 %v1378_v28  ;;  %1000 = vmatprep.subr.mxu0 %v113_v26  ;;  %v97_v28 = vld [vmem:[%s1849_s4 + $0x30] sm:$0xff] }
  0x5e   :  { %1001 = vmatpush3.msra.mxu0 %v97_v28 }
  0x60   :  { %705 = vmatpush1.bf16.msra.mxu1 %v1390_v30  ;;  %v112_v30 = vld [vmem:[%s1849_s4 + $0xa8] sm:$0xff] }
  0x61   :  { %706 = vmatprep.subr.bf16.mxu1 %v1402_v32  ;;  %1002 = vmatprep.subr.mxu0 %v112_v30  ;;  %v96_v32 = vld [vmem:[%s1849_s4 + $0x28] sm:$0xff] }
  0x62   :  { %1003 = vmatpush3.msra.mxu0 %v96_v32 }
  0x64   :  { %707 = vmatpush2.bf16.msra.mxu1 %v1414_v34  ;;  %v111_v34 = vld [vmem:[%s1849_s4 + $0xa0] sm:$0xff] }
  0x65   :  { %708 = vmatprep.subr.bf16.mxu1 %v1426_v36  ;;  %v95_v36 = vld [vmem:[%s1849_s4 + $0x20] sm:$0xff]  ;;  %1004 = vmatprep.subr.mxu0 %v111_v34 }
  0x66   :  { %1005 = vmatpush3.msra.mxu0 %v95_v36 }
  0x68   :  { %709 = vmatpush2.bf16.msra.mxu1 %v1438_v38  ;;  %v110_v38 = vld [vmem:[%s1849_s4 + $0x98] sm:$0xff] }
  0x69   :  { %710 = vmatprep.subr.bf16.mxu1 %v1450_v40  ;;  %v94_v40 = vld [vmem:[%s1849_s4 + $0x18] sm:$0xff]  ;;  %1006 = vmatprep.subr.mxu0 %v110_v38 }
  0x6a   :  { %1007 = vmatpush3.msra.mxu0 %v94_v40 }
  0x6c   :  { %711 = vmatpush2.bf16.msra.mxu1 %v1462_v42  ;;  %v109_v42 = vld [vmem:[%s1849_s4 + $0x90] sm:$0xff] }
  0x6d   :  { %712 = vmatprep.subr.bf16.mxu1 %v1474_v44  ;;  %v93_v44 = vld [vmem:[%s1849_s4 + $0x10] sm:$0xff]  ;;  %1008 = vmatprep.subr.mxu0 %v109_v42 }
  0x6e   :  { %1009 = vmatpush3.msra.mxu0 %v93_v44 }
  0x70   :  { %713 = vmatpush2.bf16.msra.mxu1 %v1491_v48  ;;  %v108_v48 = vld [vmem:[%s1849_s4 + $0x88] sm:$0xff] }
  0x71   :  { %714 = vmatprep.subr.bf16.mxu1 %v1501_v50  ;;  %v92_v50 = vld [vmem:[%s1849_s4 + $0x8] sm:$0xff]  ;;  %1010 = vmatprep.subr.mxu0 %v108_v48 }
  0x72   :  { %1011 = vmatpush3.msra.mxu0 %v92_v50 }
  0x74   :  { %715 = vmatpush2.bf16.msra.mxu1 %v1515_v55  ;;  %v91_v55 = vld [vmem:[%s1849_s4] sm:$0xff] }
  0x75   :  { %716 = vmatprep.subr.bf16.mxu1 %v1527_v57 }
  0x78   :  { %717 = vmatpush2.bf16.msra.mxu1 %v1539_v61 }
  0x79   :  { %718 = vmatprep.subr.bf16.mxu1 %v1551_v63 }
  0x7c   :  { %719 = vmatpush2.bf16.msra.mxu1 %v1141_v52 }
  0x7d   :  { %720 = vmatprep.subr.bf16.mxu1 %v1143_v54 }
  0x80   :  { %721 = vmatpush2.bf16.msra.mxu1 %v1147_v56  ;;  %v979_v56 = vld [vmem:[%s1845_s0 + $0x8] sm:$0x77] }
  0x81   :  { %1017 = vmatprep.subr.mxu1 %v122_v51  ;;  %v107_v51 = vld [vmem:[%s1849_s4 + $0x80] sm:$0xff]  ;;  %v1757_v57 = vcombine.high %v979_v56, %v979_v56  ;;  %v1759_v60 = vcombine.low %v979_v56, %v979_v56 }
  0x82   :  { %1012 = vmatprep.subr.mxu0 %v107_v51 }
  0x83   :  { %1013 = vmatpush3.msra.mxu0 %v91_v55  ;;  %v684_v61 = vshll.u32 %v1757_v57, 16  ;;  %v677_v63 = vshll.u32 %v1759_v60, 16  ;;  %v682_v52 = vshrl.u32 %v1757_v57, 16  ;;  %v675_v47 = vshrl.u32 %v1759_v60, 16 }
  0x84   :  { %733 = vmatprep.subr.bf16.mxu0 %v1219_v1 }
  0x85   :  { %v686_v54 = vrot.slane %v684_v61, 1  ;;  %v679_v46 = vrot.slane %v677_v63, 1 }
  0x87   :  { %v687_v49 = vor.u32 %v686_v54, %v682_v52  ;;  %v680_v1 = vor.u32 %v679_v46, %v675_v47 }
  0x89   :  { %722 = vmatprep.mubr.bf16.mxu1 %v687_v49  ;;  %v551_v49 = vlaneseq }
  0x8a   :  { %723 = vmatmul.mubr.bf16.vlgmr.msra.gmra.mxu1 %v680_v1 }
  0x8b   :  { %1018 = vmatpush3.msra.mxu1 %v1595_v53  ;;  %v552_v46 = vshrl.u32 %v551_v49, 7 }
  0x8c   :  { %1019 = vmatprep.subr.mxu1 %v1601_v59  ;;  %v89_v59 = vld [vmem:[%s1847_s2] sm:$0x3] }
  0x8d   :  { %1020 = vmatpush3.msra.mxu1 %v1606_v58  ;;  %v553_v53 = vsub.s32 0, %v552_v46  ;;  %v557_v58 = vsub.s32 1, %v552_v46 }
  0x8e   :  { %1021 = vmatprep.subr.mxu1 %v1612_v62  ;;  %v90_v62 = vld [vmem:[%s1848_s3] sm:$0x3] }
  0x8f   :  { %1022 = vmatpush3.msra.mxu1 %v1619_v0  ;;  %v1784_v0 = vrot.slane %v89_v59, %v553_v53 }
  0x90   :  { %1023 = vmatprep.subr.mxu1 %v1654_v2 }
  0x91   :  { %1024 = vmatpush3.msra.mxu1 %v1660_v4 }
  0x92   :  { %1025 = vmatprep.subr.mxu1 %v1666_v6 }
  0x93   :  { %1026 = vmatpush3.msra.mxu1 %v1672_v8  ;;  %v1786_v8 = vrot.slane %v90_v62, %v553_v53 }
  0x94   :  { %1027 = vmatprep.subr.mxu1 %v1678_v10  ;;  %v1788_v10 = vrot.slane %v89_v59, %v557_v58 }
  0x95   :  { %1028 = vmatpush3.msra.mxu1 %v1684_v12 }
  0x96   :  { %1029 = vmatprep.subr.mxu1 %v1690_v14 }
  0x97   :  { %1030 = vmatpush3.msra.mxu1 %v1696_v16 }
  0x98   :  { %1031 = vmatprep.subr.mxu1 %v115_v18 }
  0x99   :  { %1032 = vmatpush3.msra.mxu1 %v99_v20  ;;  %v1791_v20 = vrot.slane %v90_v62, %v557_v58 }
  0x9a   :  { %1033 = vmatprep.subr.mxu1 %v114_v22 }
  0x9b   :  { %1034 = vmatpush3.msra.mxu1 %v98_v24 }
  0x9c   :  { %1035 = vmatprep.subr.mxu1 %v113_v26 }
  0x9d   :  { %1036 = vmatpush3.msra.mxu1 %v97_v28 }
  0x9e   :  { %1037 = vmatprep.subr.mxu1 %v112_v30 }
  0x9f   :  { %1038 = vmatpush3.msra.mxu1 %v96_v32 }
  0xa0   :  { %1039 = vmatprep.subr.mxu1 %v111_v34 }
  0xa1   :  { %1040 = vmatpush3.msra.mxu1 %v95_v36 }
  0xa2   :  { %1041 = vmatprep.subr.mxu1 %v110_v38 }
  0xa3   :  { %1042 = vmatpush3.msra.mxu1 %v94_v40 }
  0xa4   :  { %1043 = vmatprep.subr.mxu1 %v109_v42 }
  0xa5   :  { %1044 = vmatpush3.msra.mxu1 %v93_v44 }
  0xa6   :  { %1045 = vmatprep.subr.mxu1 %v108_v48 }
  0xa7   :  { %1046 = vmatpush3.msra.mxu1 %v92_v50 }
  0xa8   :  { %1047 = vmatprep.subr.mxu1 %v107_v51 }
  0xa9   :  { %1048 = vmatpush3.msra.mxu1 %v91_v55 }
 0x102   :  { %v340_v2 = vpop.f32.mrf.mxu0 }
 0x103   :  { %v543_v4 = vpop.f32.mrf.mxu1 }
 0x104   :  { %v544_v6 = vadd.f32 %v543_v4, %v340_v2  ;;  %v342_v12 = vpop.f32.mrf.mxu0 }
 0x105   :  { %v545_v14 = vpop.f32.mrf.mxu1 }
 0x106   :  { %v561_v16 = vmul.f32 %v1784_v0, %v544_v6  ;;  %v546_v18 = vadd.f32 %v545_v14, %v342_v12  ;;  %v344_v22 = vpop.f32.mrf.mxu0 }
 0x107   :  { %v547_v24 = vpop.f32.mrf.mxu1 }
 0x108   :  { %v574_v26 = vadd.f32 %v1786_v8, %v561_v16  ;;  %v562_v28 = vmul.f32 %v1788_v10, %v546_v18  ;;  %v345_v30 = vpop.f32.mrf.mxu0 }
 0x109   :  { %v548_v32 = vpop.f32.mrf.mxu1 }
 0x10a   :  { %v576_v34 = vmax.f32 %v574_v26, 0.0  ;;  %v575_v36 = vadd.f32 %v1791_v20, %v562_v28 }
 0x10c   :  { %v579_v38 = vsel %vm578_vm0, %v576_v34, 0.0  ;;  %v577_v40 = vmax.f32 %v575_v36, 0.0 }
 0x10d   :  { %v580_v42 = vrot.slane %v579_v38, 4 }
 0x10e   :  { %v586_v44 = vsel %vm578_vm0, %v577_v40, 0.0 }
 0x10f   :  { %v581_v48 = vadd.f32 %v580_v42, %v579_v38  ;;  %v587_v50 = vrot.slane %v586_v44, 4 }
 0x111   :  { %v582_v51 = vrot.slane %v581_v48, 2  ;;  %v588_v55 = vadd.f32 %v587_v50, %v586_v44 }
 0x113   :  { %v589_v56 = vrot.slane %v588_v55, 2  ;;  %v583_v61 = vadd.f32 %v582_v51, %v581_v48 }
 0x115   :  { %v590_v63 = vadd.f32 %v589_v56, %v588_v55  ;;  %v584_v52 = vrot.slane %v583_v61, 1 }
 0x117   :  { %v591_v54 = vrot.slane %v590_v63, 1  ;;  %v585_v47 = vadd.f32 %v584_v52, %v583_v61 }
 0x119   :  { %v592_v1 = vadd.f32 %v591_v54, %v590_v63  ;;  %v593_v46 = vmul.f32 0.25, %v585_v47 }
 0x11b   :  { %v594_v49 = vmul.f32 0.25, %v592_v1 }
 0x11d   :  { %659 = vmatprep.mubr.f32.mxu0 %v594_v49 }
 0x11e   :  { %660 = vmatmul.mubr.f32.vlgmr.msra.gmra.mxu0 %v593_v46 }
 0x11f   :  { %734 = vmatpush1.bf16.msra.mxu0 %v1230_v3  ;;  %765 = vmatprep.mubr.bf16.mxu0 %v1757_v57  ;;  %v1870_v3 = vld [vmem:[#allocation5_spill] sm:$0xff] }
 0x120   :  { %735 = vmatprep.subr.bf16.mxu0 %v1243_v5  ;;  %v1871_v5 = vld [vmem:[#allocation6_spill] sm:$0xff] }
 0x123   :  { %736 = vmatpush1.bf16.msra.mxu0 %v1254_v7  ;;  %v1872_v7 = vld [vmem:[#allocation7_spill] sm:$0xff] }
 0x124   :  { %737 = vmatprep.subr.bf16.mxu0 %v1265_v9  ;;  %v1873_v9 = vld [vmem:[#allocation8_spill] sm:$0xff] }
 0x127   :  { %738 = vmatpush1.bf16.msra.mxu0 %v1275_v11  ;;  %v1874_v11 = vld [vmem:[#allocation9_spill] sm:$0xff] }
 0x128   :  { %739 = vmatprep.subr.bf16.mxu0 %v1289_v13  ;;  %v1875_v13 = vld [vmem:[#allocation10_spill] sm:$0xff] }
 0x12b   :  { %740 = vmatpush1.bf16.msra.mxu0 %v1301_v15  ;;  %v1876_v15 = vld [vmem:[#allocation11_spill] sm:$0xff] }
 0x12c   :  { %741 = vmatprep.subr.bf16.mxu0 %v1313_v17  ;;  %v1877_v17 = vld [vmem:[#allocation12_spill] sm:$0xff] }
 0x12f   :  { %742 = vmatpush1.bf16.msra.mxu0 %v1323_v19  ;;  %v1878_v19 = vld [vmem:[#allocation13_spill] sm:$0xff] }
 0x130   :  { %743 = vmatprep.subr.bf16.mxu0 %v1337_v21 }
 0x133   :  { %744 = vmatpush1.bf16.msra.mxu0 %v1349_v23 }
 0x134   :  { %745 = vmatprep.subr.bf16.mxu0 %v1361_v25 }
 0x137   :  { %746 = vmatpush1.bf16.msra.mxu0 %v1371_v27 }
 0x138   :  { %747 = vmatprep.subr.bf16.mxu0 %v1385_v29 }
 0x13b   :  { %748 = vmatpush1.bf16.msra.mxu0 %v1397_v31  ;;  %v123_v31 = vld [vmem:[%s1850_s5] sm:$0x1]  ;;  %s1175_s5 = smov [#allocation2]  }
 0x13c   :  { %749 = vmatprep.subr.bf16.mxu0 %v1409_v33  ;;  %s873_s24 = sshll.u32 %s1175_s5, 4  ;;  %s874_s24 = int_to_ptr.vmem [resolvable:$true] %s873_s24 }
 0x13d   :  { %s1153_s25 = scalar_lea.vmem %s874_s24, 32  ;;  %p1158_p1 = scmp.lt.s32.totalorder %s874_s24, %s874_s24 }
 0x13e   :  { %p1154_p0 = scmp.ne.s32.totalorder %s874_s24, %s1153_s25  ;;  %p1159_p2 = scmp.lt.s32.totalorder %s1153_s25, %s1153_s25 }
 0x13f   :  { %750 = vmatpush2.bf16.msra.mxu0 %v1419_v35 }
 0x140   :  { %751 = vmatprep.subr.bf16.mxu0 %v1433_v37  ;;  %p1160_p3 = por %p1159_p2, %p1158_p1 }
 0x142   :  { %p1161_p4 = pnand %p1160_p3, %p1154_p0 }
 0x143   :  { %752 = vmatpush2.bf16.msra.mxu0 %v1445_v39 }
 0x144   :  { %753 = vmatprep.subr.bf16.mxu0 %v1457_v41 }
 0x147   :  { %754 = vmatpush2.bf16.msra.mxu0 %v1467_v43 }
 0x148   :  { %755 = vmatprep.subr.bf16.mxu0 %v1481_v45 }
 0x14a   :  { %v724_v21 = vpop.f32.mrf.mxu1 }
 0x14b   :  { %756 = vmatpush2.bf16.msra.mxu0 %v1870_v3 }
 0x14c   :  { %757 = vmatprep.subr.bf16.mxu0 %v1871_v5  ;;  %v726_v23 = vpop.f32.mrf.mxu1 }
 0x14e   :  { %v728_v25 = vpop.f32.mrf.mxu1 }
 0x14f   :  { %758 = vmatpush2.bf16.msra.mxu0 %v1872_v7 }
 0x150   :  { %759 = vmatprep.subr.bf16.mxu0 %v1873_v9  ;;  %v729_v27 = vpop.f32.mrf.mxu1 }
 0x153   :  { %760 = vmatpush2.bf16.msra.mxu0 %v1874_v11 }
 0x154   :  { %761 = vmatprep.subr.bf16.mxu0 %v1875_v13 }
 0x157   :  { %762 = vmatpush2.bf16.msra.mxu0 %v1876_v15 }
 0x158   :  { %763 = vmatprep.subr.bf16.mxu0 %v1877_v17 }
 0x15b   :  { %764 = vmatpush2.bf16.msra.mxu0 %v1878_v19 }
 0x15e   :  { %766 = vmatmul.mubr.bf16.vlgmr.msra.gmra.mxu0 %v1759_v60 }
 0x1de   :  { %v1014_v29 = vpop.f32.mrf.mxu0 }
 0x1e0   :  { %v1015_v33 = vpop.f32.mrf.mxu0 }
 0x1e1   :  { %v1016_v35 = vadd.f32 %v1015_v33, %v1014_v29 }
 0x1e3   :  { %v662_v37 = vadd.f32 %v1016_v35, %v123_v31 }
 0x1e5   :  { %666 = vst.msk [vmem:[#allocation2] sm:$0x1] %vm665_vm1, %v662_v37 }
 0x21e   :  { %v767_v39 = vpop.f32.mrf.mxu0 }
 0x21f   :  { %v768_v41 = vadd.f32 %v767_v39, %v724_v21 }
 0x220   :  { %v769_v43 = vpop.f32.mrf.mxu0 }
 0x221   :  { %v774_v45 = vmul.f32 %v768_v41, %v1784_v0  ;;  %v770_v57 = vadd.f32 %v769_v43, %v726_v23 }
 0x222   :  { %v771_v60 = vpop.f32.mrf.mxu0 }
 0x223   :  { %v776_v53 = vadd.f32 %v774_v45, %v1786_v8  ;;  %v775_v59 = vmul.f32 %v770_v57, %v1788_v10 }
 0x224   :  { %v772_v58 = vpop.f32.mrf.mxu0 }
 0x225   :  { %v778_v62 = vmax.f32 %v776_v53, 0.0  ;;  %v777_v2 = vadd.f32 %v775_v59, %v1791_v20 }
 0x227   :  { %v780_v4 = vsel %vm578_vm0, %v778_v62, 0.0  ;;  %v779_v6 = vmax.f32 %v777_v2, 0.0 }
 0x228   :  { %v781_v12 = vrot.slane %v780_v4, 4 }
 0x229   :  { %v787_v14 = vsel %vm578_vm0, %v779_v6, 0.0 }
 0x22a   :  { %v782_v16 = vadd.f32 %v781_v12, %v780_v4  ;;  %v788_v18 = vrot.slane %v787_v14, 4 }
 0x22c   :  { %v783_v22 = vrot.slane %v782_v16, 2  ;;  %v789_v0 = vadd.f32 %v788_v18, %v787_v14 }
 0x22e   :  { %v790_v24 = vrot.slane %v789_v0, 2  ;;  %v784_v26 = vadd.f32 %v783_v22, %v782_v16 }
 0x230   :  { %v791_v28 = vadd.f32 %v790_v24, %v789_v0  ;;  %v785_v8 = vrot.slane %v784_v26, 1 }
 0x232   :  { %v792_v30 = vrot.slane %v791_v28, 1  ;;  %v786_v10 = vadd.f32 %v785_v8, %v784_v26 }
 0x234   :  { %v793_v32 = vadd.f32 %v792_v30, %v791_v28  ;;  %v794_v36 = vmul.f32 0.25, %v786_v10 }
 0x236   :  { %v795_v34 = vmul.f32 0.25, %v793_v32 }
 0x238   :  { %860 = vmatprep.mubr.f32.mxu1 %v795_v34 }
 0x239   :  { %861 = vmatmul.mubr.f32.vlgmr.msra.gmra.mxu1 %v794_v36 }
 0x2f9   :  { %v1049_v20 = vpop.f32.mrf.mxu1 }
 0x2fb   :  { %v1050_v38 = vpop.f32.mrf.mxu1 }
 0x2fc   :  { %v1051_v40 = vadd.f32 %v1050_v38, %v1049_v20 }
 0x2fe   :  { %v863_v42 = vadd.f32 %v1051_v40, %v123_v31 }
 0x300   :  { %866 = vst.msk [vmem:[#allocation2 + $0x1] sm:$0x1] %vm665_vm1, %v863_v42 }
 0x301   :  { %1164 = shalt.err (!%p1161_p4)
}
 0x302   :  { %876 = dma.vmem_to_hbm [thread:$0]  %s874_s24, 32, %s1851_s6, [#allocation3]  }
 0x303   :  { %1173 = dma.done.wait [#allocation3], 32  }
 0x304   :  { %1174 = vsyncadd [#allocation3], 4294967264 }
 0x305   :  { %880 = vsyncpa [#allocation3], 1 }

</bundles_post_ra>
